<compile_context>
chip_gen: v7x
topology: tpu7x:2x2x1
jax: 0.10.0
libtpu: 0.0.40
codegen_flags: <defaults>
</compile_context>

<pallas_src>
import functools

import jax
import jax.numpy as jnp
import numpy as np
from jax import lax
from jax.experimental import pallas as pl
from jax.experimental.pallas import tpu as pltpu


# ------------------------------------------------------------------
# small helpers
# ------------------------------------------------------------------
def _round_up(x, m):
    return (x + m - 1) // m * m


def _cdiv(a, b):
    return -(-a // b)


def _pad_gate_mat(w, in_pad, h, h_pad):
    """(in_dim, 4*h) -> (in_pad, 4*h_pad). Pad PER GATE so [i|f|g|o] boundaries land at h_pad."""
    in_dim = w.shape[0]
    w4 = w.reshape(in_dim, 4, h)
    w4 = jnp.pad(w4, ((0, in_pad - in_dim), (0, 0), (0, h_pad - h)))
    return w4.reshape(in_pad, 4 * h_pad)


def _pad_gate_bias(b, h, h_pad):
    b4 = b.reshape(1, 4, h)
    b4 = jnp.pad(b4, ((0, 0), (0, 0), (0, h_pad - h)))
    return b4.reshape(1, 4 * h_pad)


def _const_block_spec(shape, index_map):
    """Loop-invariant block: fetched once, never re-fetched -> request single buffering."""
    try:
        return pl.BlockSpec(shape, index_map, pipeline_mode=pl.Buffered(1))
    except (TypeError, AttributeError):
        # older jax without pipeline_mode support: fall back to default double buffering
        return pl.BlockSpec(shape, index_map)


# ------------------------------------------------------------------
# fused Pallas kernel (all LSTM layers + FC head)
# ------------------------------------------------------------------
def _make_fused_kernel(n_layers, t_chunk, bt, h_pad, seq_len, pad_start_tt,
                       use_xproj_scratch):
    """Kernel args (in order):
         x_ref (T_CHUNK, BT, E_pad) bf16                     -- time-major embedded chunk
         wih0 (E_pad, 4H_pad) bf16, whh0 (H_pad, 4H_pad) bf16, b0 (1, 4H_pad) f32
         [wih_l (H_pad,4H_pad) bf16, whh_l (H_pad,4H_pad) bf16, b_l (1,4H_pad) f32] * (L-1)
         fc_w (H_pad, O_pad) bf16, fc_b (1, O_pad) f32
         out_ref (BT, O_pad) f32
         scratch: h (L, BT, H_pad) f32, c (L, BT, H_pad) f32 [, xproj (T_CHUNK, BT, 4H_pad) f32]
    """

    def kernel(*refs):
        x_ref = refs[0]
        wih0_ref, whh0_ref, b0_ref = refs[1], refs[2], refs[3]
        pos = 4
        upper_refs = []
        for _ in range(n_layers - 1):
            upper_refs.append((refs[pos], refs[pos + 1], refs[pos + 2]))
            pos += 3
        fc_w_ref, fc_b_ref = refs[pos], refs[pos + 1]
        out_ref = refs[pos + 2]
        h_sc, c_sc = refs[pos + 3], refs[pos + 4]
        xproj_sc = refs[pos + 5] if use_xproj_scratch else None

        t_step = pl.program_id(1)

        # zero h/c at the start of every batch tile's time sweep
        @pl.when(t_step == 0)
        def _():
            h_sc[...] = jnp.zeros_like(h_sc)
            c_sc[...] = jnp.zeros_like(c_sc)

        # ---- layer-0 input projection for the WHOLE chunk: one bf16 MXU matmul, M=T*B ----
        x_flat = x_ref[...].reshape(t_chunk * bt, -1)                     # bf16 (T*B, E_pad)
        xp = (jnp.dot(x_flat, wih0_ref[...], preferred_element_type=jnp.float32)
              + b0_ref[...])                                              # f32 (T*B, 4H_pad)
        if use_xproj_scratch:
            xproj_sc[...] = xp.reshape(t_chunk, bt, 4 * h_pad)

            def get_xp(tt):
                return xproj_sc[tt]
        else:
            # small chunk: slice the live value directly -> no store+load round trip
            def get_xp(tt):
                return xp[tt * bt:(tt + 1) * bt, :]

        # hoist loop-invariant weight loads / bias broadcasts out of the time loop
        whh0 = whh0_ref[...]                                              # bf16
        upper = [(wih_ref[...], whh_ref[...],
                  jnp.broadcast_to(b_ref[...], (bt, 4 * h_pad)))
                 for (wih_ref, whh_ref, b_ref) in upper_refs]

        # carry h/c as local f32 values through the unrolled chunk
        hs = [h_sc[l] for l in range(n_layers)]
        cs = [c_sc[l] for l in range(n_layers)]

        def cell(gates, c_prev):
            # PyTorch gate order [i | f | g | o]; every slice is lane-aligned (H_pad = k*128)
            i_g = jax.nn.sigmoid(gates[:, 0 * h_pad:1 * h_pad])
            f_g = jax.nn.sigmoid(gates[:, 1 * h_pad:2 * h_pad])
            g_g = jnp.tanh(gates[:, 2 * h_pad:3 * h_pad])
            o_g = jax.nn.sigmoid(gates[:, 3 * h_pad:4 * h_pad])
            c_new = f_g * c_prev + i_g * g_g
            h_new = o_g * jnp.tanh(c_new)
            return h_new, c_new

        # fully unrolled static time loop over the chunk; only the recurrent h @ Whh work
        # sits on the serial path for layer 0, upper layers do two accumulated bf16 dots.
        for tt in range(t_chunk):
            maybe_padded = tt >= pad_start_tt       # static: padding only possible here
            if maybe_padded:
                valid = (t_step * t_chunk + tt) < seq_len

            gates0 = get_xp(tt) + jnp.dot(hs[0].astype(jnp.bfloat16), whh0,
                                          preferred_element_type=jnp.float32)
            h_new, c_new = cell(gates0, cs[0])
            if maybe_padded:
                h_new = jnp.where(valid, h_new, hs[0])
                c_new = jnp.where(valid, c_new, cs[0])
            hs[0], cs[0] = h_new, c_new
            x_l = h_new

            for l in range(1, n_layers):
                wih_l, whh_l, b_bcast = upper[l - 1]
                gates = (jnp.dot(x_l.astype(jnp.bfloat16), wih_l,
                                 preferred_element_type=jnp.float32)
                         + jnp.dot(hs[l].astype(jnp.bfloat16), whh_l,
                                   preferred_element_type=jnp.float32)
                         + b_bcast)
                h_new, c_new = cell(gates, cs[l])
                if maybe_padded:
                    h_new = jnp.where(valid, h_new, hs[l])
                    c_new = jnp.where(valid, c_new, cs[l])
                hs[l], cs[l] = h_new, c_new
                x_l = h_new

        # write the carried state back once per chunk
        for l in range(n_layers):
            h_sc[l] = hs[l]
            c_sc[l] = cs[l]

        # ---- FC head epilogue: only at the last time-chunk, only the final hidden state ----
        @pl.when(t_step == pl.num_programs(1) - 1)
        def _():
            out_ref[...] = (jnp.dot(hs[n_layers - 1].astype(jnp.bfloat16), fc_w_ref[...],
                                    preferred_element_type=jnp.float32)
                            + fc_b_ref[...])

    return kernel


# ------------------------------------------------------------------
# wrapper
# ------------------------------------------------------------------
def sentiment_rnn_pallas(tokens, params, *, time_chunk_cap=8, batch_tile_cap=128):
    emb = params["embedding"]                  # (V, E)
    lstm = params["lstm"]                      # list of {"wih_t","whh_t","b"}
    fc_w, fc_b = params["fc_w"], params["fc_b"]

    B, S = tokens.shape
    E = emb.shape[1]
    H = lstm[0]["whh_t"].shape[0]
    O = fc_w.shape[1]
    n_layers = len(lstm)

    # lane / sublane friendly padding
    E_pad = _round_up(E, 128)
    H_pad = _round_up(H, 128)
    O_pad = _round_up(O, 128)

    # batch tiling: balanced tiles; >= 2 tiles whenever possible so v7x's 2nd TC is used
    n_tiles = max(1, _cdiv(B, batch_tile_cap))
    if _round_up(B, 8) >= 16:
        n_tiles = max(n_tiles, 2)
    BT = _round_up(_cdiv(B, n_tiles), 8)           # batch tile (parallel axis)
    NB = n_tiles
    B_pad = BT * NB

    # time chunking: cdiv-based + in-kernel masking of padded steps (robust to any S)
    T_CHUNK = min(time_chunk_cap, S)
    NT = _cdiv(S, T_CHUNK)
    S_pad = NT * T_CHUNK
    pad_start_tt = S - (NT - 1) * T_CHUNK          # == T_CHUNK when S_pad == S (no masking)

    # ---- XLA glue: embedding gather + eval-mode dropout (identity) + pad + time-major ----
    x = jnp.take(emb, tokens, axis=0)                                    # (B, S, E) f32
    x = jnp.pad(x, ((0, B_pad - B), (0, S_pad - S), (0, E_pad - E)))
    x = jnp.transpose(x, (1, 0, 2)).astype(jnp.bfloat16)                 # (S_pad, B_pad, E_pad)

    # ---- pad weights (per-gate padding keeps the [i|f|g|o] layout at H_pad boundaries),
    #      MXU operands in bf16, biases stay f32 (VPU adds) ----
    wih0 = _pad_gate_mat(lstm[0]["wih_t"], E_pad, H, H_pad).astype(jnp.bfloat16)
    whh0 = _pad_gate_mat(lstm[0]["whh_t"], H_pad, H, H_pad).astype(jnp.bfloat16)
    b0 = _pad_gate_bias(lstm[0]["b"], H, H_pad)                          # f32 (1, 4H_pad)
    upper_args = []
    for l in range(1, n_layers):
        upper_args.append(_pad_gate_mat(lstm[l]["wih_t"], H_pad, H, H_pad).astype(jnp.bfloat16))
        upper_args.append(_pad_gate_mat(lstm[l]["whh_t"], H_pad, H, H_pad).astype(jnp.bfloat16))
        upper_args.append(_pad_gate_bias(lstm[l]["b"], H, H_pad))
    fc_w_p = jnp.pad(fc_w, ((0, H_pad - H), (0, O_pad - O))).astype(jnp.bfloat16)
    fc_b_p = jnp.pad(fc_b, ((0, 0), (0, O_pad - O)))                     # f32 (1, O_pad)

    # xproj scratch only when the live chunk projection would spill anyway
    xproj_bytes = T_CHUNK * BT * 4 * H_pad * 4
    use_xproj_scratch = xproj_bytes > (2 << 20)

    kernel = _make_fused_kernel(n_layers, T_CHUNK, BT, H_pad, S, pad_start_tt,
                                use_xproj_scratch)

    const = lambda b, t: (0, 0)   # loop-invariant blocks: DMA'd once, never re-fetched
    in_specs = [
        pl.BlockSpec((T_CHUNK, BT, E_pad), lambda b, t: (t, b, 0)),
        _const_block_spec((E_pad, 4 * H_pad), const),
        _const_block_spec((H_pad, 4 * H_pad), const),
        _const_block_spec((1, 4 * H_pad), const),
    ]
    for _ in range(n_layers - 1):
        in_specs.append(_const_block_spec((H_pad, 4 * H_pad), const))
        in_specs.append(_const_block_spec((H_pad, 4 * H_pad), const))
        in_specs.append(_const_block_spec((1, 4 * H_pad), const))
    in_specs.append(_const_block_spec((H_pad, O_pad), const))
    in_specs.append(_const_block_spec((1, O_pad), const))

    scratch_shapes = [
        pltpu.VMEM((n_layers, BT, H_pad), jnp.float32),      # h state (all layers)
        pltpu.VMEM((n_layers, BT, H_pad), jnp.float32),      # c state (all layers)
    ]
    if use_xproj_scratch:
        scratch_shapes.append(pltpu.VMEM((T_CHUNK, BT, 4 * H_pad), jnp.float32))

    # ---- explicit VMEM budget (raises the default 16/32 MiB scoped limit) ----
    def _nbytes(a):
        return int(np.prod(a.shape)) * a.dtype.itemsize

    weight_arrays = [wih0, whh0, b0, *upper_args, fc_w_p, fc_b_p]
    weight_bytes = sum(_nbytes(a) for a in weight_arrays)
    x_block_bytes = T_CHUNK * BT * E_pad * 2
    out_block_bytes = BT * O_pad * 4
    scratch_bytes = (2 * n_layers * BT * H_pad * 4
                     + (xproj_bytes if use_xproj_scratch else 0))
    temp_bytes = xproj_bytes + 4 * BT * 4 * H_pad * 4        # live xp / gates / casts
    # budget weights at x2 in case single-buffering is unavailable on this jax version
    needed = (2 * x_block_bytes + 2 * out_block_bytes + 2 * weight_bytes
              + scratch_bytes + temp_bytes)
    vmem_limit = int(min(max(needed + (8 << 20), 32 << 20), 128 << 20))

    out = pl.pallas_call(
        kernel,
        out_shape=jax.ShapeDtypeStruct((B_pad, O_pad), jnp.float32),
        grid_spec=pltpu.PrefetchScalarGridSpec(
            num_scalar_prefetch=0,
            grid=(NB, NT),
            in_specs=in_specs,
            out_specs=pl.BlockSpec((BT, O_pad), lambda b, t: (b, 0)),
            scratch_shapes=scratch_shapes,
        ),
        compiler_params=pltpu.CompilerParams(
            dimension_semantics=("parallel", "arbitrary"),
            vmem_limit_bytes=vmem_limit),
    )(x, wih0, whh0, b0, *upper_args, fc_w_p, fc_b_p)

    return out[:B, :O]


@functools.partial(jax.jit, static_argnames=())
def sentiment_rnn_forward(tokens, params):
    """tokens: (B, S) int32. Returns logits (B, output_dim)."""
    return sentiment_rnn_pallas(tokens, params)


# ------------------------------------------------------------------
# Pure-JAX reference (for verification; f32 end-to-end)
# ------------------------------------------------------------------
def lstm_layer_ref(x_seq, wih_t, whh_t, b):
    S, B, E = x_seq.shape
    Hd = whh_t.shape[0]

    def step(carry, x_t):
        h, c = carry
        gates = x_t @ wih_t + h @ whh_t + b
        i = jax.nn.sigmoid(gates[:, 0 * Hd:1 * Hd])
        f = jax.nn.sigmoid(gates[:, 1 * Hd:2 * Hd])
        g = jnp.tanh(gates[:, 2 * Hd:3 * Hd])
        o = jax.nn.sigmoid(gates[:, 3 * Hd:4 * Hd])
        c_new = f * c + i * g
        h_new = o * jnp.tanh(c_new)
        return (h_new, c_new), h_new

    init = (jnp.zeros((B, Hd), jnp.float32), jnp.zeros((B, Hd), jnp.float32))
    _, ys = lax.scan(step, init, x_seq)
    return ys


def sentiment_rnn_ref(tokens, params):
    x = jnp.take(params["embedding"], tokens, axis=0)
    x = jnp.transpose(x, (1, 0, 2))
    for layer in params["lstm"]:
        x = lstm_layer_ref(x, layer["wih_t"], layer["whh_t"], layer["b"])
    return x[-1] @ params["fc_w"] + params["fc_b"]


# ------------------------------------------------------------------
# Deterministic parameter init (shapes follow nn.Embedding / nn.LSTM / nn.Linear)
# ------------------------------------------------------------------
def init_params(key, vocab_size, embedding_dim, hidden_dim, output_dim, n_layers):
    keys = jax.random.split(key, 2 + 4 * n_layers + 2)
    k_it = iter(keys)
    scale = 1.0 / np.sqrt(hidden_dim)

    params = {}
    params["embedding"] = jax.random.normal(next(k_it), (vocab_size, embedding_dim),
                                            jnp.float32)

    lstm_layers = []
    for l in range(n_layers):
        in_dim = embedding_dim if l == 0 else hidden_dim
        w_ih = jax.random.uniform(next(k_it), (4 * hidden_dim, in_dim),
                                  jnp.float32, -scale, scale)
        w_hh = jax.random.uniform(next(k_it), (4 * hidden_dim, hidden_dim),
                                  jnp.float32, -scale, scale)
        b_ih = jax.random.uniform(next(k_it), (4 * hidden_dim,),
                                  jnp.float32, -scale, scale)
        b_hh = jax.random.uniform(next(k_it), (4 * hidden_dim,),
                                  jnp.float32, -scale, scale)
        lstm_layers.append({
            "wih_t": jnp.transpose(w_ih),                       # (in_dim, 4H)
            "whh_t": jnp.transpose(w_hh),                       # (H, 4H)
            "b": (b_ih + b_hh).reshape(1, 4 * hidden_dim),      # (1, 4H)
        })
    params["lstm"] = lstm_layers

    fc_w = jax.random.uniform(next(k_it), (output_dim, hidden_dim),
                              jnp.float32, -scale, scale)
    fc_b = jax.random.uniform(next(k_it), (output_dim,),
                              jnp.float32, -scale, scale)
    params["fc_w"] = jnp.transpose(fc_w)                        # (H, O)
    params["fc_b"] = fc_b.reshape(1, output_dim)                # (1, O)
    return params


# ------------------------------------------------------------------
if __name__ == "__main__":
    vocab_size = 100
    embedding_dim = 32
    hidden_dim = 32
    output_dim = 2
    n_layers = 2
    batch = 2
    seq = 8

    key = jax.random.PRNGKey(0)
    k_params, k_tokens = jax.random.split(key)
    params = init_params(k_params, vocab_size, embedding_dim, hidden_dim,
                         output_dim, n_layers)
    tokens = jax.random.randint(k_tokens, (batch, seq), 0, vocab_size, jnp.int32)

    out = sentiment_rnn_forward(tokens, params)
    jax.block_until_ready(out)

    # bf16 MXU operands vs. f32 reference -> relaxed parity tolerance
    ref = sentiment_rnn_ref(tokens, params)
    np.testing.assert_allclose(np.asarray(out), np.asarray(ref), rtol=5e-2, atol=5e-2)

    print("KERNEL_OK")
</pallas_src>

<mosaic_0001>
module attributes {stable_mosaic.version = 11 : i64} {
  func.func @kernel(%arg0: i32, %arg1: i32, %arg2: memref<8x8x128xbf16, #tpu.memory_space<vmem>>, %arg3: memref<128x512xbf16, #tpu.memory_space<vmem>>, %arg4: memref<128x512xbf16, #tpu.memory_space<vmem>>, %arg5: memref<1x512xf32, #tpu.memory_space<vmem>>, %arg6: memref<128x512xbf16, #tpu.memory_space<vmem>>, %arg7: memref<128x512xbf16, #tpu.memory_space<vmem>>, %arg8: memref<1x512xf32, #tpu.memory_space<vmem>>, %arg9: memref<128x128xbf16, #tpu.memory_space<vmem>>, %arg10: memref<1x128xf32, #tpu.memory_space<vmem>>, %arg11: memref<8x128xf32, #tpu.memory_space<vmem>>, %arg12: memref<2x8x128xf32, #tpu.memory_space<vmem>>, %arg13: memref<2x8x128xf32, #tpu.memory_space<vmem>>) attributes {dimension_semantics = [#tpu.dimension_semantics<parallel>, #tpu.dimension_semantics<arbitrary>], iteration_bounds = array<i64: 1, 1>, scalar_prefetch = 0 : i64, scratch_operands = 2 : i64, tpu.core_type = #tpu.core_type<tc>, window_params = [{transform_indices = @transform_0, window_bounds = array<i64: 8, 8, 128>}, {pipeline_mode = #tpu.pipeline_mode<synchronous>, transform_indices = @transform_1, window_bounds = array<i64: 128, 512>}, {pipeline_mode = #tpu.pipeline_mode<synchronous>, transform_indices = @transform_2, window_bounds = array<i64: 128, 512>}, {pipeline_mode = #tpu.pipeline_mode<synchronous>, transform_indices = @transform_3, window_bounds = array<i64: 1, 512>}, {pipeline_mode = #tpu.pipeline_mode<synchronous>, transform_indices = @transform_4, window_bounds = array<i64: 128, 512>}, {pipeline_mode = #tpu.pipeline_mode<synchronous>, transform_indices = @transform_5, window_bounds = array<i64: 128, 512>}, {pipeline_mode = #tpu.pipeline_mode<synchronous>, transform_indices = @transform_6, window_bounds = array<i64: 1, 512>}, {pipeline_mode = #tpu.pipeline_mode<synchronous>, transform_indices = @transform_7, window_bounds = array<i64: 128, 128>}, {pipeline_mode = #tpu.pipeline_mode<synchronous>, transform_indices = @transform_8, window_bounds = array<i64: 1, 128>}, {transform_indices = @transform_9, window_bounds = array<i64: 8, 128>}]} {
    %c0_i32 = arith.constant 0 : i32
    %0 = arith.cmpi eq, %arg1, %c0_i32 : i32
    %1 = arith.extui %0 : i1 to i32
    %c0_i32_0 = arith.constant 0 : i32
    %2 = arith.cmpi ne, %1, %c0_i32_0 : i32
    scf.if %2 {
      %cst_112 = arith.constant 0.000000e+00 : f32
      %519 = vector.broadcast %cst_112 : f32 to vector<2x8x128xf32>
      %c0_113 = arith.constant 0 : index
      %c0_114 = arith.constant 0 : index
      %c0_115 = arith.constant 0 : index
      %520 = vector.load %arg12[%c0_113, %c0_114, %c0_115] : memref<2x8x128xf32, #tpu.memory_space<vmem>>, vector<2x8x128xf32>
      tpu.vector_store %arg12[%c0_113, %c0_114, %c0_115], %519 {strides = array<i32>} : memref<2x8x128xf32, #tpu.memory_space<vmem>>, vector<2x8x128xf32>,
      %cst_116 = arith.constant 0.000000e+00 : f32
      %521 = vector.broadcast %cst_116 : f32 to vector<2x8x128xf32>
      %c0_117 = arith.constant 0 : index
      %c0_118 = arith.constant 0 : index
      %c0_119 = arith.constant 0 : index
      %522 = vector.load %arg13[%c0_117, %c0_118, %c0_119] : memref<2x8x128xf32, #tpu.memory_space<vmem>>, vector<2x8x128xf32>
      tpu.vector_store %arg13[%c0_117, %c0_118, %c0_119], %521 {strides = array<i32>} : memref<2x8x128xf32, #tpu.memory_space<vmem>>, vector<2x8x128xf32>,
    } else {
    }
    %c0 = arith.constant 0 : index
    %c0_1 = arith.constant 0 : index
    %c0_2 = arith.constant 0 : index
    %3 = vector.load %arg2[%c0, %c0_1, %c0_2] : memref<8x8x128xbf16, #tpu.memory_space<vmem>>, vector<8x8x128xbf16>
    %4 = vector.shape_cast %3 : vector<8x8x128xbf16> to vector<64x128xbf16>
    %c0_3 = arith.constant 0 : index
    %c0_4 = arith.constant 0 : index
    %5 = vector.load %arg3[%c0_3, %c0_4] : memref<128x512xbf16, #tpu.memory_space<vmem>>, vector<128x512xbf16>
    %cst = arith.constant dense<0.000000e+00> : vector<64x512xf32>
    %6 = tpu.matmul %4, %5, %cst {dimension_numbers = #tpu.dot_dimension_numbers<[1], [0], [0], [1], [0, 0, 1, 1], [], []>} : vector<64x128xbf16>, vector<128x512xbf16>, vector<64x512xf32> -> vector<64x512xf32>
    %c0_5 = arith.constant 0 : index
    %c0_6 = arith.constant 0 : index
    %7 = vector.load %arg5[%c0_5, %c0_6] : memref<1x512xf32, #tpu.memory_space<vmem>>, vector<1x512xf32>
    %8 = vector.broadcast %7 : vector<1x512xf32> to vector<64x512xf32>
    %9 = arith.addf %6, %8 : vector<64x512xf32>
    %c0_7 = arith.constant 0 : index
    %c0_8 = arith.constant 0 : index
    %10 = vector.load %arg4[%c0_7, %c0_8] : memref<128x512xbf16, #tpu.memory_space<vmem>>, vector<128x512xbf16>
    %c0_9 = arith.constant 0 : index
    %c0_10 = arith.constant 0 : index
    %11 = vector.load %arg6[%c0_9, %c0_10] : memref<128x512xbf16, #tpu.memory_space<vmem>>, vector<128x512xbf16>
    %c0_11 = arith.constant 0 : index
    %c0_12 = arith.constant 0 : index
    %12 = vector.load %arg7[%c0_11, %c0_12] : memref<128x512xbf16, #tpu.memory_space<vmem>>, vector<128x512xbf16>
    %c0_13 = arith.constant 0 : index
    %c0_14 = arith.constant 0 : index
    %13 = vector.load %arg8[%c0_13, %c0_14] : memref<1x512xf32, #tpu.memory_space<vmem>>, vector<1x512xf32>
    %14 = vector.shape_cast %13 : vector<1x512xf32> to vector<1x512xf32>
    %15 = vector.broadcast %14 : vector<1x512xf32> to vector<8x512xf32>
    %c0_15 = arith.constant 0 : index
    %c0_16 = arith.constant 0 : index
    %c0_17 = arith.constant 0 : index
    %16 = vector.load %arg12[%c0_15, %c0_16, %c0_17] : memref<2x8x128xf32, #tpu.memory_space<vmem>>, vector<1x8x128xf32>
    %17 = vector.shape_cast %16 : vector<1x8x128xf32> to vector<8x128xf32>
    %c1 = arith.constant 1 : index
    %c0_18 = arith.constant 0 : index
    %c0_19 = arith.constant 0 : index
    %18 = vector.load %arg12[%c1, %c0_18, %c0_19] : memref<2x8x128xf32, #tpu.memory_space<vmem>>, vector<1x8x128xf32>
    %19 = vector.shape_cast %18 : vector<1x8x128xf32> to vector<8x128xf32>
    %c0_20 = arith.constant 0 : index
    %c0_21 = arith.constant 0 : index
    %c0_22 = arith.constant 0 : index
    %20 = vector.load %arg13[%c0_20, %c0_21, %c0_22] : memref<2x8x128xf32, #tpu.memory_space<vmem>>, vector<1x8x128xf32>
    %21 = vector.shape_cast %20 : vector<1x8x128xf32> to vector<8x128xf32>
    %c1_23 = arith.constant 1 : index
    %c0_24 = arith.constant 0 : index
    %c0_25 = arith.constant 0 : index
    %22 = vector.load %arg13[%c1_23, %c0_24, %c0_25] : memref<2x8x128xf32, #tpu.memory_space<vmem>>, vector<1x8x128xf32>
    %23 = vector.shape_cast %22 : vector<1x8x128xf32> to vector<8x128xf32>
    %24 = vector.extract_strided_slice %9 {offsets = [0, 0], sizes = [8, 512], strides = [1, 1]} : vector<64x512xf32> to vector<8x512xf32>
    %25 = arith.truncf %17 : vector<8x128xf32> to vector<8x128xbf16>
    %cst_26 = arith.constant dense<0.000000e+00> : vector<8x512xf32>
    %26 = tpu.matmul %25, %10, %cst_26 {dimension_numbers = #tpu.dot_dimension_numbers<[1], [0], [0], [1], [0, 0, 1, 1], [], []>} : vector<8x128xbf16>, vector<128x512xbf16>, vector<8x512xf32> -> vector<8x512xf32>
    %27 = arith.addf %24, %26 : vector<8x512xf32>
    %28 = vector.extract_strided_slice %27 {offsets = [0, 0], sizes = [8, 128], strides = [1, 1]} : vector<8x512xf32> to vector<8x128xf32>
    %29 = arith.negf %28 : vector<8x128xf32>
    %30 = math.exp %29 : vector<8x128xf32>
    %cst_27 = arith.constant 1.000000e+00 : f32
    %31 = vector.broadcast %cst_27 : f32 to vector<8x128xf32>
    %32 = arith.addf %31, %30 : vector<8x128xf32>
    %33 = arith.divf %31, %32 : vector<8x128xf32>
    %34 = vector.extract_strided_slice %27 {offsets = [0, 128], sizes = [8, 128], strides = [1, 1]} : vector<8x512xf32> to vector<8x128xf32>
    %35 = arith.negf %34 : vector<8x128xf32>
    %36 = math.exp %35 : vector<8x128xf32>
    %cst_28 = arith.constant 1.000000e+00 : f32
    %37 = vector.broadcast %cst_28 : f32 to vector<8x128xf32>
    %38 = arith.addf %37, %36 : vector<8x128xf32>
    %39 = arith.divf %37, %38 : vector<8x128xf32>
    %40 = vector.extract_strided_slice %27 {offsets = [0, 256], sizes = [8, 128], strides = [1, 1]} : vector<8x512xf32> to vector<8x128xf32>
    %41 = math.tanh %40 : vector<8x128xf32>
    %42 = vector.extract_strided_slice %27 {offsets = [0, 384], sizes = [8, 128], strides = [1, 1]} : vector<8x512xf32> to vector<8x128xf32>
    %43 = arith.negf %42 : vector<8x128xf32>
    %44 = math.exp %43 : vector<8x128xf32>
    %cst_29 = arith.constant 1.000000e+00 : f32
    %45 = vector.broadcast %cst_29 : f32 to vector<8x128xf32>
    %46 = arith.addf %45, %44 : vector<8x128xf32>
    %47 = arith.divf %45, %46 : vector<8x128xf32>
    %48 = arith.mulf %39, %21 : vector<8x128xf32>
    %49 = arith.mulf %33, %41 : vector<8x128xf32>
    %50 = arith.addf %48, %49 : vector<8x128xf32>
    %51 = math.tanh %50 : vector<8x128xf32>
    %52 = arith.mulf %47, %51 : vector<8x128xf32>
    %53 = arith.truncf %52 : vector<8x128xf32> to vector<8x128xbf16>
    %cst_30 = arith.constant dense<0.000000e+00> : vector<8x512xf32>
    %54 = tpu.matmul %53, %11, %cst_30 {dimension_numbers = #tpu.dot_dimension_numbers<[1], [0], [0], [1], [0, 0, 1, 1], [], []>} : vector<8x128xbf16>, vector<128x512xbf16>, vector<8x512xf32> -> vector<8x512xf32>
    %55 = arith.truncf %19 : vector<8x128xf32> to vector<8x128xbf16>
    %cst_31 = arith.constant dense<0.000000e+00> : vector<8x512xf32>
    %56 = tpu.matmul %55, %12, %cst_31 {dimension_numbers = #tpu.dot_dimension_numbers<[1], [0], [0], [1], [0, 0, 1, 1], [], []>} : vector<8x128xbf16>, vector<128x512xbf16>, vector<8x512xf32> -> vector<8x512xf32>
    %57 = arith.addf %54, %56 : vector<8x512xf32>
    %58 = arith.addf %57, %15 : vector<8x512xf32>
    %59 = vector.extract_strided_slice %58 {offsets = [0, 0], sizes = [8, 128], strides = [1, 1]} : vector<8x512xf32> to vector<8x128xf32>
    %60 = arith.negf %59 : vector<8x128xf32>
    %61 = math.exp %60 : vector<8x128xf32>
    %cst_32 = arith.constant 1.000000e+00 : f32
    %62 = vector.broadcast %cst_32 : f32 to vector<8x128xf32>
    %63 = arith.addf %62, %61 : vector<8x128xf32>
    %64 = arith.divf %62, %63 : vector<8x128xf32>
    %65 = vector.extract_strided_slice %58 {offsets = [0, 128], sizes = [8, 128], strides = [1, 1]} : vector<8x512xf32> to vector<8x128xf32>
    %66 = arith.negf %65 : vector<8x128xf32>
    %67 = math.exp %66 : vector<8x128xf32>
    %cst_33 = arith.constant 1.000000e+00 : f32
    %68 = vector.broadcast %cst_33 : f32 to vector<8x128xf32>
    %69 = arith.addf %68, %67 : vector<8x128xf32>
    %70 = arith.divf %68, %69 : vector<8x128xf32>
    %71 = vector.extract_strided_slice %58 {offsets = [0, 256], sizes = [8, 128], strides = [1, 1]} : vector<8x512xf32> to vector<8x128xf32>
    %72 = math.tanh %71 : vector<8x128xf32>
    %73 = vector.extract_strided_slice %58 {offsets = [0, 384], sizes = [8, 128], strides = [1, 1]} : vector<8x512xf32> to vector<8x128xf32>
    %74 = arith.negf %73 : vector<8x128xf32>
    %75 = math.exp %74 : vector<8x128xf32>
    %cst_34 = arith.constant 1.000000e+00 : f32
    %76 = vector.broadcast %cst_34 : f32 to vector<8x128xf32>
    %77 = arith.addf %76, %75 : vector<8x128xf32>
    %78 = arith.divf %76, %77 : vector<8x128xf32>
    %79 = arith.mulf %70, %23 : vector<8x128xf32>
    %80 = arith.mulf %64, %72 : vector<8x128xf32>
    %81 = arith.addf %79, %80 : vector<8x128xf32>
    %82 = math.tanh %81 : vector<8x128xf32>
    %83 = arith.mulf %78, %82 : vector<8x128xf32>
    %84 = vector.extract_strided_slice %9 {offsets = [8, 0], sizes = [8, 512], strides = [1, 1]} : vector<64x512xf32> to vector<8x512xf32>
    %85 = arith.truncf %52 : vector<8x128xf32> to vector<8x128xbf16>
    %cst_35 = arith.constant dense<0.000000e+00> : vector<8x512xf32>
    %86 = tpu.matmul %85, %10, %cst_35 {dimension_numbers = #tpu.dot_dimension_numbers<[1], [0], [0], [1], [0, 0, 1, 1], [], []>} : vector<8x128xbf16>, vector<128x512xbf16>, vector<8x512xf32> -> vector<8x512xf32>
    %87 = arith.addf %84, %86 : vector<8x512xf32>
    %88 = vector.extract_strided_slice %87 {offsets = [0, 0], sizes = [8, 128], strides = [1, 1]} : vector<8x512xf32> to vector<8x128xf32>
    %89 = arith.negf %88 : vector<8x128xf32>
    %90 = math.exp %89 : vector<8x128xf32>
    %cst_36 = arith.constant 1.000000e+00 : f32
    %91 = vector.broadcast %cst_36 : f32 to vector<8x128xf32>
    %92 = arith.addf %91, %90 : vector<8x128xf32>
    %93 = arith.divf %91, %92 : vector<8x128xf32>
    %94 = vector.extract_strided_slice %87 {offsets = [0, 128], sizes = [8, 128], strides = [1, 1]} : vector<8x512xf32> to vector<8x128xf32>
    %95 = arith.negf %94 : vector<8x128xf32>
    %96 = math.exp %95 : vector<8x128xf32>
    %cst_37 = arith.constant 1.000000e+00 : f32
    %97 = vector.broadcast %cst_37 : f32 to vector<8x128xf32>
    %98 = arith.addf %97, %96 : vector<8x128xf32>
    %99 = arith.divf %97, %98 : vector<8x128xf32>
    %100 = vector.extract_strided_slice %87 {offsets = [0, 256], sizes = [8, 128], strides = [1, 1]} : vector<8x512xf32> to vector<8x128xf32>
    %101 = math.tanh %100 : vector<8x128xf32>
    %102 = vector.extract_strided_slice %87 {offsets = [0, 384], sizes = [8, 128], strides = [1, 1]} : vector<8x512xf32> to vector<8x128xf32>
    %103 = arith.negf %102 : vector<8x128xf32>
    %104 = math.exp %103 : vector<8x128xf32>
    %cst_38 = arith.constant 1.000000e+00 : f32
    %105 = vector.broadcast %cst_38 : f32 to vector<8x128xf32>
    %106 = arith.addf %105, %104 : vector<8x128xf32>
    %107 = arith.divf %105, %106 : vector<8x128xf32>
    %108 = arith.mulf %99, %50 : vector<8x128xf32>
    %109 = arith.mulf %93, %101 : vector<8x128xf32>
    %110 = arith.addf %108, %109 : vector<8x128xf32>
    %111 = math.tanh %110 : vector<8x128xf32>
    %112 = arith.mulf %107, %111 : vector<8x128xf32>
    %113 = arith.truncf %112 : vector<8x128xf32> to vector<8x128xbf16>
    %cst_39 = arith.constant dense<0.000000e+00> : vector<8x512xf32>
    %114 = tpu.matmul %113, %11, %cst_39 {dimension_numbers = #tpu.dot_dimension_numbers<[1], [0], [0], [1], [0, 0, 1, 1], [], []>} : vector<8x128xbf16>, vector<128x512xbf16>, vector<8x512xf32> -> vector<8x512xf32>
    %115 = arith.truncf %83 : vector<8x128xf32> to vector<8x128xbf16>
    %cst_40 = arith.constant dense<0.000000e+00> : vector<8x512xf32>
    %116 = tpu.matmul %115, %12, %cst_40 {dimension_numbers = #tpu.dot_dimension_numbers<[1], [0], [0], [1], [0, 0, 1, 1], [], []>} : vector<8x128xbf16>, vector<128x512xbf16>, vector<8x512xf32> -> vector<8x512xf32>
    %117 = arith.addf %114, %116 : vector<8x512xf32>
    %118 = arith.addf %117, %15 : vector<8x512xf32>
    %119 = vector.extract_strided_slice %118 {offsets = [0, 0], sizes = [8, 128], strides = [1, 1]} : vector<8x512xf32> to vector<8x128xf32>
    %120 = arith.negf %119 : vector<8x128xf32>
    %121 = math.exp %120 : vector<8x128xf32>
    %cst_41 = arith.constant 1.000000e+00 : f32
    %122 = vector.broadcast %cst_41 : f32 to vector<8x128xf32>
    %123 = arith.addf %122, %121 : vector<8x128xf32>
    %124 = arith.divf %122, %123 : vector<8x128xf32>
    %125 = vector.extract_strided_slice %118 {offsets = [0, 128], sizes = [8, 128], strides = [1, 1]} : vector<8x512xf32> to vector<8x128xf32>
    %126 = arith.negf %125 : vector<8x128xf32>
    %127 = math.exp %126 : vector<8x128xf32>
    %cst_42 = arith.constant 1.000000e+00 : f32
    %128 = vector.broadcast %cst_42 : f32 to vector<8x128xf32>
    %129 = arith.addf %128, %127 : vector<8x128xf32>
    %130 = arith.divf %128, %129 : vector<8x128xf32>
    %131 = vector.extract_strided_slice %118 {offsets = [0, 256], sizes = [8, 128], strides = [1, 1]} : vector<8x512xf32> to vector<8x128xf32>
    %132 = math.tanh %131 : vector<8x128xf32>
    %133 = vector.extract_strided_slice %118 {offsets = [0, 384], sizes = [8, 128], strides = [1, 1]} : vector<8x512xf32> to vector<8x128xf32>
    %134 = arith.negf %133 : vector<8x128xf32>
    %135 = math.exp %134 : vector<8x128xf32>
    %cst_43 = arith.constant 1.000000e+00 : f32
    %136 = vector.broadcast %cst_43 : f32 to vector<8x128xf32>
    %137 = arith.addf %136, %135 : vector<8x128xf32>
    %138 = arith.divf %136, %137 : vector<8x128xf32>
    %139 = arith.mulf %130, %81 : vector<8x128xf32>
    %140 = arith.mulf %124, %132 : vector<8x128xf32>
    %141 = arith.addf %139, %140 : vector<8x128xf32>
    %142 = math.tanh %141 : vector<8x128xf32>
    %143 = arith.mulf %138, %142 : vector<8x128xf32>
    %144 = vector.extract_strided_slice %9 {offsets = [16, 0], sizes = [8, 512], strides = [1, 1]} : vector<64x512xf32> to vector<8x512xf32>
    %145 = arith.truncf %112 : vector<8x128xf32> to vector<8x128xbf16>
    %cst_44 = arith.constant dense<0.000000e+00> : vector<8x512xf32>
    %146 = tpu.matmul %145, %10, %cst_44 {dimension_numbers = #tpu.dot_dimension_numbers<[1], [0], [0], [1], [0, 0, 1, 1], [], []>} : vector<8x128xbf16>, vector<128x512xbf16>, vector<8x512xf32> -> vector<8x512xf32>
    %147 = arith.addf %144, %146 : vector<8x512xf32>
    %148 = vector.extract_strided_slice %147 {offsets = [0, 0], sizes = [8, 128], strides = [1, 1]} : vector<8x512xf32> to vector<8x128xf32>
    %149 = arith.negf %148 : vector<8x128xf32>
    %150 = math.exp %149 : vector<8x128xf32>
    %cst_45 = arith.constant 1.000000e+00 : f32
    %151 = vector.broadcast %cst_45 : f32 to vector<8x128xf32>
    %152 = arith.addf %151, %150 : vector<8x128xf32>
    %153 = arith.divf %151, %152 : vector<8x128xf32>
    %154 = vector.extract_strided_slice %147 {offsets = [0, 128], sizes = [8, 128], strides = [1, 1]} : vector<8x512xf32> to vector<8x128xf32>
    %155 = arith.negf %154 : vector<8x128xf32>
    %156 = math.exp %155 : vector<8x128xf32>
    %cst_46 = arith.constant 1.000000e+00 : f32
    %157 = vector.broadcast %cst_46 : f32 to vector<8x128xf32>
    %158 = arith.addf %157, %156 : vector<8x128xf32>
    %159 = arith.divf %157, %158 : vector<8x128xf32>
    %160 = vector.extract_strided_slice %147 {offsets = [0, 256], sizes = [8, 128], strides = [1, 1]} : vector<8x512xf32> to vector<8x128xf32>
    %161 = math.tanh %160 : vector<8x128xf32>
    %162 = vector.extract_strided_slice %147 {offsets = [0, 384], sizes = [8, 128], strides = [1, 1]} : vector<8x512xf32> to vector<8x128xf32>
    %163 = arith.negf %162 : vector<8x128xf32>
    %164 = math.exp %163 : vector<8x128xf32>
    %cst_47 = arith.constant 1.000000e+00 : f32
    %165 = vector.broadcast %cst_47 : f32 to vector<8x128xf32>
    %166 = arith.addf %165, %164 : vector<8x128xf32>
    %167 = arith.divf %165, %166 : vector<8x128xf32>
    %168 = arith.mulf %159, %110 : vector<8x128xf32>
    %169 = arith.mulf %153, %161 : vector<8x128xf32>
    %170 = arith.addf %168, %169 : vector<8x128xf32>
    %171 = math.tanh %170 : vector<8x128xf32>
    %172 = arith.mulf %167, %171 : vector<8x128xf32>
    %173 = arith.truncf %172 : vector<8x128xf32> to vector<8x128xbf16>
    %cst_48 = arith.constant dense<0.000000e+00> : vector<8x512xf32>
    %174 = tpu.matmul %173, %11, %cst_48 {dimension_numbers = #tpu.dot_dimension_numbers<[1], [0], [0], [1], [0, 0, 1, 1], [], []>} : vector<8x128xbf16>, vector<128x512xbf16>, vector<8x512xf32> -> vector<8x512xf32>
    %175 = arith.truncf %143 : vector<8x128xf32> to vector<8x128xbf16>
    %cst_49 = arith.constant dense<0.000000e+00> : vector<8x512xf32>
    %176 = tpu.matmul %175, %12, %cst_49 {dimension_numbers = #tpu.dot_dimension_numbers<[1], [0], [0], [1], [0, 0, 1, 1], [], []>} : vector<8x128xbf16>, vector<128x512xbf16>, vector<8x512xf32> -> vector<8x512xf32>
    %177 = arith.addf %174, %176 : vector<8x512xf32>
    %178 = arith.addf %177, %15 : vector<8x512xf32>
    %179 = vector.extract_strided_slice %178 {offsets = [0, 0], sizes = [8, 128], strides = [1, 1]} : vector<8x512xf32> to vector<8x128xf32>
    %180 = arith.negf %179 : vector<8x128xf32>
    %181 = math.exp %180 : vector<8x128xf32>
    %cst_50 = arith.constant 1.000000e+00 : f32
    %182 = vector.broadcast %cst_50 : f32 to vector<8x128xf32>
    %183 = arith.addf %182, %181 : vector<8x128xf32>
    %184 = arith.divf %182, %183 : vector<8x128xf32>
    %185 = vector.extract_strided_slice %178 {offsets = [0, 128], sizes = [8, 128], strides = [1, 1]} : vector<8x512xf32> to vector<8x128xf32>
    %186 = arith.negf %185 : vector<8x128xf32>
    %187 = math.exp %186 : vector<8x128xf32>
    %cst_51 = arith.constant 1.000000e+00 : f32
    %188 = vector.broadcast %cst_51 : f32 to vector<8x128xf32>
    %189 = arith.addf %188, %187 : vector<8x128xf32>
    %190 = arith.divf %188, %189 : vector<8x128xf32>
    %191 = vector.extract_strided_slice %178 {offsets = [0, 256], sizes = [8, 128], strides = [1, 1]} : vector<8x512xf32> to vector<8x128xf32>
    %192 = math.tanh %191 : vector<8x128xf32>
    %193 = vector.extract_strided_slice %178 {offsets = [0, 384], sizes = [8, 128], strides = [1, 1]} : vector<8x512xf32> to vector<8x128xf32>
    %194 = arith.negf %193 : vector<8x128xf32>
    %195 = math.exp %194 : vector<8x128xf32>
    %cst_52 = arith.constant 1.000000e+00 : f32
    %196 = vector.broadcast %cst_52 : f32 to vector<8x128xf32>
    %197 = arith.addf %196, %195 : vector<8x128xf32>
    %198 = arith.divf %196, %197 : vector<8x128xf32>
    %199 = arith.mulf %190, %141 : vector<8x128xf32>
    %200 = arith.mulf %184, %192 : vector<8x128xf32>
    %201 = arith.addf %199, %200 : vector<8x128xf32>
    %202 = math.tanh %201 : vector<8x128xf32>
    %203 = arith.mulf %198, %202 : vector<8x128xf32>
    %204 = vector.extract_strided_slice %9 {offsets = [24, 0], sizes = [8, 512], strides = [1, 1]} : vector<64x512xf32> to vector<8x512xf32>
    %205 = arith.truncf %172 : vector<8x128xf32> to vector<8x128xbf16>
    %cst_53 = arith.constant dense<0.000000e+00> : vector<8x512xf32>
    %206 = tpu.matmul %205, %10, %cst_53 {dimension_numbers = #tpu.dot_dimension_numbers<[1], [0], [0], [1], [0, 0, 1, 1], [], []>} : vector<8x128xbf16>, vector<128x512xbf16>, vector<8x512xf32> -> vector<8x512xf32>
    %207 = arith.addf %204, %206 : vector<8x512xf32>
    %208 = vector.extract_strided_slice %207 {offsets = [0, 0], sizes = [8, 128], strides = [1, 1]} : vector<8x512xf32> to vector<8x128xf32>
    %209 = arith.negf %208 : vector<8x128xf32>
    %210 = math.exp %209 : vector<8x128xf32>
    %cst_54 = arith.constant 1.000000e+00 : f32
    %211 = vector.broadcast %cst_54 : f32 to vector<8x128xf32>
    %212 = arith.addf %211, %210 : vector<8x128xf32>
    %213 = arith.divf %211, %212 : vector<8x128xf32>
    %214 = vector.extract_strided_slice %207 {offsets = [0, 128], sizes = [8, 128], strides = [1, 1]} : vector<8x512xf32> to vector<8x128xf32>
    %215 = arith.negf %214 : vector<8x128xf32>
    %216 = math.exp %215 : vector<8x128xf32>
    %cst_55 = arith.constant 1.000000e+00 : f32
    %217 = vector.broadcast %cst_55 : f32 to vector<8x128xf32>
    %218 = arith.addf %217, %216 : vector<8x128xf32>
    %219 = arith.divf %217, %218 : vector<8x128xf32>
    %220 = vector.extract_strided_slice %207 {offsets = [0, 256], sizes = [8, 128], strides = [1, 1]} : vector<8x512xf32> to vector<8x128xf32>
    %221 = math.tanh %220 : vector<8x128xf32>
    %222 = vector.extract_strided_slice %207 {offsets = [0, 384], sizes = [8, 128], strides = [1, 1]} : vector<8x512xf32> to vector<8x128xf32>
    %223 = arith.negf %222 : vector<8x128xf32>
    %224 = math.exp %223 : vector<8x128xf32>
    %cst_56 = arith.constant 1.000000e+00 : f32
    %225 = vector.broadcast %cst_56 : f32 to vector<8x128xf32>
    %226 = arith.addf %225, %224 : vector<8x128xf32>
    %227 = arith.divf %225, %226 : vector<8x128xf32>
    %228 = arith.mulf %219, %170 : vector<8x128xf32>
    %229 = arith.mulf %213, %221 : vector<8x128xf32>
    %230 = arith.addf %228, %229 : vector<8x128xf32>
    %231 = math.tanh %230 : vector<8x128xf32>
    %232 = arith.mulf %227, %231 : vector<8x128xf32>
    %233 = arith.truncf %232 : vector<8x128xf32> to vector<8x128xbf16>
    %cst_57 = arith.constant dense<0.000000e+00> : vector<8x512xf32>
    %234 = tpu.matmul %233, %11, %cst_57 {dimension_numbers = #tpu.dot_dimension_numbers<[1], [0], [0], [1], [0, 0, 1, 1], [], []>} : vector<8x128xbf16>, vector<128x512xbf16>, vector<8x512xf32> -> vector<8x512xf32>
    %235 = arith.truncf %203 : vector<8x128xf32> to vector<8x128xbf16>
    %cst_58 = arith.constant dense<0.000000e+00> : vector<8x512xf32>
    %236 = tpu.matmul %235, %12, %cst_58 {dimension_numbers = #tpu.dot_dimension_numbers<[1], [0], [0], [1], [0, 0, 1, 1], [], []>} : vector<8x128xbf16>, vector<128x512xbf16>, vector<8x512xf32> -> vector<8x512xf32>
    %237 = arith.addf %234, %236 : vector<8x512xf32>
    %238 = arith.addf %237, %15 : vector<8x512xf32>
    %239 = vector.extract_strided_slice %238 {offsets = [0, 0], sizes = [8, 128], strides = [1, 1]} : vector<8x512xf32> to vector<8x128xf32>
    %240 = arith.negf %239 : vector<8x128xf32>
    %241 = math.exp %240 : vector<8x128xf32>
    %cst_59 = arith.constant 1.000000e+00 : f32
    %242 = vector.broadcast %cst_59 : f32 to vector<8x128xf32>
    %243 = arith.addf %242, %241 : vector<8x128xf32>
    %244 = arith.divf %242, %243 : vector<8x128xf32>
    %245 = vector.extract_strided_slice %238 {offsets = [0, 128], sizes = [8, 128], strides = [1, 1]} : vector<8x512xf32> to vector<8x128xf32>
    %246 = arith.negf %245 : vector<8x128xf32>
    %247 = math.exp %246 : vector<8x128xf32>
    %cst_60 = arith.constant 1.000000e+00 : f32
    %248 = vector.broadcast %cst_60 : f32 to vector<8x128xf32>
    %249 = arith.addf %248, %247 : vector<8x128xf32>
    %250 = arith.divf %248, %249 : vector<8x128xf32>
    %251 = vector.extract_strided_slice %238 {offsets = [0, 256], sizes = [8, 128], strides = [1, 1]} : vector<8x512xf32> to vector<8x128xf32>
    %252 = math.tanh %251 : vector<8x128xf32>
    %253 = vector.extract_strided_slice %238 {offsets = [0, 384], sizes = [8, 128], strides = [1, 1]} : vector<8x512xf32> to vector<8x128xf32>
    %254 = arith.negf %253 : vector<8x128xf32>
    %255 = math.exp %254 : vector<8x128xf32>
    %cst_61 = arith.constant 1.000000e+00 : f32
    %256 = vector.broadcast %cst_61 : f32 to vector<8x128xf32>
    %257 = arith.addf %256, %255 : vector<8x128xf32>
    %258 = arith.divf %256, %257 : vector<8x128xf32>
    %259 = arith.mulf %250, %201 : vector<8x128xf32>
    %260 = arith.mulf %244, %252 : vector<8x128xf32>
    %261 = arith.addf %259, %260 : vector<8x128xf32>
    %262 = math.tanh %261 : vector<8x128xf32>
    %263 = arith.mulf %258, %262 : vector<8x128xf32>
    %264 = vector.extract_strided_slice %9 {offsets = [32, 0], sizes = [8, 512], strides = [1, 1]} : vector<64x512xf32> to vector<8x512xf32>
    %265 = arith.truncf %232 : vector<8x128xf32> to vector<8x128xbf16>
    %cst_62 = arith.constant dense<0.000000e+00> : vector<8x512xf32>
    %266 = tpu.matmul %265, %10, %cst_62 {dimension_numbers = #tpu.dot_dimension_numbers<[1], [0], [0], [1], [0, 0, 1, 1], [], []>} : vector<8x128xbf16>, vector<128x512xbf16>, vector<8x512xf32> -> vector<8x512xf32>
    %267 = arith.addf %264, %266 : vector<8x512xf32>
    %268 = vector.extract_strided_slice %267 {offsets = [0, 0], sizes = [8, 128], strides = [1, 1]} : vector<8x512xf32> to vector<8x128xf32>
    %269 = arith.negf %268 : vector<8x128xf32>
    %270 = math.exp %269 : vector<8x128xf32>
    %cst_63 = arith.constant 1.000000e+00 : f32
    %271 = vector.broadcast %cst_63 : f32 to vector<8x128xf32>
    %272 = arith.addf %271, %270 : vector<8x128xf32>
    %273 = arith.divf %271, %272 : vector<8x128xf32>
    %274 = vector.extract_strided_slice %267 {offsets = [0, 128], sizes = [8, 128], strides = [1, 1]} : vector<8x512xf32> to vector<8x128xf32>
    %275 = arith.negf %274 : vector<8x128xf32>
    %276 = math.exp %275 : vector<8x128xf32>
    %cst_64 = arith.constant 1.000000e+00 : f32
    %277 = vector.broadcast %cst_64 : f32 to vector<8x128xf32>
    %278 = arith.addf %277, %276 : vector<8x128xf32>
    %279 = arith.divf %277, %278 : vector<8x128xf32>
    %280 = vector.extract_strided_slice %267 {offsets = [0, 256], sizes = [8, 128], strides = [1, 1]} : vector<8x512xf32> to vector<8x128xf32>
    %281 = math.tanh %280 : vector<8x128xf32>
    %282 = vector.extract_strided_slice %267 {offsets = [0, 384], sizes = [8, 128], strides = [1, 1]} : vector<8x512xf32> to vector<8x128xf32>
    %283 = arith.negf %282 : vector<8x128xf32>
    %284 = math.exp %283 : vector<8x128xf32>
    %cst_65 = arith.constant 1.000000e+00 : f32
    %285 = vector.broadcast %cst_65 : f32 to vector<8x128xf32>
    %286 = arith.addf %285, %284 : vector<8x128xf32>
    %287 = arith.divf %285, %286 : vector<8x128xf32>
    %288 = arith.mulf %279, %230 : vector<8x128xf32>
    %289 = arith.mulf %273, %281 : vector<8x128xf32>
    %290 = arith.addf %288, %289 : vector<8x128xf32>
    %291 = math.tanh %290 : vector<8x128xf32>
    %292 = arith.mulf %287, %291 : vector<8x128xf32>
    %293 = arith.truncf %292 : vector<8x128xf32> to vector<8x128xbf16>
    %cst_66 = arith.constant dense<0.000000e+00> : vector<8x512xf32>
    %294 = tpu.matmul %293, %11, %cst_66 {dimension_numbers = #tpu.dot_dimension_numbers<[1], [0], [0], [1], [0, 0, 1, 1], [], []>} : vector<8x128xbf16>, vector<128x512xbf16>, vector<8x512xf32> -> vector<8x512xf32>
    %295 = arith.truncf %263 : vector<8x128xf32> to vector<8x128xbf16>
    %cst_67 = arith.constant dense<0.000000e+00> : vector<8x512xf32>
    %296 = tpu.matmul %295, %12, %cst_67 {dimension_numbers = #tpu.dot_dimension_numbers<[1], [0], [0], [1], [0, 0, 1, 1], [], []>} : vector<8x128xbf16>, vector<128x512xbf16>, vector<8x512xf32> -> vector<8x512xf32>
    %297 = arith.addf %294, %296 : vector<8x512xf32>
    %298 = arith.addf %297, %15 : vector<8x512xf32>
    %299 = vector.extract_strided_slice %298 {offsets = [0, 0], sizes = [8, 128], strides = [1, 1]} : vector<8x512xf32> to vector<8x128xf32>
    %300 = arith.negf %299 : vector<8x128xf32>
    %301 = math.exp %300 : vector<8x128xf32>
    %cst_68 = arith.constant 1.000000e+00 : f32
    %302 = vector.broadcast %cst_68 : f32 to vector<8x128xf32>
    %303 = arith.addf %302, %301 : vector<8x128xf32>
    %304 = arith.divf %302, %303 : vector<8x128xf32>
    %305 = vector.extract_strided_slice %298 {offsets = [0, 128], sizes = [8, 128], strides = [1, 1]} : vector<8x512xf32> to vector<8x128xf32>
    %306 = arith.negf %305 : vector<8x128xf32>
    %307 = math.exp %306 : vector<8x128xf32>
    %cst_69 = arith.constant 1.000000e+00 : f32
    %308 = vector.broadcast %cst_69 : f32 to vector<8x128xf32>
    %309 = arith.addf %308, %307 : vector<8x128xf32>
    %310 = arith.divf %308, %309 : vector<8x128xf32>
    %311 = vector.extract_strided_slice %298 {offsets = [0, 256], sizes = [8, 128], strides = [1, 1]} : vector<8x512xf32> to vector<8x128xf32>
    %312 = math.tanh %311 : vector<8x128xf32>
    %313 = vector.extract_strided_slice %298 {offsets = [0, 384], sizes = [8, 128], strides = [1, 1]} : vector<8x512xf32> to vector<8x128xf32>
    %314 = arith.negf %313 : vector<8x128xf32>
    %315 = math.exp %314 : vector<8x128xf32>
    %cst_70 = arith.constant 1.000000e+00 : f32
    %316 = vector.broadcast %cst_70 : f32 to vector<8x128xf32>
    %317 = arith.addf %316, %315 : vector<8x128xf32>
    %318 = arith.divf %316, %317 : vector<8x128xf32>
    %319 = arith.mulf %310, %261 : vector<8x128xf32>
    %320 = arith.mulf %304, %312 : vector<8x128xf32>
    %321 = arith.addf %319, %320 : vector<8x128xf32>
    %322 = math.tanh %321 : vector<8x128xf32>
    %323 = arith.mulf %318, %322 : vector<8x128xf32>
    %324 = vector.extract_strided_slice %9 {offsets = [40, 0], sizes = [8, 512], strides = [1, 1]} : vector<64x512xf32> to vector<8x512xf32>
    %325 = arith.truncf %292 : vector<8x128xf32> to vector<8x128xbf16>
    %cst_71 = arith.constant dense<0.000000e+00> : vector<8x512xf32>
    %326 = tpu.matmul %325, %10, %cst_71 {dimension_numbers = #tpu.dot_dimension_numbers<[1], [0], [0], [1], [0, 0, 1, 1], [], []>} : vector<8x128xbf16>, vector<128x512xbf16>, vector<8x512xf32> -> vector<8x512xf32>
    %327 = arith.addf %324, %326 : vector<8x512xf32>
    %328 = vector.extract_strided_slice %327 {offsets = [0, 0], sizes = [8, 128], strides = [1, 1]} : vector<8x512xf32> to vector<8x128xf32>
    %329 = arith.negf %328 : vector<8x128xf32>
    %330 = math.exp %329 : vector<8x128xf32>
    %cst_72 = arith.constant 1.000000e+00 : f32
    %331 = vector.broadcast %cst_72 : f32 to vector<8x128xf32>
    %332 = arith.addf %331, %330 : vector<8x128xf32>
    %333 = arith.divf %331, %332 : vector<8x128xf32>
    %334 = vector.extract_strided_slice %327 {offsets = [0, 128], sizes = [8, 128], strides = [1, 1]} : vector<8x512xf32> to vector<8x128xf32>
    %335 = arith.negf %334 : vector<8x128xf32>
    %336 = math.exp %335 : vector<8x128xf32>
    %cst_73 = arith.constant 1.000000e+00 : f32
    %337 = vector.broadcast %cst_73 : f32 to vector<8x128xf32>
    %338 = arith.addf %337, %336 : vector<8x128xf32>
    %339 = arith.divf %337, %338 : vector<8x128xf32>
    %340 = vector.extract_strided_slice %327 {offsets = [0, 256], sizes = [8, 128], strides = [1, 1]} : vector<8x512xf32> to vector<8x128xf32>
    %341 = math.tanh %340 : vector<8x128xf32>
    %342 = vector.extract_strided_slice %327 {offsets = [0, 384], sizes = [8, 128], strides = [1, 1]} : vector<8x512xf32> to vector<8x128xf32>
    %343 = arith.negf %342 : vector<8x128xf32>
    %344 = math.exp %343 : vector<8x128xf32>
    %cst_74 = arith.constant 1.000000e+00 : f32
    %345 = vector.broadcast %cst_74 : f32 to vector<8x128xf32>
    %346 = arith.addf %345, %344 : vector<8x128xf32>
    %347 = arith.divf %345, %346 : vector<8x128xf32>
    %348 = arith.mulf %339, %290 : vector<8x128xf32>
    %349 = arith.mulf %333, %341 : vector<8x128xf32>
    %350 = arith.addf %348, %349 : vector<8x128xf32>
    %351 = math.tanh %350 : vector<8x128xf32>
    %352 = arith.mulf %347, %351 : vector<8x128xf32>
    %353 = arith.truncf %352 : vector<8x128xf32> to vector<8x128xbf16>
    %cst_75 = arith.constant dense<0.000000e+00> : vector<8x512xf32>
    %354 = tpu.matmul %353, %11, %cst_75 {dimension_numbers = #tpu.dot_dimension_numbers<[1], [0], [0], [1], [0, 0, 1, 1], [], []>} : vector<8x128xbf16>, vector<128x512xbf16>, vector<8x512xf32> -> vector<8x512xf32>
    %355 = arith.truncf %323 : vector<8x128xf32> to vector<8x128xbf16>
    %cst_76 = arith.constant dense<0.000000e+00> : vector<8x512xf32>
    %356 = tpu.matmul %355, %12, %cst_76 {dimension_numbers = #tpu.dot_dimension_numbers<[1], [0], [0], [1], [0, 0, 1, 1], [], []>} : vector<8x128xbf16>, vector<128x512xbf16>, vector<8x512xf32> -> vector<8x512xf32>
    %357 = arith.addf %354, %356 : vector<8x512xf32>
    %358 = arith.addf %357, %15 : vector<8x512xf32>
    %359 = vector.extract_strided_slice %358 {offsets = [0, 0], sizes = [8, 128], strides = [1, 1]} : vector<8x512xf32> to vector<8x128xf32>
    %360 = arith.negf %359 : vector<8x128xf32>
    %361 = math.exp %360 : vector<8x128xf32>
    %cst_77 = arith.constant 1.000000e+00 : f32
    %362 = vector.broadcast %cst_77 : f32 to vector<8x128xf32>
    %363 = arith.addf %362, %361 : vector<8x128xf32>
    %364 = arith.divf %362, %363 : vector<8x128xf32>
    %365 = vector.extract_strided_slice %358 {offsets = [0, 128], sizes = [8, 128], strides = [1, 1]} : vector<8x512xf32> to vector<8x128xf32>
    %366 = arith.negf %365 : vector<8x128xf32>
    %367 = math.exp %366 : vector<8x128xf32>
    %cst_78 = arith.constant 1.000000e+00 : f32
    %368 = vector.broadcast %cst_78 : f32 to vector<8x128xf32>
    %369 = arith.addf %368, %367 : vector<8x128xf32>
    %370 = arith.divf %368, %369 : vector<8x128xf32>
    %371 = vector.extract_strided_slice %358 {offsets = [0, 256], sizes = [8, 128], strides = [1, 1]} : vector<8x512xf32> to vector<8x128xf32>
    %372 = math.tanh %371 : vector<8x128xf32>
    %373 = vector.extract_strided_slice %358 {offsets = [0, 384], sizes = [8, 128], strides = [1, 1]} : vector<8x512xf32> to vector<8x128xf32>
    %374 = arith.negf %373 : vector<8x128xf32>
    %375 = math.exp %374 : vector<8x128xf32>
    %cst_79 = arith.constant 1.000000e+00 : f32
    %376 = vector.broadcast %cst_79 : f32 to vector<8x128xf32>
    %377 = arith.addf %376, %375 : vector<8x128xf32>
    %378 = arith.divf %376, %377 : vector<8x128xf32>
    %379 = arith.mulf %370, %321 : vector<8x128xf32>
    %380 = arith.mulf %364, %372 : vector<8x128xf32>
    %381 = arith.addf %379, %380 : vector<8x128xf32>
    %382 = math.tanh %381 : vector<8x128xf32>
    %383 = arith.mulf %378, %382 : vector<8x128xf32>
    %384 = vector.extract_strided_slice %9 {offsets = [48, 0], sizes = [8, 512], strides = [1, 1]} : vector<64x512xf32> to vector<8x512xf32>
    %385 = arith.truncf %352 : vector<8x128xf32> to vector<8x128xbf16>
    %cst_80 = arith.constant dense<0.000000e+00> : vector<8x512xf32>
    %386 = tpu.matmul %385, %10, %cst_80 {dimension_numbers = #tpu.dot_dimension_numbers<[1], [0], [0], [1], [0, 0, 1, 1], [], []>} : vector<8x128xbf16>, vector<128x512xbf16>, vector<8x512xf32> -> vector<8x512xf32>
    %387 = arith.addf %384, %386 : vector<8x512xf32>
    %388 = vector.extract_strided_slice %387 {offsets = [0, 0], sizes = [8, 128], strides = [1, 1]} : vector<8x512xf32> to vector<8x128xf32>
    %389 = arith.negf %388 : vector<8x128xf32>
    %390 = math.exp %389 : vector<8x128xf32>
    %cst_81 = arith.constant 1.000000e+00 : f32
    %391 = vector.broadcast %cst_81 : f32 to vector<8x128xf32>
    %392 = arith.addf %391, %390 : vector<8x128xf32>
    %393 = arith.divf %391, %392 : vector<8x128xf32>
    %394 = vector.extract_strided_slice %387 {offsets = [0, 128], sizes = [8, 128], strides = [1, 1]} : vector<8x512xf32> to vector<8x128xf32>
    %395 = arith.negf %394 : vector<8x128xf32>
    %396 = math.exp %395 : vector<8x128xf32>
    %cst_82 = arith.constant 1.000000e+00 : f32
    %397 = vector.broadcast %cst_82 : f32 to vector<8x128xf32>
    %398 = arith.addf %397, %396 : vector<8x128xf32>
    %399 = arith.divf %397, %398 : vector<8x128xf32>
    %400 = vector.extract_strided_slice %387 {offsets = [0, 256], sizes = [8, 128], strides = [1, 1]} : vector<8x512xf32> to vector<8x128xf32>
    %401 = math.tanh %400 : vector<8x128xf32>
    %402 = vector.extract_strided_slice %387 {offsets = [0, 384], sizes = [8, 128], strides = [1, 1]} : vector<8x512xf32> to vector<8x128xf32>
    %403 = arith.negf %402 : vector<8x128xf32>
    %404 = math.exp %403 : vector<8x128xf32>
    %cst_83 = arith.constant 1.000000e+00 : f32
    %405 = vector.broadcast %cst_83 : f32 to vector<8x128xf32>
    %406 = arith.addf %405, %404 : vector<8x128xf32>
    %407 = arith.divf %405, %406 : vector<8x128xf32>
    %408 = arith.mulf %399, %350 : vector<8x128xf32>
    %409 = arith.mulf %393, %401 : vector<8x128xf32>
    %410 = arith.addf %408, %409 : vector<8x128xf32>
    %411 = math.tanh %410 : vector<8x128xf32>
    %412 = arith.mulf %407, %411 : vector<8x128xf32>
    %413 = arith.truncf %412 : vector<8x128xf32> to vector<8x128xbf16>
    %cst_84 = arith.constant dense<0.000000e+00> : vector<8x512xf32>
    %414 = tpu.matmul %413, %11, %cst_84 {dimension_numbers = #tpu.dot_dimension_numbers<[1], [0], [0], [1], [0, 0, 1, 1], [], []>} : vector<8x128xbf16>, vector<128x512xbf16>, vector<8x512xf32> -> vector<8x512xf32>
    %415 = arith.truncf %383 : vector<8x128xf32> to vector<8x128xbf16>
    %cst_85 = arith.constant dense<0.000000e+00> : vector<8x512xf32>
    %416 = tpu.matmul %415, %12, %cst_85 {dimension_numbers = #tpu.dot_dimension_numbers<[1], [0], [0], [1], [0, 0, 1, 1], [], []>} : vector<8x128xbf16>, vector<128x512xbf16>, vector<8x512xf32> -> vector<8x512xf32>
    %417 = arith.addf %414, %416 : vector<8x512xf32>
    %418 = arith.addf %417, %15 : vector<8x512xf32>
    %419 = vector.extract_strided_slice %418 {offsets = [0, 0], sizes = [8, 128], strides = [1, 1]} : vector<8x512xf32> to vector<8x128xf32>
    %420 = arith.negf %419 : vector<8x128xf32>
    %421 = math.exp %420 : vector<8x128xf32>
    %cst_86 = arith.constant 1.000000e+00 : f32
    %422 = vector.broadcast %cst_86 : f32 to vector<8x128xf32>
    %423 = arith.addf %422, %421 : vector<8x128xf32>
    %424 = arith.divf %422, %423 : vector<8x128xf32>
    %425 = vector.extract_strided_slice %418 {offsets = [0, 128], sizes = [8, 128], strides = [1, 1]} : vector<8x512xf32> to vector<8x128xf32>
    %426 = arith.negf %425 : vector<8x128xf32>
    %427 = math.exp %426 : vector<8x128xf32>
    %cst_87 = arith.constant 1.000000e+00 : f32
    %428 = vector.broadcast %cst_87 : f32 to vector<8x128xf32>
    %429 = arith.addf %428, %427 : vector<8x128xf32>
    %430 = arith.divf %428, %429 : vector<8x128xf32>
    %431 = vector.extract_strided_slice %418 {offsets = [0, 256], sizes = [8, 128], strides = [1, 1]} : vector<8x512xf32> to vector<8x128xf32>
    %432 = math.tanh %431 : vector<8x128xf32>
    %433 = vector.extract_strided_slice %418 {offsets = [0, 384], sizes = [8, 128], strides = [1, 1]} : vector<8x512xf32> to vector<8x128xf32>
    %434 = arith.negf %433 : vector<8x128xf32>
    %435 = math.exp %434 : vector<8x128xf32>
    %cst_88 = arith.constant 1.000000e+00 : f32
    %436 = vector.broadcast %cst_88 : f32 to vector<8x128xf32>
    %437 = arith.addf %436, %435 : vector<8x128xf32>
    %438 = arith.divf %436, %437 : vector<8x128xf32>
    %439 = arith.mulf %430, %381 : vector<8x128xf32>
    %440 = arith.mulf %424, %432 : vector<8x128xf32>
    %441 = arith.addf %439, %440 : vector<8x128xf32>
    %442 = math.tanh %441 : vector<8x128xf32>
    %443 = arith.mulf %438, %442 : vector<8x128xf32>
    %444 = vector.extract_strided_slice %9 {offsets = [56, 0], sizes = [8, 512], strides = [1, 1]} : vector<64x512xf32> to vector<8x512xf32>
    %445 = arith.truncf %412 : vector<8x128xf32> to vector<8x128xbf16>
    %cst_89 = arith.constant dense<0.000000e+00> : vector<8x512xf32>
    %446 = tpu.matmul %445, %10, %cst_89 {dimension_numbers = #tpu.dot_dimension_numbers<[1], [0], [0], [1], [0, 0, 1, 1], [], []>} : vector<8x128xbf16>, vector<128x512xbf16>, vector<8x512xf32> -> vector<8x512xf32>
    %447 = arith.addf %444, %446 : vector<8x512xf32>
    %448 = vector.extract_strided_slice %447 {offsets = [0, 0], sizes = [8, 128], strides = [1, 1]} : vector<8x512xf32> to vector<8x128xf32>
    %449 = arith.negf %448 : vector<8x128xf32>
    %450 = math.exp %449 : vector<8x128xf32>
    %cst_90 = arith.constant 1.000000e+00 : f32
    %451 = vector.broadcast %cst_90 : f32 to vector<8x128xf32>
    %452 = arith.addf %451, %450 : vector<8x128xf32>
    %453 = arith.divf %451, %452 : vector<8x128xf32>
    %454 = vector.extract_strided_slice %447 {offsets = [0, 128], sizes = [8, 128], strides = [1, 1]} : vector<8x512xf32> to vector<8x128xf32>
    %455 = arith.negf %454 : vector<8x128xf32>
    %456 = math.exp %455 : vector<8x128xf32>
    %cst_91 = arith.constant 1.000000e+00 : f32
    %457 = vector.broadcast %cst_91 : f32 to vector<8x128xf32>
    %458 = arith.addf %457, %456 : vector<8x128xf32>
    %459 = arith.divf %457, %458 : vector<8x128xf32>
    %460 = vector.extract_strided_slice %447 {offsets = [0, 256], sizes = [8, 128], strides = [1, 1]} : vector<8x512xf32> to vector<8x128xf32>
    %461 = math.tanh %460 : vector<8x128xf32>
    %462 = vector.extract_strided_slice %447 {offsets = [0, 384], sizes = [8, 128], strides = [1, 1]} : vector<8x512xf32> to vector<8x128xf32>
    %463 = arith.negf %462 : vector<8x128xf32>
    %464 = math.exp %463 : vector<8x128xf32>
    %cst_92 = arith.constant 1.000000e+00 : f32
    %465 = vector.broadcast %cst_92 : f32 to vector<8x128xf32>
    %466 = arith.addf %465, %464 : vector<8x128xf32>
    %467 = arith.divf %465, %466 : vector<8x128xf32>
    %468 = arith.mulf %459, %410 : vector<8x128xf32>
    %469 = arith.mulf %453, %461 : vector<8x128xf32>
    %470 = arith.addf %468, %469 : vector<8x128xf32>
    %471 = math.tanh %470 : vector<8x128xf32>
    %472 = arith.mulf %467, %471 : vector<8x128xf32>
    %473 = arith.truncf %472 : vector<8x128xf32> to vector<8x128xbf16>
    %cst_93 = arith.constant dense<0.000000e+00> : vector<8x512xf32>
    %474 = tpu.matmul %473, %11, %cst_93 {dimension_numbers = #tpu.dot_dimension_numbers<[1], [0], [0], [1], [0, 0, 1, 1], [], []>} : vector<8x128xbf16>, vector<128x512xbf16>, vector<8x512xf32> -> vector<8x512xf32>
    %475 = arith.truncf %443 : vector<8x128xf32> to vector<8x128xbf16>
    %cst_94 = arith.constant dense<0.000000e+00> : vector<8x512xf32>
    %476 = tpu.matmul %475, %12, %cst_94 {dimension_numbers = #tpu.dot_dimension_numbers<[1], [0], [0], [1], [0, 0, 1, 1], [], []>} : vector<8x128xbf16>, vector<128x512xbf16>, vector<8x512xf32> -> vector<8x512xf32>
    %477 = arith.addf %474, %476 : vector<8x512xf32>
    %478 = arith.addf %477, %15 : vector<8x512xf32>
    %479 = vector.extract_strided_slice %478 {offsets = [0, 0], sizes = [8, 128], strides = [1, 1]} : vector<8x512xf32> to vector<8x128xf32>
    %480 = arith.negf %479 : vector<8x128xf32>
    %481 = math.exp %480 : vector<8x128xf32>
    %cst_95 = arith.constant 1.000000e+00 : f32
    %482 = vector.broadcast %cst_95 : f32 to vector<8x128xf32>
    %483 = arith.addf %482, %481 : vector<8x128xf32>
    %484 = arith.divf %482, %483 : vector<8x128xf32>
    %485 = vector.extract_strided_slice %478 {offsets = [0, 128], sizes = [8, 128], strides = [1, 1]} : vector<8x512xf32> to vector<8x128xf32>
    %486 = arith.negf %485 : vector<8x128xf32>
    %487 = math.exp %486 : vector<8x128xf32>
    %cst_96 = arith.constant 1.000000e+00 : f32
    %488 = vector.broadcast %cst_96 : f32 to vector<8x128xf32>
    %489 = arith.addf %488, %487 : vector<8x128xf32>
    %490 = arith.divf %488, %489 : vector<8x128xf32>
    %491 = vector.extract_strided_slice %478 {offsets = [0, 256], sizes = [8, 128], strides = [1, 1]} : vector<8x512xf32> to vector<8x128xf32>
    %492 = math.tanh %491 : vector<8x128xf32>
    %493 = vector.extract_strided_slice %478 {offsets = [0, 384], sizes = [8, 128], strides = [1, 1]} : vector<8x512xf32> to vector<8x128xf32>
    %494 = arith.negf %493 : vector<8x128xf32>
    %495 = math.exp %494 : vector<8x128xf32>
    %cst_97 = arith.constant 1.000000e+00 : f32
    %496 = vector.broadcast %cst_97 : f32 to vector<8x128xf32>
    %497 = arith.addf %496, %495 : vector<8x128xf32>
    %498 = arith.divf %496, %497 : vector<8x128xf32>
    %499 = arith.mulf %490, %441 : vector<8x128xf32>
    %500 = arith.mulf %484, %492 : vector<8x128xf32>
    %501 = arith.addf %499, %500 : vector<8x128xf32>
    %502 = math.tanh %501 : vector<8x128xf32>
    %503 = arith.mulf %498, %502 : vector<8x128xf32>
    %c0_98 = arith.constant 0 : index
    %c0_99 = arith.constant 0 : index
    %c0_100 = arith.constant 0 : index
    %504 = vector.load %arg12[%c0_98, %c0_99, %c0_100] : memref<2x8x128xf32, #tpu.memory_space<vmem>>, vector<1x8x128xf32>
    %505 = vector.shape_cast %504 : vector<1x8x128xf32> to vector<8x128xf32>
    %506 = vector.shape_cast %472 : vector<8x128xf32> to vector<1x8x128xf32>
    tpu.vector_store %arg12[%c0_98, %c0_99, %c0_100], %506 {strides = array<i32>} : memref<2x8x128xf32, #tpu.memory_space<vmem>>, vector<1x8x128xf32>,
    %c0_101 = arith.constant 0 : index
    %c0_102 = arith.constant 0 : index
    %c0_103 = arith.constant 0 : index
    %507 = vector.load %arg13[%c0_101, %c0_102, %c0_103] : memref<2x8x128xf32, #tpu.memory_space<vmem>>, vector<1x8x128xf32>
    %508 = vector.shape_cast %507 : vector<1x8x128xf32> to vector<8x128xf32>
    %509 = vector.shape_cast %470 : vector<8x128xf32> to vector<1x8x128xf32>
    tpu.vector_store %arg13[%c0_101, %c0_102, %c0_103], %509 {strides = array<i32>} : memref<2x8x128xf32, #tpu.memory_space<vmem>>, vector<1x8x128xf32>,
    %c1_104 = arith.constant 1 : index
    %c0_105 = arith.constant 0 : index
    %c0_106 = arith.constant 0 : index
    %510 = vector.load %arg12[%c1_104, %c0_105, %c0_106] : memref<2x8x128xf32, #tpu.memory_space<vmem>>, vector<1x8x128xf32>
    %511 = vector.shape_cast %510 : vector<1x8x128xf32> to vector<8x128xf32>
    %512 = vector.shape_cast %503 : vector<8x128xf32> to vector<1x8x128xf32>
    tpu.vector_store %arg12[%c1_104, %c0_105, %c0_106], %512 {strides = array<i32>} : memref<2x8x128xf32, #tpu.memory_space<vmem>>, vector<1x8x128xf32>,
    %c1_107 = arith.constant 1 : index
    %c0_108 = arith.constant 0 : index
    %c0_109 = arith.constant 0 : index
    %513 = vector.load %arg13[%c1_107, %c0_108, %c0_109] : memref<2x8x128xf32, #tpu.memory_space<vmem>>, vector<1x8x128xf32>
    %514 = vector.shape_cast %513 : vector<1x8x128xf32> to vector<8x128xf32>
    %515 = vector.shape_cast %501 : vector<8x128xf32> to vector<1x8x128xf32>
    tpu.vector_store %arg13[%c1_107, %c0_108, %c0_109], %515 {strides = array<i32>} : memref<2x8x128xf32, #tpu.memory_space<vmem>>, vector<1x8x128xf32>,
    %c0_i32_110 = arith.constant 0 : i32
    %516 = arith.cmpi eq, %arg1, %c0_i32_110 : i32
    %517 = arith.extui %516 : i1 to i32
    %c0_i32_111 = arith.constant 0 : i32
    %518 = arith.cmpi ne, %517, %c0_i32_111 : i32
    scf.if %518 {
      %519 = arith.truncf %503 : vector<8x128xf32> to vector<8x128xbf16>
      %c0_112 = arith.constant 0 : index
      %c0_113 = arith.constant 0 : index
      %520 = vector.load %arg9[%c0_112, %c0_113] : memref<128x128xbf16, #tpu.memory_space<vmem>>, vector<128x128xbf16>
      %cst_114 = arith.constant dense<0.000000e+00> : vector<8x128xf32>
      %521 = tpu.matmul %519, %520, %cst_114 {dimension_numbers = #tpu.dot_dimension_numbers<[1], [0], [0], [1], [0, 0, 1, 1], [], []>} : vector<8x128xbf16>, vector<128x128xbf16>, vector<8x128xf32> -> vector<8x128xf32>
      %c0_115 = arith.constant 0 : index
      %c0_116 = arith.constant 0 : index
      %522 = vector.load %arg10[%c0_115, %c0_116] : memref<1x128xf32, #tpu.memory_space<vmem>>, vector<1x128xf32>
      %523 = vector.broadcast %522 : vector<1x128xf32> to vector<8x128xf32>
      %524 = arith.addf %521, %523 : vector<8x128xf32>
      %c0_117 = arith.constant 0 : index
      %c0_118 = arith.constant 0 : index
      %525 = vector.load %arg11[%c0_117, %c0_118] : memref<8x128xf32, #tpu.memory_space<vmem>>, vector<8x128xf32>
      tpu.vector_store %arg11[%c0_117, %c0_118], %524 {strides = array<i32>} : memref<8x128xf32, #tpu.memory_space<vmem>>, vector<8x128xf32>,
    } else {
    }
    return
  }
  func.func @transform_0(%arg0: i32, %arg1: i32) -> (i32, i32, i32) {
    %c0_i32 = arith.constant 0 : i32
    %c0_i32_0 = arith.constant 0 : i32
    return %arg1, %arg0, %c0_i32 : i32, i32, i32
  }
  func.func @transform_1(%arg0: i32, %arg1: i32) -> (i32, i32) {
    %c0_i32 = arith.constant 0 : i32
    %c0_i32_0 = arith.constant 0 : i32
    %c0_i32_1 = arith.constant 0 : i32
    return %c0_i32, %c0_i32_0 : i32, i32
  }
  func.func @transform_2(%arg0: i32, %arg1: i32) -> (i32, i32) {
    %c0_i32 = arith.constant 0 : i32
    %c0_i32_0 = arith.constant 0 : i32
    %c0_i32_1 = arith.constant 0 : i32
    return %c0_i32, %c0_i32_0 : i32, i32
  }
  func.func @transform_3(%arg0: i32, %arg1: i32) -> (i32, i32) {
    %c0_i32 = arith.constant 0 : i32
    %c0_i32_0 = arith.constant 0 : i32
    %c0_i32_1 = arith.constant 0 : i32
    return %c0_i32, %c0_i32_0 : i32, i32
  }
  func.func @transform_4(%arg0: i32, %arg1: i32) -> (i32, i32) {
    %c0_i32 = arith.constant 0 : i32
    %c0_i32_0 = arith.constant 0 : i32
    %c0_i32_1 = arith.constant 0 : i32
    return %c0_i32, %c0_i32_0 : i32, i32
  }
  func.func @transform_5(%arg0: i32, %arg1: i32) -> (i32, i32) {
    %c0_i32 = arith.constant 0 : i32
    %c0_i32_0 = arith.constant 0 : i32
    %c0_i32_1 = arith.constant 0 : i32
    return %c0_i32, %c0_i32_0 : i32, i32
  }
  func.func @transform_6(%arg0: i32, %arg1: i32) -> (i32, i32) {
    %c0_i32 = arith.constant 0 : i32
    %c0_i32_0 = arith.constant 0 : i32
    %c0_i32_1 = arith.constant 0 : i32
    return %c0_i32, %c0_i32_0 : i32, i32
  }
  func.func @transform_7(%arg0: i32, %arg1: i32) -> (i32, i32) {
    %c0_i32 = arith.constant 0 : i32
    %c0_i32_0 = arith.constant 0 : i32
    %c0_i32_1 = arith.constant 0 : i32
    return %c0_i32, %c0_i32_0 : i32, i32
  }
  func.func @transform_8(%arg0: i32, %arg1: i32) -> (i32, i32) {
    %c0_i32 = arith.constant 0 : i32
    %c0_i32_0 = arith.constant 0 : i32
    %c0_i32_1 = arith.constant 0 : i32
    return %c0_i32, %c0_i32_0 : i32, i32
  }
  func.func @transform_9(%arg0: i32, %arg1: i32) -> (i32, i32) {
    %c0_i32 = arith.constant 0 : i32
    %c0_i32_0 = arith.constant 0 : i32
    return %arg0, %c0_i32 : i32, i32
  }
}

</mosaic_0001>

<bundles_post_ra>
// kernel: sentiment_rnn_forward.1
= control target key start
LH: loop header
LB: loop body
LE: loop exit
PB: predicated region body
PF: predicated region fallthrough
CT: control target
= control target key end

     0   :  { %v7184_v1 = vmov 0   ;;  %vm4471_vm0 = vmmov 0   ;;  %s7174_s1 = inlined_call_operand.vmem [shape: bf16[128,512], index: 1, kind: input, shape index: {}]   ;;  %s7175_s0 = inlined_call_operand.vmem [shape: bf16[8,8,128], index: 0, kind: input, shape index: {}]   ;;  %s7176_s2 = inlined_call_operand.vmem [shape: bf16[128,512], index: 2, kind: input, shape index: {}]   ;;  %s7177_s5 = inlined_call_operand.vmem [shape: bf16[128,512], index: 5, kind: input, shape index: {}]   ;;  %s7178_s4 = inlined_call_operand.vmem [shape: bf16[128,512], index: 4, kind: input, shape index: {}]   ;;  %s7179_s3 = inlined_call_operand.vmem [shape: f32[1,512], index: 3, kind: input, shape index: {}]   ;;  %s7180_s6 = inlined_call_operand.vmem [shape: f32[1,512], index: 6, kind: input, shape index: {}]   ;;  %s7181_s7 = inlined_call_operand.vmem [shape: bf16[128,128], index: 7, kind: input, shape index: {}]   ;;  %s7182_s8 = inlined_call_operand.vmem [shape: f32[1,128], index: 8, kind: input, shape index: {}]   ;;  %s7183_s9 = inlined_call_operand.vmem [shape: f32[8,128], index: 9, kind: output, shape index: {}]  }
   0x1   :  { %v3816_v0 = vld [vmem:[%s7174_s1 + $0x4] ss:$16 sps:$4 sm:$0xff]   ;;  %319 = vmatprep.mubr.bf16.mxu0 %v7184_v1  ;;  %392 = vmatprep.mubr.bf16.mxu1 %v7184_v1  ;;  %v3818_v2 = vld [vmem:[%s7174_s1 + $0xc] ss:$16 sps:$4 sm:$0xff]   ;;  %v3820_v3 = vld [vmem:[%s7174_s1] ss:$16 sps:$4 sm:$0xff]  }
   0x2   :  { %287 = vmatprep.subr.bf16.mxu0 %v3816_v0  ;;  %v3821_v4 = vld [vmem:[%s7174_s1 + $0x8] ss:$16 sps:$4 sm:$0xff]   ;;  %360 = vmatprep.subr.bf16.mxu1 %v3818_v2  ;;  %v3822_v5 = vld [vmem:[%s7174_s1 + $0x24] ss:$16 sps:$4 sm:$0xff]   ;;  %v3824_v6 = vld [vmem:[%s7174_s1 + $0x2c] ss:$16 sps:$4 sm:$0xff]  }
   0x3   :  { %288 = vmatpush1.bf16.msra.mxu0 %v3820_v3  ;;  %361 = vmatpush1.bf16.msra.mxu1 %v3821_v4  ;;  %v3826_v7 = vld [vmem:[%s7174_s1 + $0x20] ss:$16 sps:$4 sm:$0xff]   ;;  %v3827_v8 = vld [vmem:[%s7174_s1 + $0x28] ss:$16 sps:$4 sm:$0xff]   ;;  %v3828_v9 = vld [vmem:[%s7174_s1 + $0x44] ss:$16 sps:$4 sm:$0xff]  }
   0x4   :  { %289 = vmatprep.subr.bf16.mxu0 %v3822_v5  ;;  %362 = vmatprep.subr.bf16.mxu1 %v3824_v6  ;;  %v3830_v10 = vld [vmem:[%s7174_s1 + $0x4c] ss:$16 sps:$4 sm:$0xff]   ;;  %v3832_v11 = vld [vmem:[%s7174_s1 + $0x40] ss:$16 sps:$4 sm:$0xff]   ;;  %v3833_v12 = vld [vmem:[%s7174_s1 + $0x48] ss:$16 sps:$4 sm:$0xff]  }
   0x5   :  { %v3834_v13 = vld [vmem:[%s7174_s1 + $0x64] ss:$16 sps:$4 sm:$0xff]   ;;  %v3836_v14 = vld [vmem:[%s7174_s1 + $0x6c] ss:$16 sps:$4 sm:$0xff]   ;;  %v3838_v15 = vld [vmem:[%s7174_s1 + $0x60] ss:$16 sps:$4 sm:$0xff]  }
   0x6   :  { %v3839_v16 = vld [vmem:[%s7174_s1 + $0x68] ss:$16 sps:$4 sm:$0xff]   ;;  %v3840_v17 = vld [vmem:[%s7174_s1 + $0x84] ss:$16 sps:$4 sm:$0xff]   ;;  %v3842_v18 = vld [vmem:[%s7174_s1 + $0x8c] ss:$16 sps:$4 sm:$0xff]  }
   0x7   :  { %290 = vmatpush1.bf16.msra.mxu0 %v3826_v7  ;;  %363 = vmatpush1.bf16.msra.mxu1 %v3827_v8  ;;  %v3844_v19 = vld [vmem:[%s7174_s1 + $0x80] ss:$16 sps:$4 sm:$0xff]   ;;  %v3845_v20 = vld [vmem:[%s7174_s1 + $0x88] ss:$16 sps:$4 sm:$0xff]   ;;  %v3846_v21 = vld [vmem:[%s7174_s1 + $0xa4] ss:$16 sps:$4 sm:$0xff]  }
   0x8   :  { %291 = vmatprep.subr.bf16.mxu0 %v3828_v9  ;;  %364 = vmatprep.subr.bf16.mxu1 %v3830_v10  ;;  %v3848_v22 = vld [vmem:[%s7174_s1 + $0xac] ss:$16 sps:$4 sm:$0xff]   ;;  %v3850_v23 = vld [vmem:[%s7174_s1 + $0xa0] ss:$16 sps:$4 sm:$0xff]   ;;  %v3851_v24 = vld [vmem:[%s7174_s1 + $0xa8] ss:$16 sps:$4 sm:$0xff]  }
   0x9   :  { %v3852_v25 = vld [vmem:[%s7174_s1 + $0xc4] ss:$16 sps:$4 sm:$0xff]   ;;  %v3854_v26 = vld [vmem:[%s7174_s1 + $0xcc] ss:$16 sps:$4 sm:$0xff]   ;;  %v3856_v27 = vld [vmem:[%s7174_s1 + $0xc0] ss:$16 sps:$4 sm:$0xff]  }
   0xa   :  { %v3857_v28 = vld [vmem:[%s7174_s1 + $0xc8] ss:$16 sps:$4 sm:$0xff]   ;;  %v3858_v29 = vld [vmem:[%s7174_s1 + $0xe4] ss:$16 sps:$4 sm:$0xff]   ;;  %v3860_v30 = vld [vmem:[%s7174_s1 + $0xec] ss:$16 sps:$4 sm:$0xff]  }
   0xb   :  { %292 = vmatpush1.bf16.msra.mxu0 %v3832_v11  ;;  %365 = vmatpush1.bf16.msra.mxu1 %v3833_v12  ;;  %v3862_v31 = vld [vmem:[%s7174_s1 + $0xe0] ss:$16 sps:$4 sm:$0xff]   ;;  %v3863_v32 = vld [vmem:[%s7174_s1 + $0xe8] ss:$16 sps:$4 sm:$0xff]   ;;  %v4623_v33 = vld [vmem:[%s7176_s2 + $0x4] ss:$16 sps:$4 sm:$0xff]  }
   0xc   :  { %293 = vmatprep.subr.bf16.mxu0 %v3834_v13  ;;  %366 = vmatprep.subr.bf16.mxu1 %v3836_v14  ;;  %v4628_v34 = vld [vmem:[%s7176_s2 + $0xc] ss:$16 sps:$4 sm:$0xff]   ;;  %v3864_v35 = vld [vmem:[%s7175_s0] sm:$0xff]   ;;  %v4641_v37 = vld [vmem:[%s7176_s2 + $0x8] ss:$16 sps:$4 sm:$0xff]   ;;  %v7186_v6 = vmov 0.0|0.0  }
   0xd   :  { %v4636_v36 = vld [vmem:[%s7176_s2] ss:$16 sps:$4 sm:$0xff]   ;;  %v4648_v38 = vld [vmem:[%s7176_s2 + $0x24] ss:$16 sps:$4 sm:$0xff]   ;;  %v4653_v39 = vld [vmem:[%s7176_s2 + $0x2c] ss:$16 sps:$4 sm:$0xff]  }
   0xe   :  { %v4658_v40 = vld [vmem:[%s7176_s2 + $0x20] ss:$16 sps:$4 sm:$0xff]   ;;  %v4665_v41 = vld [vmem:[%s7176_s2 + $0x28] ss:$16 sps:$4 sm:$0xff]   ;;  %v4672_v42 = vld [vmem:[%s7176_s2 + $0x44] ss:$16 sps:$4 sm:$0xff]  }
   0xf   :  { %294 = vmatpush1.bf16.msra.mxu0 %v3838_v15  ;;  %367 = vmatpush1.bf16.msra.mxu1 %v3839_v16  ;;  %v4677_v43 = vld [vmem:[%s7176_s2 + $0x4c] ss:$16 sps:$4 sm:$0xff]   ;;  %v4687_v45 = vld [vmem:[%s7176_s2 + $0x40] ss:$16 sps:$4 sm:$0xff]   ;;  %v4692_v46 = vld [vmem:[%s7176_s2 + $0x48] ss:$16 sps:$4 sm:$0xff]  }
  0x10   :  { %295 = vmatprep.subr.bf16.mxu0 %v3840_v17  ;;  %368 = vmatprep.subr.bf16.mxu1 %v3842_v18  ;;  %v3877_v44 = vld [vmem:[%s7175_s0 + $0x8] sm:$0xff]   ;;  %v4699_v47 = vld [vmem:[%s7176_s2 + $0x64] ss:$16 sps:$4 sm:$0xff]   ;;  %v4711_v49 = vld [vmem:[%s7176_s2 + $0x60] ss:$16 sps:$4 sm:$0xff]  }
  0x11   :  { %v4706_v48 = vld [vmem:[%s7176_s2 + $0x6c] ss:$16 sps:$4 sm:$0xff]   ;;  %v4716_v50 = vld [vmem:[%s7176_s2 + $0x68] ss:$16 sps:$4 sm:$0xff]   ;;  %v4723_v51 = vld [vmem:[%s7176_s2 + $0x84] ss:$16 sps:$4 sm:$0xff]  }
  0x12   :  { %v4730_v52 = vld [vmem:[%s7176_s2 + $0x8c] ss:$16 sps:$4 sm:$0xff]   ;;  %v3890_v53 = vld [vmem:[%s7175_s0 + $0x10] sm:$0xff]   ;;  %v4747_v55 = vld [vmem:[%s7176_s2 + $0x88] ss:$16 sps:$4 sm:$0xff]  }
  0x13   :  { %296 = vmatpush1.bf16.msra.mxu0 %v3844_v19  ;;  %369 = vmatpush1.bf16.msra.mxu1 %v3845_v20  ;;  %v4742_v54 = vld [vmem:[%s7176_s2 + $0x80] ss:$16 sps:$4 sm:$0xff]   ;;  %v4754_v56 = vld [vmem:[%s7176_s2 + $0xa4] ss:$16 sps:$4 sm:$0xff]   ;;  %v4759_v57 = vld [vmem:[%s7176_s2 + $0xac] ss:$16 sps:$4 sm:$0xff]  }
  0x14   :  { %297 = vmatprep.subr.bf16.mxu0 %v3846_v21  ;;  %370 = vmatprep.subr.bf16.mxu1 %v3848_v22  ;;  %v4766_v58 = vld [vmem:[%s7176_s2 + $0xa0] ss:$16 sps:$4 sm:$0xff]   ;;  %v4771_v59 = vld [vmem:[%s7176_s2 + $0xa8] ss:$16 sps:$4 sm:$0xff]   ;;  %v4778_v60 = vld [vmem:[%s7176_s2 + $0xc4] ss:$16 sps:$4 sm:$0xff]  }
  0x15   :  { %v4783_v61 = vld [vmem:[%s7176_s2 + $0xcc] ss:$16 sps:$4 sm:$0xff]   ;;  %v4795_v63 = vld [vmem:[%s7176_s2 + $0xc0] ss:$16 sps:$4 sm:$0xff]   ;;  %v4800_v0 = vld [vmem:[%s7176_s2 + $0xc8] ss:$16 sps:$4 sm:$0xff]  }
  0x16   :  { %v3903_v62 = vld [vmem:[%s7175_s0 + $0x18] sm:$0xff]   ;;  %v4807_v2 = vld [vmem:[%s7176_s2 + $0xe4] ss:$16 sps:$4 sm:$0xff]   ;;  %v4819_v4 = vld [vmem:[%s7176_s2 + $0xe0] ss:$16 sps:$4 sm:$0xff]  }
  0x17   :  { %298 = vmatpush1.bf16.msra.mxu0 %v3850_v23  ;;  %371 = vmatpush1.bf16.msra.mxu1 %v3851_v24  ;;  %v4812_v3 = vld [vmem:[%s7176_s2 + $0xec] ss:$16 sps:$4 sm:$0xff]   ;;  %v4824_v5 = vld [vmem:[%s7176_s2 + $0xe8] ss:$16 sps:$4 sm:$0xff]   ;;  %v4839_v7 = vld [vmem:[%s7177_s5 + $0x4] ss:$16 sps:$4 sm:$0xff]  }
  0x18   :  { %299 = vmatprep.subr.bf16.mxu0 %v3852_v25  ;;  %372 = vmatprep.subr.bf16.mxu1 %v3854_v26  ;;  %v4844_v8 = vld [vmem:[%s7177_s5 + $0xc] ss:$16 sps:$4 sm:$0xff]   ;;  %v4850_v9 = vld [vmem:[%s7177_s5] ss:$16 sps:$4 sm:$0xff]   ;;  %v4855_v10 = vld [vmem:[%s7177_s5 + $0x8] ss:$16 sps:$4 sm:$0xff]  }
  0x19   :  { %v4863_v11 = vld [vmem:[%s7177_s5 + $0x24] ss:$16 sps:$4 sm:$0xff]   ;;  %v4868_v12 = vld [vmem:[%s7177_s5 + $0x2c] ss:$16 sps:$4 sm:$0xff]   ;;  %v4873_v13 = vld [vmem:[%s7177_s5 + $0x20] ss:$16 sps:$4 sm:$0xff]  }
  0x1a   :  { %v4879_v14 = vld [vmem:[%s7177_s5 + $0x28] ss:$16 sps:$4 sm:$0xff]   ;;  %v4887_v15 = vld [vmem:[%s7177_s5 + $0x44] ss:$16 sps:$4 sm:$0xff]   ;;  %v4892_v16 = vld [vmem:[%s7177_s5 + $0x4c] ss:$16 sps:$4 sm:$0xff]  }
  0x1b   :  { %300 = vmatpush1.bf16.msra.mxu0 %v3856_v27  ;;  %373 = vmatpush1.bf16.msra.mxu1 %v3857_v28  ;;  %7458 = vst [vmem:[#allocation4_spill] sm:$0xff] %v4887_v15  ;;  %7459 = vst [vmem:[#allocation5_spill] sm:$0xff] %v4892_v16  ;;  %v4897_v17 = vld [vmem:[%s7177_s5 + $0x40] ss:$16 sps:$4 sm:$0xff]   ;;  %v4903_v18 = vld [vmem:[%s7177_s5 + $0x48] ss:$16 sps:$4 sm:$0xff]  }
  0x1c   :  { %301 = vmatprep.subr.bf16.mxu0 %v3858_v29  ;;  %374 = vmatprep.subr.bf16.mxu1 %v3860_v30  ;;  %7460 = vst [vmem:[#allocation6_spill] sm:$0xff] %v4897_v17  ;;  %7461 = vst [vmem:[#allocation7_spill] sm:$0xff] %v4903_v18  ;;  %v4911_v19 = vld [vmem:[%s7177_s5 + $0x64] ss:$16 sps:$4 sm:$0xff]   ;;  %v4916_v20 = vld [vmem:[%s7177_s5 + $0x6c] ss:$16 sps:$4 sm:$0xff]  }
  0x1d   :  { %7462 = vst [vmem:[#allocation8_spill] sm:$0xff] %v4911_v19  ;;  %7463 = vst [vmem:[#allocation9_spill] sm:$0xff] %v4916_v20  ;;  %v4921_v21 = vld [vmem:[%s7177_s5 + $0x60] ss:$16 sps:$4 sm:$0xff]   ;;  %v4927_v22 = vld [vmem:[%s7177_s5 + $0x68] ss:$16 sps:$4 sm:$0xff]  }
  0x1e   :  { %7464 = vst [vmem:[#allocation10_spill] sm:$0xff] %v4921_v21  ;;  %7465 = vst [vmem:[#allocation11_spill] sm:$0xff] %v4927_v22  ;;  %v4935_v23 = vld [vmem:[%s7177_s5 + $0x84] ss:$16 sps:$4 sm:$0xff]   ;;  %v4940_v24 = vld [vmem:[%s7177_s5 + $0x8c] ss:$16 sps:$4 sm:$0xff]  }
  0x1f   :  { %302 = vmatpush1.bf16.msra.mxu0 %v3862_v31  ;;  %375 = vmatpush1.bf16.msra.mxu1 %v3863_v32  ;;  %7466 = vst [vmem:[#allocation12_spill] sm:$0xff] %v4935_v23  ;;  %7467 = vst [vmem:[#allocation13_spill] sm:$0xff] %v4940_v24  ;;  %v4946_v25 = vld [vmem:[%s7177_s5 + $0x80] ss:$16 sps:$4 sm:$0xff]   ;;  %v4952_v26 = vld [vmem:[%s7177_s5 + $0x88] ss:$16 sps:$4 sm:$0xff]  }
  0x20   :  { %718 = vmatprep.subr.bf16.mxu0 %v4623_v33  ;;  %759 = vmatprep.subr.bf16.mxu1 %v4628_v34  ;;  %7468 = vst [vmem:[#allocation14_spill] sm:$0xff] %v4946_v25  ;;  %7469 = vst [vmem:[#allocation15_spill] sm:$0xff] %v4952_v26  ;;  %v4959_v27 = vld [vmem:[%s7177_s5 + $0xa4] ss:$16 sps:$4 sm:$0xff]   ;;  %v4964_v28 = vld [vmem:[%s7177_s5 + $0xac] ss:$16 sps:$4 sm:$0xff]  }
  0x21   :  { %7470 = vst [vmem:[#allocation16_spill] sm:$0xff] %v4959_v27  ;;  %7471 = vst [vmem:[#allocation17_spill] sm:$0xff] %v4964_v28  ;;  %v4969_v29 = vld [vmem:[%s7177_s5 + $0xa0] ss:$16 sps:$4 sm:$0xff]   ;;  %v4975_v30 = vld [vmem:[%s7177_s5 + $0xa8] ss:$16 sps:$4 sm:$0xff]  }
  0x22   :  { %320 = vmatmul.mubr.bf16.vlgmr.msra.gmra.mrb[0].mxu0 %v3864_v35  ;;  %393 = vmatmul.mubr.bf16.vlgmr.msra.gmra.mrb[0].mxu1 %v3864_v35  ;;  %7472 = vst [vmem:[#allocation18_spill] sm:$0xff] %v4969_v29  ;;  %7473 = vst [vmem:[#allocation19_spill] sm:$0xff] %v4975_v30  ;;  %v4983_v31 = vld [vmem:[%s7177_s5 + $0xc4] ss:$16 sps:$4 sm:$0xff]   ;;  %v4988_v32 = vld [vmem:[%s7177_s5 + $0xcc] ss:$16 sps:$4 sm:$0xff]  }
  0x23   :  { %719 = vmatpush1.bf16.msra.mxu0 %v4636_v36  ;;  %760 = vmatpush1.bf16.msra.mxu1 %v4641_v37  ;;  %7474 = vst [vmem:[#allocation20_spill] sm:$0xff] %v4983_v31  ;;  %7475 = vst [vmem:[#allocation21_spill] sm:$0xff] %v4988_v32  ;;  %v4993_v35 = vld [vmem:[%s7177_s5 + $0xc0] ss:$16 sps:$4 sm:$0xff]  }
  0x24   :  { %720 = vmatprep.subr.bf16.mxu0 %v4648_v38  ;;  %761 = vmatprep.subr.bf16.mxu1 %v4653_v39  ;;  %7476 = vst [vmem:[#allocation22_spill] sm:$0xff] %v4993_v35 }
  0x25   :  { %329 = vmatprep.mubr.bf16.mxu0 %v7184_v1  ;;  %402 = vmatprep.mubr.bf16.mxu1 %v7184_v1 }
  0x27   :  { %721 = vmatpush1.bf16.msra.mxu0 %v4658_v40  ;;  %762 = vmatpush1.bf16.msra.mxu1 %v4665_v41 }
  0x28   :  { %722 = vmatprep.subr.bf16.mxu0 %v4672_v42  ;;  %763 = vmatprep.subr.bf16.mxu1 %v4677_v43 }
  0x2a   :  { %330 = vmatmul.mubr.bf16.gmra.mrb[4].mxu0 %v3877_v44  ;;  %403 = vmatmul.mubr.bf16.gmra.mrb[4].mxu1 %v3877_v44  ;;  %v4999_v44 = vld [vmem:[%s7177_s5 + $0xc8] ss:$16 sps:$4 sm:$0xff]  }
  0x2b   :  { %723 = vmatpush1.bf16.msra.mxu0 %v4687_v45  ;;  %764 = vmatpush1.bf16.msra.mxu1 %v4692_v46  ;;  %7477 = vst [vmem:[#allocation23_spill] sm:$0xff] %v4999_v44 }
  0x2c   :  { %724 = vmatprep.subr.bf16.mxu0 %v4699_v47  ;;  %765 = vmatprep.subr.bf16.mxu1 %v4706_v48 }
  0x2d   :  { %339 = vmatprep.mubr.bf16.mxu0 %v7184_v1  ;;  %412 = vmatprep.mubr.bf16.mxu1 %v7184_v1 }
  0x2f   :  { %725 = vmatpush1.bf16.msra.mxu0 %v4711_v49  ;;  %766 = vmatpush1.bf16.msra.mxu1 %v4716_v50 }
  0x30   :  { %726 = vmatprep.subr.bf16.mxu0 %v4723_v51  ;;  %767 = vmatprep.subr.bf16.mxu1 %v4730_v52 }
  0x32   :  { %340 = vmatmul.mubr.bf16.gmra.mrb[8].mxu0 %v3890_v53  ;;  %413 = vmatmul.mubr.bf16.gmra.mrb[8].mxu1 %v3890_v53  ;;  %v5007_v53 = vld [vmem:[%s7177_s5 + $0xe4] ss:$16 sps:$4 sm:$0xff]  }
  0x33   :  { %727 = vmatpush1.bf16.msra.mxu0 %v4742_v54  ;;  %768 = vmatpush1.bf16.msra.mxu1 %v4747_v55  ;;  %7478 = vst [vmem:[#allocation24_spill] sm:$0xff] %v5007_v53 }
  0x34   :  { %728 = vmatprep.subr.bf16.mxu0 %v4754_v56  ;;  %769 = vmatprep.subr.bf16.mxu1 %v4759_v57 }
  0x35   :  { %349 = vmatprep.mubr.bf16.mxu0 %v7184_v1  ;;  %422 = vmatprep.mubr.bf16.mxu1 %v7184_v1 }
  0x37   :  { %729 = vmatpush1.bf16.msra.mxu0 %v4766_v58  ;;  %770 = vmatpush1.bf16.msra.mxu1 %v4771_v59 }
  0x38   :  { %730 = vmatprep.subr.bf16.mxu0 %v4778_v60  ;;  %771 = vmatprep.subr.bf16.mxu1 %v4783_v61 }
  0x3a   :  { %350 = vmatmul.mubr.bf16.gmra.mrb[12].mxu0 %v3903_v62  ;;  %423 = vmatmul.mubr.bf16.gmra.mrb[12].mxu1 %v3903_v62  ;;  %v5012_v62 = vld [vmem:[%s7177_s5 + $0xec] ss:$16 sps:$4 sm:$0xff]  }
  0x3b   :  { %731 = vmatpush1.bf16.msra.mxu0 %v4795_v63  ;;  %772 = vmatpush1.bf16.msra.mxu1 %v4800_v0  ;;  %7479 = vst [vmem:[#allocation25_spill] sm:$0xff] %v5012_v62 }
  0x3c   :  { %732 = vmatprep.subr.bf16.mxu0 %v4807_v2  ;;  %773 = vmatprep.subr.bf16.mxu1 %v4812_v3 }
  0x3d   :  { %750 = vmatprep.mubr.bf16.mxu0 %v7184_v1  ;;  %791 = vmatprep.mubr.bf16.mxu1 %v7184_v1 }
  0x3f   :  { %733 = vmatpush1.bf16.msra.mxu0 %v4819_v4  ;;  %774 = vmatpush1.bf16.msra.mxu1 %v4824_v5 }
  0x40   :  { %990 = vmatprep.subr.bf16.mxu0 %v4839_v7  ;;  %1031 = vmatprep.subr.bf16.mxu1 %v4844_v8 }
  0x42   :  { %751 = vmatmul.mubr.bf16.vlgmr.msra.gmra.mrb[16].mxu0 %v7186_v6  ;;  %792 = vmatmul.mubr.bf16.vlgmr.msra.gmra.mrb[16].mxu1 %v7186_v6  ;;  %v5023_v6 = vld [vmem:[%s7177_s5 + $0xe8] ss:$16 sps:$4 sm:$0xff]  }
  0x43   :  { %1022 = vmatprep.mubr.bf16.mxu0 %v7184_v1  ;;  %1063 = vmatprep.mubr.bf16.mxu1 %v7184_v1  ;;  %v5017_v1 = vld [vmem:[%s7177_s5 + $0xe0] ss:$16 sps:$4 sm:$0xff]   ;;  %7481 = vst [vmem:[#allocation27_spill] sm:$0xff] %v5023_v6 }
  0x44   :  { %991 = vmatpush1.bf16.msra.mxu0 %v4850_v9  ;;  %1032 = vmatpush1.bf16.msra.mxu1 %v4855_v10  ;;  %7480 = vst [vmem:[#allocation26_spill] sm:$0xff] %v5017_v1 }
  0x45   :  { %992 = vmatprep.subr.bf16.mxu0 %v4863_v11  ;;  %1033 = vmatprep.subr.bf16.mxu1 %v4868_v12 }
  0x48   :  { %993 = vmatpush1.bf16.msra.mxu0 %v4873_v13  ;;  %1034 = vmatpush1.bf16.msra.mxu1 %v4879_v14 }
  0x49   :  { %994 = vmatprep.subr.bf16.mxu0 %v4887_v15  ;;  %1035 = vmatprep.subr.bf16.mxu1 %v4892_v16 }
  0x4c   :  { %995 = vmatpush1.bf16.msra.mxu0 %v4897_v17  ;;  %1036 = vmatpush1.bf16.msra.mxu1 %v4903_v18 }
  0x4d   :  { %996 = vmatprep.subr.bf16.mxu0 %v4911_v19  ;;  %1037 = vmatprep.subr.bf16.mxu1 %v4916_v20 }
  0x50   :  { %997 = vmatpush1.bf16.msra.mxu0 %v4921_v21  ;;  %1038 = vmatpush1.bf16.msra.mxu1 %v4927_v22 }
  0x51   :  { %998 = vmatprep.subr.bf16.mxu0 %v4935_v23  ;;  %1039 = vmatprep.subr.bf16.mxu1 %v4940_v24 }
  0x54   :  { %999 = vmatpush1.bf16.msra.mxu0 %v4946_v25  ;;  %1040 = vmatpush1.bf16.msra.mxu1 %v4952_v26 }
  0x55   :  { %1000 = vmatprep.subr.bf16.mxu0 %v4959_v27  ;;  %1041 = vmatprep.subr.bf16.mxu1 %v4964_v28 }
  0x58   :  { %1001 = vmatpush1.bf16.msra.mxu0 %v4969_v29  ;;  %1042 = vmatpush1.bf16.msra.mxu1 %v4975_v30 }
  0x59   :  { %1002 = vmatprep.subr.bf16.mxu0 %v4983_v31  ;;  %1043 = vmatprep.subr.bf16.mxu1 %v4988_v32  ;;  %v5088_v32 = vld [vmem:[%s7178_s4 + $0x4c] ss:$16 sps:$4 sm:$0xff]  }
  0x5a   :  { %7493 = vst [vmem:[#allocation37_spill] sm:$0xff] %v5088_v32 }
  0x5c   :  { %1003 = vmatpush1.bf16.msra.mxu0 %v4993_v35  ;;  %1044 = vmatpush1.bf16.msra.mxu1 %v4999_v44  ;;  %v5031_v44 = vld [vmem:[%s7178_s4 + $0x4] ss:$16 sps:$4 sm:$0xff]   ;;  %v7483_v35 = vmov 0.0|0.0  }
  0x5d   :  { %1004 = vmatprep.subr.bf16.mxu0 %v5007_v53  ;;  %1045 = vmatprep.subr.bf16.mxu1 %v5012_v62  ;;  %7482 = vst [vmem:[#allocation28_spill] sm:$0xff] %v5031_v44  ;;  %v5037_v53 = vld [vmem:[%s7178_s4 + $0xc] ss:$16 sps:$4 sm:$0xff]   ;;  %v7487_v62 = vmov 0  }
  0x5e   :  { %7484 = vst [vmem:[#allocation29_spill] sm:$0xff] %v5037_v53 }
  0x60   :  { %1005 = vmatpush1.bf16.msra.mxu0 %v5017_v1  ;;  %1046 = vmatpush1.bf16.msra.mxu1 %v5023_v6  ;;  %v5044_v6 = vld [vmem:[%s7178_s4] ss:$16 sps:$4 sm:$0xff]   ;;  %v5049_v1 = vld [vmem:[%s7178_s4 + $0x8] ss:$16 sps:$4 sm:$0xff]  }
  0x61   :  { %1232 = vmatprep.subr.bf16.mxu0 %v5031_v44  ;;  %7485 = vst [vmem:[#allocation30_spill] sm:$0xff] %v5044_v6  ;;  %7486 = vst [vmem:[#allocation31_spill] sm:$0xff] %v5049_v1  ;;  %1273 = vmatprep.subr.bf16.mxu1 %v5037_v53  ;;  %v5063_v44 = vld [vmem:[%s7178_s4 + $0x2c] ss:$16 sps:$4 sm:$0xff]   ;;  %v5068_v53 = vld [vmem:[%s7178_s4 + $0x20] ss:$16 sps:$4 sm:$0xff]  }
  0x62   :  { %7489 = vst [vmem:[#allocation33_spill] sm:$0xff] %v5063_v44  ;;  %7490 = vst [vmem:[#allocation34_spill] sm:$0xff] %v5068_v53 }
  0x63   :  { %1023 = vmatmul.mubr.bf16.vlgmr.msra.gmra.mrb[20].mxu0 %v7483_v35  ;;  %1064 = vmatmul.mubr.bf16.vlgmr.msra.gmra.mrb[20].mxu1 %v7483_v35  ;;  %v5058_v35 = vld [vmem:[%s7178_s4 + $0x24] ss:$16 sps:$4 sm:$0xff]  }
  0x64   :  { %1264 = vmatprep.mubr.bf16.mxu0 %v7487_v62  ;;  %1233 = vmatpush1.bf16.msra.mxu0 %v5044_v6  ;;  %7488 = vst [vmem:[#allocation32_spill] sm:$0xff] %v5058_v35  ;;  %v5073_v6 = vld [vmem:[%s7178_s4 + $0x28] ss:$16 sps:$4 sm:$0xff]  }
  0x65   :  { %1274 = vmatpush1.bf16.msra.mxu1 %v5049_v1  ;;  %7491 = vst [vmem:[#allocation35_spill] sm:$0xff] %v5073_v6  ;;  %1305 = vmatprep.mubr.bf16.mxu1 %v7487_v62  ;;  %v5083_v1 = vld [vmem:[%s7178_s4 + $0x44] ss:$16 sps:$4 sm:$0xff]  }
  0x66   :  { %1234 = vmatprep.subr.bf16.mxu0 %v5058_v35  ;;  %1275 = vmatprep.subr.bf16.mxu1 %v5063_v44  ;;  %7492 = vst [vmem:[#allocation36_spill] sm:$0xff] %v5083_v1  ;;  %v5093_v35 = vld [vmem:[%s7178_s4 + $0x40] ss:$16 sps:$4 sm:$0xff]   ;;  %v5112_v44 = vld [vmem:[%s7178_s4 + $0x6c] ss:$16 sps:$4 sm:$0xff]  }
  0x67   :  { %7494 = vst [vmem:[#allocation38_spill] sm:$0xff] %v5093_v35  ;;  %7497 = vst [vmem:[#allocation41_spill] sm:$0xff] %v5112_v44 }
  0x68   :  { %1235 = vmatpush1.bf16.msra.mxu0 %v5068_v53  ;;  %v5098_v53 = vld [vmem:[%s7178_s4 + $0x48] ss:$16 sps:$4 sm:$0xff]  }
  0x69   :  { %1276 = vmatpush1.bf16.msra.mxu1 %v5073_v6  ;;  %7495 = vst [vmem:[#allocation39_spill] sm:$0xff] %v5098_v53  ;;  %1236 = vmatprep.subr.bf16.mxu0 %v5083_v1  ;;  %v5107_v6 = vld [vmem:[%s7178_s4 + $0x64] ss:$16 sps:$4 sm:$0xff]   ;;  %v5117_v1 = vld [vmem:[%s7178_s4 + $0x60] ss:$16 sps:$4 sm:$0xff]  }
  0x6a   :  { %1277 = vmatprep.subr.bf16.mxu1 %v5088_v32  ;;  %7496 = vst [vmem:[#allocation40_spill] sm:$0xff] %v5107_v6  ;;  %7498 = vst [vmem:[#allocation42_spill] sm:$0xff] %v5117_v1  ;;  %v5136_v32 = vld [vmem:[%s7178_s4 + $0x8c] ss:$16 sps:$4 sm:$0xff]  }
  0x6b   :  { %7501 = vst [vmem:[#allocation45_spill] sm:$0xff] %v5136_v32 }
  0x6c   :  { %1237 = vmatpush1.bf16.msra.mxu0 %v5093_v35  ;;  %v5122_v35 = vld [vmem:[%s7178_s4 + $0x68] ss:$16 sps:$4 sm:$0xff]  }
  0x6d   :  { %1278 = vmatpush1.bf16.msra.mxu1 %v5098_v53  ;;  %7499 = vst [vmem:[#allocation43_spill] sm:$0xff] %v5122_v35  ;;  %1238 = vmatprep.subr.bf16.mxu0 %v5107_v6  ;;  %v5131_v53 = vld [vmem:[%s7178_s4 + $0x84] ss:$16 sps:$4 sm:$0xff]   ;;  %v5141_v6 = vld [vmem:[%s7178_s4 + $0x80] ss:$16 sps:$4 sm:$0xff]  }
  0x6e   :  { %1279 = vmatprep.subr.bf16.mxu1 %v5112_v44  ;;  %7500 = vst [vmem:[#allocation44_spill] sm:$0xff] %v5131_v53  ;;  %7502 = vst [vmem:[#allocation46_spill] sm:$0xff] %v5141_v6  ;;  %v5158_v44 = vld [vmem:[%s7178_s4 + $0xac] ss:$16 sps:$4 sm:$0xff]  }
  0x6f   :  { %7505 = vst [vmem:[#allocation49_spill] sm:$0xff] %v5158_v44 }
  0x70   :  { %1239 = vmatpush1.bf16.msra.mxu0 %v5117_v1  ;;  %v5146_v1 = vld [vmem:[%s7178_s4 + $0x88] ss:$16 sps:$4 sm:$0xff]  }
  0x71   :  { %1280 = vmatpush1.bf16.msra.mxu1 %v5122_v35  ;;  %7503 = vst [vmem:[#allocation47_spill] sm:$0xff] %v5146_v1  ;;  %1240 = vmatprep.subr.bf16.mxu0 %v5131_v53  ;;  %v5153_v35 = vld [vmem:[%s7178_s4 + $0xa4] ss:$16 sps:$4 sm:$0xff]   ;;  %v5165_v53 = vld [vmem:[%s7178_s4 + $0xa0] ss:$16 sps:$4 sm:$0xff]  }
  0x72   :  { %1281 = vmatprep.subr.bf16.mxu1 %v5136_v32  ;;  %7504 = vst [vmem:[#allocation48_spill] sm:$0xff] %v5153_v35  ;;  %7506 = vst [vmem:[#allocation50_spill] sm:$0xff] %v5165_v53  ;;  %v5170_v32 = vld [vmem:[%s7178_s4 + $0xa8] ss:$16 sps:$4 sm:$0xff]  }
  0x73   :  { %7507 = vst [vmem:[#allocation51_spill] sm:$0xff] %v5170_v32 }
  0x74   :  { %1241 = vmatpush1.bf16.msra.mxu0 %v5141_v6  ;;  %v5177_v6 = vld [vmem:[%s7178_s4 + $0xc4] ss:$16 sps:$4 sm:$0xff]  }
  0x75   :  { %1282 = vmatpush1.bf16.msra.mxu1 %v5146_v1  ;;  %1242 = vmatprep.subr.bf16.mxu0 %v5153_v35  ;;  %7508 = vst [vmem:[#allocation52_spill] sm:$0xff] %v5177_v6  ;;  %v5182_v1 = vld [vmem:[%s7178_s4 + $0xcc] ss:$16 sps:$4 sm:$0xff]   ;;  %v5189_v35 = vld [vmem:[%s7178_s4 + $0xc0] ss:$16 sps:$4 sm:$0xff]  }
  0x76   :  { %1283 = vmatprep.subr.bf16.mxu1 %v5158_v44  ;;  %7509 = vst [vmem:[#allocation53_spill] sm:$0xff] %v5182_v1  ;;  %7510 = vst [vmem:[#allocation54_spill] sm:$0xff] %v5189_v35  ;;  %v5194_v44 = vld [vmem:[%s7178_s4 + $0xc8] ss:$16 sps:$4 sm:$0xff]  }
  0x77   :  { %7511 = vst [vmem:[#allocation55_spill] sm:$0xff] %v5194_v44 }
  0x78   :  { %1243 = vmatpush1.bf16.msra.mxu0 %v5165_v53  ;;  %v5201_v53 = vld [vmem:[%s7178_s4 + $0xe4] ss:$16 sps:$4 sm:$0xff]  }
  0x79   :  { %1284 = vmatpush1.bf16.msra.mxu1 %v5170_v32  ;;  %1244 = vmatprep.subr.bf16.mxu0 %v5177_v6  ;;  %7512 = vst [vmem:[#allocation56_spill] sm:$0xff] %v5201_v53  ;;  %v5206_v32 = vld [vmem:[%s7178_s4 + $0xec] ss:$16 sps:$4 sm:$0xff]   ;;  %v5213_v6 = vld [vmem:[%s7178_s4 + $0xe0] ss:$16 sps:$4 sm:$0xff]  }
  0x7a   :  { %1285 = vmatprep.subr.bf16.mxu1 %v5182_v1  ;;  %7513 = vst [vmem:[#allocation57_spill] sm:$0xff] %v5206_v32  ;;  %7514 = vst [vmem:[#allocation58_spill] sm:$0xff] %v5213_v6  ;;  %v5218_v1 = vld [vmem:[%s7178_s4 + $0xe8] ss:$16 sps:$4 sm:$0xff]  }
  0x7b   :  { %7515 = vst [vmem:[#allocation59_spill] sm:$0xff] %v5218_v1 }
  0x7c   :  { %1245 = vmatpush1.bf16.msra.mxu0 %v5189_v35 }
  0x7d   :  { %1286 = vmatpush1.bf16.msra.mxu1 %v5194_v44  ;;  %1246 = vmatprep.subr.bf16.mxu0 %v5201_v53  ;;  %v83_v44 = vlaneseq }
  0x7e   :  { %1287 = vmatprep.subr.bf16.mxu1 %v5206_v32  ;;  %v81_v32 = vld [vmem:[%s7179_s3] sm:$0xf] }
  0x7f   :  { %v5226_v35 = vshrl.u32 %v83_v44, 7 }
  0x80   :  { %1247 = vmatpush1.bf16.msra.mxu0 %v5213_v6 }
  0x81   :  { %1288 = vmatpush1.bf16.msra.mxu1 %v5218_v1  ;;  %1342 = vmatprep.subr.bf16.mxu0 %v4623_v33  ;;  %7516 = vst [vmem:[#allocation60_spill] sm:$0xff] %v5226_v35  ;;  %v7252_v31 = vsub.s32 2, %v5226_v35  ;;  %v7258_v30 = vsub.s32 3, %v5226_v35  ;;  %v7259_v29 = vsub.s32 0, %v5226_v35  ;;  %v7264_v6 = vsub.s32 1, %v5226_v35 }
  0x82   :  { %1383 = vmatprep.subr.bf16.mxu1 %v4628_v34 }
  0x83   :  { %v5237_v33 = vrot.slane %v81_v32, %v7252_v31  ;;  %v5245_v1 = vrot.slane %v81_v32, %v7258_v30  ;;  %v86_v53 = vrot.slane %v81_v32, %v7259_v29  ;;  %v90_v26 = vrot.slane %v81_v32, %v7264_v6 }
  0xf5   :  { %v5239_v34 = vpop.f32.mrb[0].mxu0  ;;  %v5241_v44 = vpop.f32.mrb[0].mxu1 }
  0xf6   :  { %v323_v28 = vpop.f32.mrb[1].mxu0  ;;  %v396_v27 = vpop.f32.mrb[1].mxu1 }
  0xf7   :  { %v325_v25 = vpop.f32.mrb[2].mxu0  ;;  %v398_v24 = vpop.f32.mrb[2].mxu1 }
  0xf8   :  { %v5251_v31 = vadd.f32 %v325_v25, %v86_v53  ;;  %v327_v23 = vpop.f32.mrb[3].mxu0  ;;  %v5254_v22 = vadd.f32 %v398_v24, %v5237_v33  ;;  %v400_v21 = vpop.f32.mrb[3].mxu1 }
  0xf9   :  { %v5256_v20 = vadd.f32 %v327_v23, %v90_v26  ;;  %v5259_v30 = vadd.f32 %v400_v21, %v5245_v1 }
  0xfa   :  { %7517 = vst [vmem:[#allocation61_spill] sm:$0xff] %v5251_v31  ;;  %7518 = vst [vmem:[#allocation62_spill] sm:$0xff] %v5254_v22 }
  0xfb   :  { %7519 = vst [vmem:[#allocation63_spill] sm:$0xff] %v5256_v20  ;;  %7520 = vst [vmem:[#allocation64_spill] sm:$0xff] %v5259_v30 }
  0xfd   :  { %v331_v29 = vpop.f32.mrb[4].mxu0  ;;  %v404_v19 = vpop.f32.mrb[4].mxu1 }
  0xfe   :  { %v5261_v18 = vadd.f32 %v331_v29, %v86_v53  ;;  %v333_v35 = vpop.f32.mrb[5].mxu0  ;;  %v5264_v32 = vadd.f32 %v404_v19, %v5237_v33  ;;  %v406_v25 = vpop.f32.mrb[5].mxu1 }
  0xff   :  { %v5266_v6 = vadd.f32 %v333_v35, %v90_v26  ;;  %v335_v31 = vpop.f32.mrb[6].mxu0  ;;  %v5269_v24 = vadd.f32 %v406_v25, %v5245_v1  ;;  %v408_v23 = vpop.f32.mrb[6].mxu1 }
 0x100   :  { %7521 = vst [vmem:[#allocation65_spill] sm:$0xff] %v5261_v18  ;;  %7522 = vst [vmem:[#allocation66_spill] sm:$0xff] %v5264_v32  ;;  %v5271_v20 = vadd.f32 %v335_v31, %v86_v53  ;;  %v337_v21 = vpop.f32.mrb[7].mxu0  ;;  %v5274_v30 = vadd.f32 %v408_v23, %v5237_v33  ;;  %v410_v29 = vpop.f32.mrb[7].mxu1 }
 0x101   :  { %7523 = vst [vmem:[#allocation67_spill] sm:$0xff] %v5266_v6  ;;  %7524 = vst [vmem:[#allocation68_spill] sm:$0xff] %v5269_v24  ;;  %v5276_v18 = vadd.f32 %v337_v21, %v90_v26  ;;  %v5279_v19 = vadd.f32 %v410_v29, %v5245_v1 }
 0x102   :  { %7525 = vst [vmem:[#allocation69_spill] sm:$0xff] %v5271_v20  ;;  %7526 = vst [vmem:[#allocation70_spill] sm:$0xff] %v5274_v30 }
 0x103   :  { %7527 = vst [vmem:[#allocation71_spill] sm:$0xff] %v5276_v18  ;;  %7528 = vst [vmem:[#allocation72_spill] sm:$0xff] %v5279_v19 }
 0x105   :  { %v341_v32 = vpop.f32.mrb[8].mxu0  ;;  %v414_v35 = vpop.f32.mrb[8].mxu1 }
 0x106   :  { %v5281_v6 = vadd.f32 %v341_v32, %v86_v53  ;;  %v343_v22 = vpop.f32.mrb[9].mxu0  ;;  %v5284_v25 = vadd.f32 %v414_v35, %v5237_v33  ;;  %v416_v31 = vpop.f32.mrb[9].mxu1 }
 0x107   :  { %v5286_v20 = vadd.f32 %v343_v22, %v90_v26  ;;  %v345_v24 = vpop.f32.mrb[10].mxu0  ;;  %v5289_v23 = vadd.f32 %v416_v31, %v5245_v1  ;;  %v418_v21 = vpop.f32.mrb[10].mxu1 }
 0x108   :  { %7529 = vst [vmem:[#allocation73_spill] sm:$0xff] %v5281_v6  ;;  %7530 = vst [vmem:[#allocation74_spill] sm:$0xff] %v5284_v25  ;;  %v5291_v18 = vadd.f32 %v345_v24, %v86_v53  ;;  %v347_v29 = vpop.f32.mrb[11].mxu0  ;;  %v5294_v19 = vadd.f32 %v418_v21, %v5237_v33  ;;  %v420_v32 = vpop.f32.mrb[11].mxu1 }
 0x109   :  { %7531 = vst [vmem:[#allocation75_spill] sm:$0xff] %v5286_v20  ;;  %7532 = vst [vmem:[#allocation76_spill] sm:$0xff] %v5289_v23  ;;  %v5296_v6 = vadd.f32 %v347_v29, %v90_v26  ;;  %v5299_v35 = vadd.f32 %v420_v32, %v5245_v1 }
 0x10a   :  { %7533 = vst [vmem:[#allocation77_spill] sm:$0xff] %v5291_v18  ;;  %7534 = vst [vmem:[#allocation78_spill] sm:$0xff] %v5294_v19 }
 0x10b   :  { %7535 = vst [vmem:[#allocation79_spill] sm:$0xff] %v5296_v6  ;;  %7536 = vst [vmem:[#allocation80_spill] sm:$0xff] %v5299_v35 }
 0x10d   :  { %v351_v25 = vpop.f32.mrb[12].mxu0  ;;  %v424_v22 = vpop.f32.mrb[12].mxu1 }
 0x10e   :  { %v5301_v20 = vadd.f32 %v351_v25, %v86_v53  ;;  %v353_v30 = vpop.f32.mrb[13].mxu0  ;;  %v5304_v31 = vadd.f32 %v424_v22, %v5237_v33  ;;  %v426_v24 = vpop.f32.mrb[13].mxu1 }
 0x10f   :  { %v5306_v18 = vadd.f32 %v353_v30, %v90_v26  ;;  %v355_v23 = vpop.f32.mrb[14].mxu0  ;;  %v5309_v21 = vadd.f32 %v426_v24, %v5245_v1  ;;  %v428_v29 = vpop.f32.mrb[14].mxu1  ;;  %v322_v30 = vadd.f32 %v5239_v34, %v86_v53  ;;  %v324_v24 = vadd.f32 %v323_v28, %v90_v26 }
 0x110   :  { %7537 = vst [vmem:[#allocation81_spill] sm:$0xff] %v5301_v20  ;;  %7538 = vst [vmem:[#allocation82_spill] sm:$0xff] %v5304_v31  ;;  %v5311_v6 = vadd.f32 %v355_v23, %v86_v53  ;;  %v357_v32 = vpop.f32.mrb[15].mxu0  ;;  %v5314_v35 = vadd.f32 %v428_v29, %v5237_v33  ;;  %v430_v25 = vpop.f32.mrb[15].mxu1 }
 0x111   :  { %7539 = vst [vmem:[#allocation83_spill] sm:$0xff] %v5306_v18  ;;  %7540 = vst [vmem:[#allocation84_spill] sm:$0xff] %v5309_v21  ;;  %v5316_v20 = vadd.f32 %v357_v32, %v90_v26  ;;  %v5319_v22 = vadd.f32 %v430_v25, %v5245_v1  ;;  %v395_v18 = vadd.f32 %v5241_v44, %v5237_v33 }
 0x112   :  { %7541 = vst [vmem:[#allocation85_spill] sm:$0xff] %v5311_v6  ;;  %7542 = vst [vmem:[#allocation86_spill] sm:$0xff] %v5314_v35  ;;  %v397_v21 = vadd.f32 %v396_v27, %v5245_v1 }
 0x113   :  { %7543 = vst [vmem:[#allocation87_spill] sm:$0xff] %v5316_v20  ;;  %7544 = vst [vmem:[#allocation88_spill] sm:$0xff] %v5319_v22 }
 0x115   :  { %v752_v23 = vpop.f32.mrb[16].mxu0  ;;  %v793_v6 = vpop.f32.mrb[16].mxu1 }
 0x116   :  { %v800_v31 = vadd.f32 %v752_v23, %v322_v30  ;;  %v802_v19 = vadd.f32 %v793_v6, %v395_v18  ;;  %v754_v29 = vpop.f32.mrb[17].mxu0  ;;  %v795_v35 = vpop.f32.mrb[17].mxu1 }
 0x117   :  { %v801_v17 = vadd.f32 %v754_v29, %v324_v24  ;;  %v803_v32 = vadd.f32 %v795_v35, %v397_v21  ;;  %v756_v20 = vpop.f32.mrb[18].mxu0  ;;  %v797_v16 = vpop.f32.mrb[18].mxu1 }
 0x118   :  { %v3662_v25 = vmul.f32 -1.442695, %v800_v31  ;;  %v757_v22 = vpop.f32.mrb[19].mxu0  ;;  %v798_v15 = vpop.f32.mrb[19].mxu1 }
 0x119   :  { %v3663_v53 = vmul.f32 -1.442695, %v801_v17  ;;  %v3664_v33 = vmul.f32 -1.442695, %v803_v32 }
 0x11a   :  { %4020 = vpow2.f32 %v3662_v25 }
 0x11b   :  { %4022 = vpow2.f32 %v3663_v53 }
 0x11c   :  { %4024 = vpow2.f32 %v3664_v33 }
 0x11d   :  { %4026 = vtanh.f32 %v802_v19 }
 0x124   :  { %v4021_v26 = vpop.eup %4020 }
 0x125   :  { %v4023_v28 = vpop.eup %4022  ;;  %v807_v1 = vadd.f32 1.0, %v4021_v26 }
 0x126   :  { %v813_v27 = vadd.f32 1.0, %v4023_v28  ;;  %v4025_v6 = vpop.eup %4024 }
 0x127   :  { %4028 = vrcp.f32 %v807_v1  ;;  %v4027_v18 = vpop.eup %4026  ;;  %v820_v44 = vadd.f32 1.0, %v4025_v6 }
 0x128   :  { %4030 = vrcp.f32 %v813_v27 }
 0x129   :  { %4032 = vrcp.f32 %v820_v44 }
 0x131   :  { %v4029_v34 = vpop.eup %4028 }
 0x132   :  { %v4031_v20 = vpop.eup %4030  ;;  %v824_v16 = vmul.f32 %v4029_v34, %v4027_v18 }
 0x133   :  { %v823_v35 = vmul.f32 0.0, %v4031_v20  ;;  %v4033_v17 = vpop.eup %4032 }
 0x135   :  { %v5325_v15 = vadd.f32 %v824_v16, %v823_v35 }
 0x137   :  { %4034 = vtanh.f32 %v5325_v15 }
 0x141   :  { %v4035_v31 = vpop.eup %4034 }
 0x142   :  { %v827_v21 = vmul.f32 %v4035_v31, %v4033_v17 }
 0x144   :  { %v828_v22 = vpack.c.bf16 %v827_v21, %v827_v21 }
 0x146   :  { %1265 = vmatmul.mubr.bf16.vlgmr.msra.gmra.mrb[24].mxu0 %v828_v22  ;;  %1306 = vmatmul.mubr.bf16.vlgmr.msra.gmra.mrb[24].mxu1 %v828_v22 }
 0x147   :  { %1343 = vmatpush1.bf16.msra.mxu0 %v4636_v36  ;;  %1384 = vmatpush1.bf16.msra.mxu1 %v4641_v37  ;;  %v7545_v36 = vld [vmem:[#allocation4_spill] sm:$0xff]  ;;  %v7546_v37 = vld [vmem:[#allocation5_spill] sm:$0xff] }
 0x148   :  { %1344 = vmatprep.subr.bf16.mxu0 %v4648_v38  ;;  %1385 = vmatprep.subr.bf16.mxu1 %v4653_v39  ;;  %v7547_v38 = vld [vmem:[#allocation6_spill] sm:$0xff]  ;;  %v7548_v39 = vld [vmem:[#allocation7_spill] sm:$0xff] }
 0x149   :  { %1374 = vmatprep.mubr.bf16.mxu0 %v7487_v62  ;;  %1415 = vmatprep.mubr.bf16.mxu1 %v7487_v62 }
 0x14b   :  { %1345 = vmatpush1.bf16.msra.mxu0 %v4658_v40  ;;  %1386 = vmatpush1.bf16.msra.mxu1 %v4665_v41  ;;  %v7549_v40 = vld [vmem:[#allocation8_spill] sm:$0xff]  ;;  %v7550_v41 = vld [vmem:[#allocation9_spill] sm:$0xff] }
 0x14c   :  { %1346 = vmatprep.subr.bf16.mxu0 %v4672_v42  ;;  %1387 = vmatprep.subr.bf16.mxu1 %v4677_v43  ;;  %v7551_v42 = vld [vmem:[#allocation10_spill] sm:$0xff]  ;;  %v7552_v43 = vld [vmem:[#allocation11_spill] sm:$0xff] }
 0x14f   :  { %1347 = vmatpush1.bf16.msra.mxu0 %v4687_v45  ;;  %1388 = vmatpush1.bf16.msra.mxu1 %v4692_v46  ;;  %v7553_v45 = vld [vmem:[#allocation12_spill] sm:$0xff]  ;;  %v7554_v46 = vld [vmem:[#allocation13_spill] sm:$0xff] }
 0x150   :  { %1348 = vmatprep.subr.bf16.mxu0 %v4699_v47  ;;  %1389 = vmatprep.subr.bf16.mxu1 %v4706_v48  ;;  %v7555_v47 = vld [vmem:[#allocation14_spill] sm:$0xff]  ;;  %v7556_v48 = vld [vmem:[#allocation15_spill] sm:$0xff] }
 0x153   :  { %1349 = vmatpush1.bf16.msra.mxu0 %v4711_v49  ;;  %1390 = vmatpush1.bf16.msra.mxu1 %v4716_v50  ;;  %v1024_v49 = vpop.f32.mrb[20].mxu0  ;;  %v7557_v50 = vld [vmem:[#allocation16_spill] sm:$0xff] }
 0x154   :  { %1350 = vmatprep.subr.bf16.mxu0 %v4723_v51  ;;  %1391 = vmatprep.subr.bf16.mxu1 %v4730_v52  ;;  %v7558_v51 = vld [vmem:[#allocation17_spill] sm:$0xff]  ;;  %v1026_v52 = vpop.f32.mrb[21].mxu0 }
 0x157   :  { %1351 = vmatpush1.bf16.msra.mxu0 %v4742_v54  ;;  %1392 = vmatpush1.bf16.msra.mxu1 %v4747_v55  ;;  %v1065_v54 = vpop.f32.mrb[20].mxu1  ;;  %v1028_v55 = vpop.f32.mrb[22].mxu0 }
 0x158   :  { %1352 = vmatprep.subr.bf16.mxu0 %v4754_v56  ;;  %1393 = vmatprep.subr.bf16.mxu1 %v4759_v57  ;;  %v1067_v56 = vpop.f32.mrb[21].mxu1  ;;  %v1029_v57 = vpop.f32.mrb[23].mxu0 }
 0x15b   :  { %1353 = vmatpush1.bf16.msra.mxu0 %v4766_v58  ;;  %1394 = vmatpush1.bf16.msra.mxu1 %v4771_v59  ;;  %v1069_v58 = vpop.f32.mrb[22].mxu1  ;;  %v7559_v59 = vld [vmem:[#allocation18_spill] sm:$0xff] }
 0x15c   :  { %1354 = vmatprep.subr.bf16.mxu0 %v4778_v60  ;;  %1395 = vmatprep.subr.bf16.mxu1 %v4783_v61  ;;  %v7560_v60 = vld [vmem:[#allocation19_spill] sm:$0xff]  ;;  %v1070_v61 = vpop.f32.mrb[23].mxu1  ;;  %v7576_v58 = vld [vmem:[#allocation61_spill] sm:$0xff] }
 0x15f   :  { %1355 = vmatpush1.bf16.msra.mxu0 %v4795_v63  ;;  %1396 = vmatpush1.bf16.msra.mxu1 %v4800_v0  ;;  %v7561_v63 = vld [vmem:[#allocation20_spill] sm:$0xff]  ;;  %v7562_v0 = vld [vmem:[#allocation21_spill] sm:$0xff] }
 0x160   :  { %1356 = vmatprep.subr.bf16.mxu0 %v4807_v2  ;;  %1397 = vmatprep.subr.bf16.mxu1 %v4812_v3  ;;  %v7563_v2 = vld [vmem:[#allocation22_spill] sm:$0xff]  ;;  %v7564_v3 = vld [vmem:[#allocation23_spill] sm:$0xff] }
 0x163   :  { %1357 = vmatpush1.bf16.msra.mxu0 %v4819_v4  ;;  %1398 = vmatpush1.bf16.msra.mxu1 %v4824_v5  ;;  %v7565_v4 = vld [vmem:[#allocation24_spill] sm:$0xff]  ;;  %v7566_v5 = vld [vmem:[#allocation25_spill] sm:$0xff] }
 0x164   :  { %1454 = vmatprep.subr.bf16.mxu0 %v4839_v7  ;;  %1495 = vmatprep.subr.bf16.mxu1 %v4844_v8  ;;  %v7567_v7 = vld [vmem:[#allocation26_spill] sm:$0xff]  ;;  %v7568_v8 = vld [vmem:[#allocation27_spill] sm:$0xff] }
 0x166   :  { %1375 = vmatmul.mubr.bf16.vlgmr.msra.gmra.mrb[28].mxu0 %v828_v22  ;;  %1416 = vmatmul.mubr.bf16.vlgmr.msra.gmra.mrb[28].mxu1 %v828_v22 }
 0x167   :  { %1455 = vmatpush1.bf16.msra.mxu0 %v4850_v9  ;;  %1496 = vmatpush1.bf16.msra.mxu1 %v4855_v10  ;;  %v7569_v9 = vld [vmem:[#allocation28_spill] sm:$0xff]  ;;  %v7570_v10 = vld [vmem:[#allocation29_spill] sm:$0xff] }
 0x168   :  { %1456 = vmatprep.subr.bf16.mxu0 %v4863_v11  ;;  %1497 = vmatprep.subr.bf16.mxu1 %v4868_v12  ;;  %v529_v11 = vld [vmem:[%s7180_s6] sm:$0xf] }
 0x169   :  { %1486 = vmatprep.mubr.bf16.mxu0 %v7487_v62  ;;  %1527 = vmatprep.mubr.bf16.mxu1 %v7487_v62  ;;  %v7571_v12 = vld [vmem:[#allocation60_spill] sm:$0xff] }
 0x16a   :  { %v7573_v24 = vsub.s32 1, %v7571_v12  ;;  %v7574_v44 = vsub.s32 3, %v7571_v12  ;;  %v7575_v31 = vsub.s32 2, %v7571_v12 }
 0x16b   :  { %1457 = vmatpush1.bf16.msra.mxu0 %v4873_v13  ;;  %1498 = vmatpush1.bf16.msra.mxu1 %v4879_v14  ;;  %v7572_v13 = vsub.s32 0, %v7571_v12 }
 0x16c   :  { %1458 = vmatprep.subr.bf16.mxu0 %v7545_v36  ;;  %1499 = vmatprep.subr.bf16.mxu1 %v7546_v37  ;;  %v5405_v23 = vrot.slane %v529_v11, %v7573_v24  ;;  %v5411_v35 = vrot.slane %v529_v11, %v7574_v44  ;;  %v5416_v21 = vrot.slane %v529_v11, %v7575_v31  ;;  %v7578_v24 = vld [vmem:[#allocation63_spill] sm:$0xff] }
 0x16d   :  { %v5401_v14 = vrot.slane %v529_v11, %v7572_v13  ;;  %v7577_v11 = vld [vmem:[#allocation62_spill] sm:$0xff] }
 0x16f   :  { %1459 = vmatpush1.bf16.msra.mxu0 %v7547_v38  ;;  %1500 = vmatpush1.bf16.msra.mxu1 %v7548_v39 }
 0x170   :  { %1460 = vmatprep.subr.bf16.mxu0 %v7549_v40  ;;  %1501 = vmatprep.subr.bf16.mxu1 %v7550_v41 }
 0x173   :  { %1461 = vmatpush1.bf16.msra.mxu0 %v7551_v42  ;;  %1502 = vmatpush1.bf16.msra.mxu1 %v7552_v43 }
 0x174   :  { %1462 = vmatprep.subr.bf16.mxu0 %v7553_v45  ;;  %1503 = vmatprep.subr.bf16.mxu1 %v7554_v46 }
 0x177   :  { %1463 = vmatpush1.bf16.msra.mxu0 %v7555_v47  ;;  %1504 = vmatpush1.bf16.msra.mxu1 %v7556_v48 }
 0x178   :  { %1464 = vmatprep.subr.bf16.mxu0 %v7557_v50  ;;  %1505 = vmatprep.subr.bf16.mxu1 %v7558_v51 }
 0x17b   :  { %1465 = vmatpush1.bf16.msra.mxu0 %v7559_v59  ;;  %1506 = vmatpush1.bf16.msra.mxu1 %v7560_v60 }
 0x17c   :  { %1466 = vmatprep.subr.bf16.mxu0 %v7561_v63  ;;  %1507 = vmatprep.subr.bf16.mxu1 %v7562_v0 }
 0x17f   :  { %1467 = vmatpush1.bf16.msra.mxu0 %v7563_v2  ;;  %1508 = vmatpush1.bf16.msra.mxu1 %v7564_v3 }
 0x180   :  { %1468 = vmatprep.subr.bf16.mxu0 %v7565_v4  ;;  %1509 = vmatprep.subr.bf16.mxu1 %v7566_v5 }
 0x183   :  { %1469 = vmatpush1.bf16.msra.mxu0 %v7567_v7  ;;  %1510 = vmatpush1.bf16.msra.mxu1 %v7568_v8 }
 0x184   :  { %1536 = vmatprep.subr.bf16.mxu0 %v7569_v9  ;;  %1577 = vmatprep.subr.bf16.mxu1 %v7570_v10 }
 0x219   :  { %v1266_v19 = vpop.f32.mrb[24].mxu0  ;;  %v1307_v30 = vpop.f32.mrb[24].mxu1 }
 0x21a   :  { %v1267_v29 = vadd.f32 %v1266_v19, %v1024_v49  ;;  %v1308_v32 = vadd.f32 %v1307_v30, %v1065_v54  ;;  %v1268_v25 = vpop.f32.mrb[25].mxu0  ;;  %v1309_v53 = vpop.f32.mrb[25].mxu1 }
 0x21b   :  { %v1269_v33 = vadd.f32 %v1268_v25, %v1026_v52  ;;  %v1310_v26 = vadd.f32 %v1309_v53, %v1067_v56  ;;  %v1270_v28 = vpop.f32.mrb[26].mxu0  ;;  %v1311_v1 = vpop.f32.mrb[26].mxu1 }
 0x21c   :  { %v1314_v27 = vadd.f32 %v1267_v29, %v5401_v14  ;;  %v1271_v6 = vpop.f32.mrb[27].mxu0  ;;  %v1312_v18 = vpop.f32.mrb[27].mxu1  ;;  %v1316_v36 = vadd.f32 %v1308_v32, %v5416_v21  ;;  %v7579_v32 = vld [vmem:[#allocation64_spill] sm:$0xff] }
 0x21d   :  { %v1315_v34 = vadd.f32 %v1269_v33, %v5405_v23  ;;  %v1317_v17 = vadd.f32 %v1310_v26, %v5411_v35 }
 0x21e   :  { %v3729_v20 = vmul.f32 -1.442695, %v1314_v27 }
 0x21f   :  { %v3730_v16 = vmul.f32 -1.442695, %v1315_v34  ;;  %v3731_v22 = vmul.f32 -1.442695, %v1317_v17 }
 0x220   :  { %4036 = vpow2.f32 %v3729_v20 }
 0x221   :  { %4038 = vpow2.f32 %v3730_v16 }
 0x222   :  { %4040 = vpow2.f32 %v3731_v22 }
 0x223   :  { %4042 = vtanh.f32 %v1316_v36  ;;  %v7580_v36 = vld [vmem:[#allocation30_spill] sm:$0xff] }
 0x22a   :  { %v4037_v37 = vpop.eup %4036 }
 0x22b   :  { %v4039_v38 = vpop.eup %4038  ;;  %v1321_v39 = vadd.f32 1.0, %v4037_v37  ;;  %v7581_v37 = vld [vmem:[#allocation31_spill] sm:$0xff] }
 0x22c   :  { %v1327_v40 = vadd.f32 1.0, %v4039_v38  ;;  %v4041_v41 = vpop.eup %4040  ;;  %v7582_v38 = vld [vmem:[#allocation32_spill] sm:$0xff] }
 0x22d   :  { %4044 = vrcp.f32 %v1321_v39  ;;  %v4043_v42 = vpop.eup %4042  ;;  %v1334_v54 = vadd.f32 1.0, %v4041_v41  ;;  %v7583_v39 = vld [vmem:[#allocation33_spill] sm:$0xff]  ;;  %v7585_v41 = vld [vmem:[#allocation35_spill] sm:$0xff] }
 0x22e   :  { %4046 = vrcp.f32 %v1327_v40  ;;  %v7584_v40 = vld [vmem:[#allocation34_spill] sm:$0xff] }
 0x22f   :  { %4048 = vrcp.f32 %v1334_v54 }
 0x237   :  { %v4045_v43 = vpop.eup %4044 }
 0x238   :  { %v4047_v49 = vpop.eup %4046  ;;  %v1338_v52 = vmul.f32 %v4045_v43, %v4043_v42  ;;  %v7586_v42 = vld [vmem:[#allocation36_spill] sm:$0xff]  ;;  %v7587_v43 = vld [vmem:[#allocation37_spill] sm:$0xff] }
 0x239   :  { %v1337_v55 = vmul.f32 0.0, %v4047_v49  ;;  %v1376_v56 = vpop.f32.mrb[28].mxu0  ;;  %v1417_v57 = vpop.f32.mrb[28].mxu1 }
 0x23a   :  { %v1424_v61 = vadd.f32 %v1376_v56, %v7576_v58  ;;  %v1426_v12 = vadd.f32 %v1417_v57, %v7577_v11  ;;  %v1378_v13 = vpop.f32.mrb[29].mxu0  ;;  %v1419_v19 = vpop.f32.mrb[29].mxu1  ;;  %v7589_v56 = vld [vmem:[#allocation39_spill] sm:$0xff]  ;;  %v7590_v11 = vld [vmem:[#allocation40_spill] sm:$0xff] }
 0x23b   :  { %v5421_v30 = vadd.f32 %v1338_v52, %v1337_v55  ;;  %v1425_v29 = vadd.f32 %v1378_v13, %v7578_v24  ;;  %v1427_v25 = vadd.f32 %v1419_v19, %v7579_v32  ;;  %v1380_v53 = vpop.f32.mrb[30].mxu0  ;;  %v1421_v33 = vpop.f32.mrb[30].mxu1  ;;  %v7588_v55 = vld [vmem:[#allocation38_spill] sm:$0xff]  ;;  %v7594_v32 = vld [vmem:[#allocation44_spill] sm:$0xff] }
 0x23c   :  { %v3732_v26 = vmul.f32 -1.442695, %v1424_v61  ;;  %v1381_v28 = vpop.f32.mrb[31].mxu0  ;;  %v1422_v1 = vpop.f32.mrb[31].mxu1  ;;  %v7592_v24 = vld [vmem:[#allocation42_spill] sm:$0xff]  ;;  %v7597_v33 = vld [vmem:[#allocation47_spill] sm:$0xff] }
 0x23d   :  { %4050 = vtanh.f32 %v5421_v30  ;;  %v3733_v27 = vmul.f32 -1.442695, %v1425_v29  ;;  %v3734_v6 = vmul.f32 -1.442695, %v1427_v25  ;;  %v4049_v18 = vpop.eup %4048  ;;  %v7593_v29 = vld [vmem:[#allocation43_spill] sm:$0xff]  ;;  %v7595_v25 = vld [vmem:[#allocation45_spill] sm:$0xff] }
 0x23e   :  { %4052 = vpow2.f32 %v3732_v26  ;;  %v7596_v53 = vld [vmem:[#allocation46_spill] sm:$0xff]  ;;  %v7598_v26 = vld [vmem:[#allocation48_spill] sm:$0xff]  ;;  %v7601_v1 = vld [vmem:[#allocation51_spill] sm:$0xff] }
 0x23f   :  { %4054 = vpow2.f32 %v3733_v27  ;;  %v7600_v28 = vld [vmem:[#allocation50_spill] sm:$0xff]  ;;  %v7602_v27 = vld [vmem:[#allocation52_spill] sm:$0xff] }
 0x240   :  { %4056 = vpow2.f32 %v3734_v6  ;;  %v7603_v6 = vld [vmem:[#allocation53_spill] sm:$0xff] }
 0x241   :  { %4058 = vtanh.f32 %v1426_v12  ;;  %v7591_v12 = vld [vmem:[#allocation41_spill] sm:$0xff] }
 0x247   :  { %v4051_v34 = vpop.eup %4050 }
 0x248   :  { %v4053_v20 = vpop.eup %4052  ;;  %v1341_v16 = vmul.f32 %v4051_v34, %v4049_v18 }
 0x249   :  { %v4055_v44 = vpop.eup %4054  ;;  %v1431_v17 = vadd.f32 1.0, %v4053_v20  ;;  %v7604_v20 = vld [vmem:[#allocation54_spill] sm:$0xff] }
 0x24a   :  { %v1437_v31 = vadd.f32 1.0, %v4055_v44  ;;  %v1453_v22 = vpack.c.bf16 %v1341_v16, %v1341_v16  ;;  %v4057_v49 = vpop.eup %4056  ;;  %v7605_v16 = vld [vmem:[#allocation55_spill] sm:$0xff]  ;;  %v7606_v44 = vld [vmem:[#allocation56_spill] sm:$0xff] }
 0x24b   :  { %4060 = vrcp.f32 %v1431_v17  ;;  %v4059_v52 = vpop.eup %4058  ;;  %v1444_v61 = vadd.f32 1.0, %v4057_v49  ;;  %v7607_v17 = vld [vmem:[#allocation57_spill] sm:$0xff]  ;;  %v5507_v49 = vld [vmem:[%s7176_s2 + $0x20] ss:$16 sps:$4 sm:$0xff]  }
 0x24c   :  { %4062 = vrcp.f32 %v1437_v31  ;;  %1487 = vmatmul.mubr.bf16.vlgmr.msra.gmra.mrb[32].mxu0 %v1453_v22  ;;  %1528 = vmatmul.mubr.bf16.vlgmr.msra.gmra.mrb[32].mxu1 %v1453_v22  ;;  %v7608_v22 = vld [vmem:[#allocation58_spill] sm:$0xff] }
 0x24d   :  { %1537 = vmatpush1.bf16.msra.mxu0 %v7580_v36  ;;  %1578 = vmatpush1.bf16.msra.mxu1 %v7581_v37  ;;  %4064 = vrcp.f32 %v1444_v61  ;;  %v7609_v36 = vld [vmem:[#allocation59_spill] sm:$0xff] }
 0x24e   :  { %1538 = vmatprep.subr.bf16.mxu0 %v7582_v38  ;;  %1579 = vmatprep.subr.bf16.mxu1 %v7583_v39  ;;  %v5467_v38 = vld [vmem:[%s7176_s2 + $0x4] ss:$16 sps:$4 sm:$0xff]   ;;  %v5473_v39 = vld [vmem:[%s7176_s2 + $0xc] ss:$16 sps:$4 sm:$0xff]  }
 0x24f   :  { %1568 = vmatprep.mubr.bf16.mxu0 %v7487_v62  ;;  %1609 = vmatprep.mubr.bf16.mxu1 %v7487_v62  ;;  %v5549_v61 = vld [vmem:[%s7176_s2 + $0x6c] ss:$16 sps:$4 sm:$0xff]  }
 0x251   :  { %1539 = vmatpush1.bf16.msra.mxu0 %v7584_v40  ;;  %1580 = vmatpush1.bf16.msra.mxu1 %v7585_v41  ;;  %v5481_v40 = vld [vmem:[%s7176_s2] ss:$16 sps:$4 sm:$0xff]   ;;  %v5487_v41 = vld [vmem:[%s7176_s2 + $0x8] ss:$16 sps:$4 sm:$0xff]  }
 0x252   :  { %1540 = vmatprep.subr.bf16.mxu0 %v7586_v42  ;;  %1581 = vmatprep.subr.bf16.mxu1 %v7587_v43  ;;  %v5493_v42 = vld [vmem:[%s7176_s2 + $0x24] ss:$16 sps:$4 sm:$0xff]   ;;  %v5499_v43 = vld [vmem:[%s7176_s2 + $0x2c] ss:$16 sps:$4 sm:$0xff]  }
 0x255   :  { %v4061_v54 = vpop.eup %4060  ;;  %1541 = vmatpush1.bf16.msra.mxu0 %v7588_v55  ;;  %1582 = vmatpush1.bf16.msra.mxu1 %v7589_v56  ;;  %v5525_v55 = vld [vmem:[%s7176_s2 + $0x4c] ss:$16 sps:$4 sm:$0xff]   ;;  %v5531_v56 = vld [vmem:[%s7176_s2 + $0x40] ss:$16 sps:$4 sm:$0xff]  }
 0x256   :  { %v4063_v57 = vpop.eup %4062  ;;  %v1448_v58 = vmul.f32 %v4061_v54, %v4059_v52  ;;  %1542 = vmatprep.subr.bf16.mxu0 %v7590_v11  ;;  %1583 = vmatprep.subr.bf16.mxu1 %v7591_v12  ;;  %v5513_v52 = vld [vmem:[%s7176_s2 + $0x28] ss:$16 sps:$4 sm:$0xff]   ;;  %v5519_v54 = vld [vmem:[%s7176_s2 + $0x44] ss:$16 sps:$4 sm:$0xff]   ;;  %v5555_v11 = vld [vmem:[%s7176_s2 + $0x60] ss:$16 sps:$4 sm:$0xff]  }
 0x257   :  { %v1447_v13 = vmul.f32 %v4063_v57, %v5325_v15  ;;  %v7599_v15 = vld [vmem:[#allocation49_spill] sm:$0xff]  ;;  %v4065_v18 = vpop.eup %4064 }
 0x258   :  { %v5537_v57 = vld [vmem:[%s7176_s2 + $0x48] ss:$16 sps:$4 sm:$0xff]  }
 0x259   :  { %v5441_v19 = vadd.f32 %v1448_v58, %v1447_v13  ;;  %1543 = vmatpush1.bf16.msra.mxu0 %v7592_v24  ;;  %1584 = vmatpush1.bf16.msra.mxu1 %v7593_v29  ;;  %v5543_v58 = vld [vmem:[%s7176_s2 + $0x64] ss:$16 sps:$4 sm:$0xff]   ;;  %v5561_v12 = vld [vmem:[%s7176_s2 + $0x68] ss:$16 sps:$4 sm:$0xff]   ;;  %v5573_v24 = vld [vmem:[%s7176_s2 + $0x8c] ss:$16 sps:$4 sm:$0xff]  }
 0x25a   :  { %1544 = vmatprep.subr.bf16.mxu0 %v7594_v32  ;;  %1585 = vmatprep.subr.bf16.mxu1 %v7595_v25  ;;  %v5567_v13 = vld [vmem:[%s7176_s2 + $0x84] ss:$16 sps:$4 sm:$0xff]   ;;  %7610 = vst [vmem:[#allocation4_spill] sm:$0xff] %v5573_v24  ;;  %v5579_v29 = vld [vmem:[%s7176_s2 + $0x80] ss:$16 sps:$4 sm:$0xff]  }
 0x25b   :  { %4066 = vtanh.f32 %v5441_v19  ;;  %7611 = vst [vmem:[#allocation5_spill] sm:$0xff] %v5579_v29  ;;  %v5585_v32 = vld [vmem:[%s7176_s2 + $0x88] ss:$16 sps:$4 sm:$0xff]   ;;  %v5591_v25 = vld [vmem:[%s7176_s2 + $0xa4] ss:$16 sps:$4 sm:$0xff]  }
 0x25c   :  { %7612 = vst [vmem:[#allocation6_spill] sm:$0xff] %v5585_v32  ;;  %7613 = vst [vmem:[#allocation7_spill] sm:$0xff] %v5591_v25 }
 0x25d   :  { %1545 = vmatpush1.bf16.msra.mxu0 %v7596_v53  ;;  %1586 = vmatpush1.bf16.msra.mxu1 %v7597_v33  ;;  %v5597_v53 = vld [vmem:[%s7176_s2 + $0xac] ss:$16 sps:$4 sm:$0xff]   ;;  %v5603_v33 = vld [vmem:[%s7176_s2 + $0xa0] ss:$16 sps:$4 sm:$0xff]  }
 0x25e   :  { %1546 = vmatprep.subr.bf16.mxu0 %v7598_v26  ;;  %1587 = vmatprep.subr.bf16.mxu1 %v7599_v15  ;;  %7614 = vst [vmem:[#allocation8_spill] sm:$0xff] %v5597_v53  ;;  %7615 = vst [vmem:[#allocation9_spill] sm:$0xff] %v5603_v33  ;;  %v5609_v26 = vld [vmem:[%s7176_s2 + $0xa8] ss:$16 sps:$4 sm:$0xff]   ;;  %v5615_v15 = vld [vmem:[%s7176_s2 + $0xc4] ss:$16 sps:$4 sm:$0xff]  }
 0x25f   :  { %7616 = vst [vmem:[#allocation10_spill] sm:$0xff] %v5609_v26  ;;  %7617 = vst [vmem:[#allocation11_spill] sm:$0xff] %v5615_v15 }
 0x261   :  { %1547 = vmatpush1.bf16.msra.mxu0 %v7600_v28  ;;  %1588 = vmatpush1.bf16.msra.mxu1 %v7601_v1  ;;  %v5621_v28 = vld [vmem:[%s7176_s2 + $0xcc] ss:$16 sps:$4 sm:$0xff]   ;;  %v5627_v1 = vld [vmem:[%s7176_s2 + $0xc0] ss:$16 sps:$4 sm:$0xff]  }
 0x262   :  { %1548 = vmatprep.subr.bf16.mxu0 %v7602_v27  ;;  %1589 = vmatprep.subr.bf16.mxu1 %v7603_v6  ;;  %7618 = vst [vmem:[#allocation12_spill] sm:$0xff] %v5621_v28  ;;  %7619 = vst [vmem:[#allocation13_spill] sm:$0xff] %v5627_v1  ;;  %v5633_v27 = vld [vmem:[%s7176_s2 + $0xc8] ss:$16 sps:$4 sm:$0xff]   ;;  %v5639_v6 = vld [vmem:[%s7176_s2 + $0xe4] ss:$16 sps:$4 sm:$0xff]  }
 0x263   :  { %7620 = vst [vmem:[#allocation14_spill] sm:$0xff] %v5633_v27  ;;  %7621 = vst [vmem:[#allocation15_spill] sm:$0xff] %v5639_v6 }
 0x265   :  { %v4067_v34 = vpop.eup %4066  ;;  %1549 = vmatpush1.bf16.msra.mxu0 %v7604_v20  ;;  %1590 = vmatpush1.bf16.msra.mxu1 %v7605_v16  ;;  %v5657_v20 = vld [vmem:[%s7176_s2 + $0xe8] ss:$16 sps:$4 sm:$0xff]   ;;  %v5663_v16 = vld [vmem:[%s7177_s5 + $0x4] ss:$16 sps:$4 sm:$0xff]  }
 0x266   :  { %1550 = vmatprep.subr.bf16.mxu0 %v7606_v44  ;;  %1591 = vmatprep.subr.bf16.mxu1 %v7607_v17  ;;  %v1451_v31 = vmul.f32 %v4067_v34, %v4065_v18  ;;  %v5645_v18 = vld [vmem:[%s7176_s2 + $0xec] ss:$16 sps:$4 sm:$0xff]   ;;  %v5651_v34 = vld [vmem:[%s7176_s2 + $0xe0] ss:$16 sps:$4 sm:$0xff]   ;;  %7624 = vst [vmem:[#allocation18_spill] sm:$0xff] %v5657_v20  ;;  %7625 = vst [vmem:[#allocation19_spill] sm:$0xff] %v5663_v16 }
 0x267   :  { %7622 = vst [vmem:[#allocation16_spill] sm:$0xff] %v5645_v18  ;;  %7623 = vst [vmem:[#allocation17_spill] sm:$0xff] %v5651_v34  ;;  %v5669_v44 = vld [vmem:[%s7177_s5 + $0xc] ss:$16 sps:$4 sm:$0xff]   ;;  %v5677_v17 = vld [vmem:[%s7177_s5] ss:$16 sps:$4 sm:$0xff]  }
 0x268   :  { %v5462_v37 = vpack.c.bf16 %v1451_v31, %v1451_v31  ;;  %7626 = vst [vmem:[#allocation20_spill] sm:$0xff] %v5669_v44  ;;  %7627 = vst [vmem:[#allocation21_spill] sm:$0xff] %v5677_v17  ;;  %v5683_v31 = vld [vmem:[%s7177_s5 + $0x8] ss:$16 sps:$4 sm:$0xff]  }
 0x269   :  { %1551 = vmatpush1.bf16.msra.mxu0 %v7608_v22  ;;  %1592 = vmatpush1.bf16.msra.mxu1 %v7609_v36  ;;  %7628 = vst [vmem:[#allocation22_spill] sm:$0xff] %v5683_v31  ;;  %v5689_v22 = vld [vmem:[%s7177_s5 + $0x24] ss:$16 sps:$4 sm:$0xff]   ;;  %v5695_v36 = vld [vmem:[%s7177_s5 + $0x2c] ss:$16 sps:$4 sm:$0xff]  }
 0x26a   :  { %1646 = vmatprep.subr.bf16.mxu0 %v5467_v38  ;;  %1687 = vmatprep.subr.bf16.mxu1 %v5473_v39  ;;  %7629 = vst [vmem:[#allocation23_spill] sm:$0xff] %v5689_v22  ;;  %7630 = vst [vmem:[#allocation24_spill] sm:$0xff] %v5695_v36 }
 0x26c   :  { %1569 = vmatmul.mubr.bf16.vlgmr.msra.gmra.mrb[36].mxu0 %v5462_v37  ;;  %1610 = vmatmul.mubr.bf16.vlgmr.msra.gmra.mrb[36].mxu1 %v5462_v37 }
 0x26d   :  { %1647 = vmatpush1.bf16.msra.mxu0 %v5481_v40  ;;  %1688 = vmatpush1.bf16.msra.mxu1 %v5487_v41 }
 0x26e   :  { %1648 = vmatprep.subr.bf16.mxu0 %v5493_v42  ;;  %1689 = vmatprep.subr.bf16.mxu1 %v5499_v43 }
 0x26f   :  { %1678 = vmatprep.mubr.bf16.mxu0 %v7487_v62  ;;  %1719 = vmatprep.mubr.bf16.mxu1 %v7487_v62 }
 0x271   :  { %1649 = vmatpush1.bf16.msra.mxu0 %v5507_v49  ;;  %1690 = vmatpush1.bf16.msra.mxu1 %v5513_v52 }
 0x272   :  { %1650 = vmatprep.subr.bf16.mxu0 %v5519_v54  ;;  %1691 = vmatprep.subr.bf16.mxu1 %v5525_v55 }
 0x275   :  { %1651 = vmatpush1.bf16.msra.mxu0 %v5531_v56  ;;  %1692 = vmatpush1.bf16.msra.mxu1 %v5537_v57 }
 0x276   :  { %1652 = vmatprep.subr.bf16.mxu0 %v5543_v58  ;;  %1693 = vmatprep.subr.bf16.mxu1 %v5549_v61 }
 0x279   :  { %1653 = vmatpush1.bf16.msra.mxu0 %v5555_v11  ;;  %1694 = vmatpush1.bf16.msra.mxu1 %v5561_v12 }
 0x27a   :  { %1654 = vmatprep.subr.bf16.mxu0 %v5567_v13  ;;  %1695 = vmatprep.subr.bf16.mxu1 %v5573_v24 }
 0x27d   :  { %1655 = vmatpush1.bf16.msra.mxu0 %v5579_v29  ;;  %1696 = vmatpush1.bf16.msra.mxu1 %v5585_v32 }
 0x27e   :  { %1656 = vmatprep.subr.bf16.mxu0 %v5591_v25  ;;  %1697 = vmatprep.subr.bf16.mxu1 %v5597_v53 }
 0x281   :  { %1657 = vmatpush1.bf16.msra.mxu0 %v5603_v33  ;;  %1698 = vmatpush1.bf16.msra.mxu1 %v5609_v26 }
 0x282   :  { %1658 = vmatprep.subr.bf16.mxu0 %v5615_v15  ;;  %1699 = vmatprep.subr.bf16.mxu1 %v5621_v28 }
 0x285   :  { %1659 = vmatpush1.bf16.msra.mxu0 %v5627_v1  ;;  %1700 = vmatpush1.bf16.msra.mxu1 %v5633_v27 }
 0x286   :  { %1660 = vmatprep.subr.bf16.mxu0 %v5639_v6  ;;  %1701 = vmatprep.subr.bf16.mxu1 %v5645_v18 }
 0x289   :  { %1661 = vmatpush1.bf16.msra.mxu0 %v5651_v34  ;;  %1702 = vmatpush1.bf16.msra.mxu1 %v5657_v20 }
 0x28a   :  { %1758 = vmatprep.subr.bf16.mxu0 %v5663_v16  ;;  %1799 = vmatprep.subr.bf16.mxu1 %v5669_v44 }
 0x28c   :  { %1679 = vmatmul.mubr.bf16.vlgmr.msra.gmra.mrb[40].mxu0 %v5462_v37  ;;  %1720 = vmatmul.mubr.bf16.vlgmr.msra.gmra.mrb[40].mxu1 %v5462_v37  ;;  %v5703_v37 = vld [vmem:[%s7177_s5 + $0x20] ss:$16 sps:$4 sm:$0xff]  }
 0x28d   :  { %1759 = vmatpush1.bf16.msra.mxu0 %v5677_v17  ;;  %1800 = vmatpush1.bf16.msra.mxu1 %v5683_v31  ;;  %7631 = vst [vmem:[#allocation25_spill] sm:$0xff] %v5703_v37  ;;  %v5721_v31 = vld [vmem:[%s7177_s5 + $0x4c] ss:$16 sps:$4 sm:$0xff]  }
 0x28e   :  { %1760 = vmatprep.subr.bf16.mxu0 %v5689_v22  ;;  %1801 = vmatprep.subr.bf16.mxu1 %v5695_v36  ;;  %v5709_v22 = vld [vmem:[%s7177_s5 + $0x28] ss:$16 sps:$4 sm:$0xff]   ;;  %v5715_v36 = vld [vmem:[%s7177_s5 + $0x44] ss:$16 sps:$4 sm:$0xff]   ;;  %7634 = vst [vmem:[#allocation28_spill] sm:$0xff] %v5721_v31 }
 0x28f   :  { %1790 = vmatprep.mubr.bf16.mxu0 %v7487_v62  ;;  %1831 = vmatprep.mubr.bf16.mxu1 %v7487_v62  ;;  %7632 = vst [vmem:[#allocation26_spill] sm:$0xff] %v5709_v22  ;;  %7633 = vst [vmem:[#allocation27_spill] sm:$0xff] %v5715_v36 }
 0x291   :  { %1761 = vmatpush1.bf16.msra.mxu0 %v5703_v37  ;;  %1802 = vmatpush1.bf16.msra.mxu1 %v5709_v22  ;;  %v5727_v37 = vld [vmem:[%s7177_s5 + $0x40] ss:$16 sps:$4 sm:$0xff]   ;;  %v5733_v22 = vld [vmem:[%s7177_s5 + $0x48] ss:$16 sps:$4 sm:$0xff]  }
 0x292   :  { %1762 = vmatprep.subr.bf16.mxu0 %v5715_v36  ;;  %1803 = vmatprep.subr.bf16.mxu1 %v5721_v31  ;;  %7635 = vst [vmem:[#allocation29_spill] sm:$0xff] %v5727_v37  ;;  %7636 = vst [vmem:[#allocation60_spill] sm:$0xff] %v5733_v22  ;;  %v5739_v36 = vld [vmem:[%s7177_s5 + $0x64] ss:$16 sps:$4 sm:$0xff]   ;;  %v5745_v31 = vld [vmem:[%s7177_s5 + $0x6c] ss:$16 sps:$4 sm:$0xff]  }
 0x293   :  { %7637 = vst [vmem:[#allocation61_spill] sm:$0xff] %v5739_v36  ;;  %7638 = vst [vmem:[#allocation62_spill] sm:$0xff] %v5745_v31 }
 0x295   :  { %1763 = vmatpush1.bf16.msra.mxu0 %v5727_v37  ;;  %1804 = vmatpush1.bf16.msra.mxu1 %v5733_v22  ;;  %v5751_v37 = vld [vmem:[%s7177_s5 + $0x60] ss:$16 sps:$4 sm:$0xff]   ;;  %v5757_v22 = vld [vmem:[%s7177_s5 + $0x68] ss:$16 sps:$4 sm:$0xff]  }
 0x296   :  { %1764 = vmatprep.subr.bf16.mxu0 %v5739_v36  ;;  %1805 = vmatprep.subr.bf16.mxu1 %v5745_v31  ;;  %7639 = vst [vmem:[#allocation63_spill] sm:$0xff] %v5751_v37  ;;  %7640 = vst [vmem:[#allocation64_spill] sm:$0xff] %v5757_v22 }
 0x299   :  { %1765 = vmatpush1.bf16.msra.mxu0 %v5751_v37  ;;  %1806 = vmatpush1.bf16.msra.mxu1 %v5757_v22 }
 0x29a   :  { %1766 = vmatprep.subr.bf16.mxu0 %v7553_v45  ;;  %1807 = vmatprep.subr.bf16.mxu1 %v7554_v46 }
 0x29d   :  { %1767 = vmatpush1.bf16.msra.mxu0 %v7555_v47  ;;  %1808 = vmatpush1.bf16.msra.mxu1 %v7556_v48 }
 0x29e   :  { %1768 = vmatprep.subr.bf16.mxu0 %v7557_v50  ;;  %1809 = vmatprep.subr.bf16.mxu1 %v7558_v51 }
 0x2a1   :  { %1769 = vmatpush1.bf16.msra.mxu0 %v7559_v59  ;;  %1810 = vmatpush1.bf16.msra.mxu1 %v7560_v60 }
 0x2a2   :  { %1770 = vmatprep.subr.bf16.mxu0 %v7561_v63  ;;  %1811 = vmatprep.subr.bf16.mxu1 %v7562_v0 }
 0x2a5   :  { %1771 = vmatpush1.bf16.msra.mxu0 %v7563_v2  ;;  %1812 = vmatpush1.bf16.msra.mxu1 %v7564_v3 }
 0x2a6   :  { %1772 = vmatprep.subr.bf16.mxu0 %v7565_v4  ;;  %1813 = vmatprep.subr.bf16.mxu1 %v7566_v5 }
 0x2a9   :  { %1773 = vmatpush1.bf16.msra.mxu0 %v7567_v7  ;;  %1814 = vmatpush1.bf16.msra.mxu1 %v7568_v8 }
 0x2aa   :  { %1840 = vmatprep.subr.bf16.mxu0 %v7569_v9  ;;  %1881 = vmatprep.subr.bf16.mxu1 %v7570_v10 }
 0x31f   :  { %v1488_v45 = vpop.f32.mrb[32].mxu0  ;;  %v1529_v46 = vpop.f32.mrb[32].mxu1 }
 0x320   :  { %v1490_v47 = vpop.f32.mrb[33].mxu0  ;;  %v1531_v48 = vpop.f32.mrb[33].mxu1 }
 0x321   :  { %v1492_v50 = vpop.f32.mrb[34].mxu0  ;;  %v1533_v51 = vpop.f32.mrb[34].mxu1 }
 0x322   :  { %v1493_v59 = vpop.f32.mrb[35].mxu0  ;;  %v1534_v60 = vpop.f32.mrb[35].mxu1 }
 0x33f   :  { %v1570_v63 = vpop.f32.mrb[36].mxu0  ;;  %v1611_v0 = vpop.f32.mrb[36].mxu1 }
 0x340   :  { %v1571_v2 = vadd.f32 %v1570_v63, %v1488_v45  ;;  %v1612_v3 = vadd.f32 %v1611_v0, %v1529_v46  ;;  %v1572_v4 = vpop.f32.mrb[37].mxu0  ;;  %v1613_v5 = vpop.f32.mrb[37].mxu1 }
 0x341   :  { %v1573_v7 = vadd.f32 %v1572_v4, %v1490_v47  ;;  %v1614_v8 = vadd.f32 %v1613_v5, %v1531_v48  ;;  %v1574_v22 = vpop.f32.mrb[38].mxu0  ;;  %v1615_v9 = vpop.f32.mrb[38].mxu1 }
 0x342   :  { %v1618_v10 = vadd.f32 %v1571_v2, %v5401_v14  ;;  %v1575_v37 = vpop.f32.mrb[39].mxu0  ;;  %v1616_v31 = vpop.f32.mrb[39].mxu1  ;;  %v1620_v46 = vadd.f32 %v1612_v3, %v5416_v21  ;;  %v7642_v9 = vld [vmem:[#allocation66_spill] sm:$0xff] }
 0x343   :  { %v1619_v36 = vadd.f32 %v1573_v7, %v5405_v23  ;;  %v1621_v59 = vadd.f32 %v1614_v8, %v5411_v35  ;;  %v7641_v8 = vld [vmem:[#allocation65_spill] sm:$0xff] }
 0x344   :  { %v3735_v50 = vmul.f32 -1.442695, %v1618_v10 }
 0x345   :  { %v3736_v51 = vmul.f32 -1.442695, %v1619_v36  ;;  %v3737_v45 = vmul.f32 -1.442695, %v1621_v59 }
 0x346   :  { %4068 = vpow2.f32 %v3735_v50 }
 0x347   :  { %4070 = vpow2.f32 %v3736_v51 }
 0x348   :  { %4072 = vpow2.f32 %v3737_v45  ;;  %v7643_v45 = vld [vmem:[#allocation67_spill] sm:$0xff] }
 0x349   :  { %4074 = vtanh.f32 %v1620_v46 }
 0x350   :  { %v4069_v60 = vpop.eup %4068 }
 0x351   :  { %v4071_v47 = vpop.eup %4070  ;;  %v1625_v48 = vadd.f32 1.0, %v4069_v60  ;;  %v7644_v60 = vld [vmem:[#allocation68_spill] sm:$0xff] }
 0x352   :  { %v1631_v22 = vadd.f32 1.0, %v4071_v47  ;;  %v4073_v31 = vpop.eup %4072 }
 0x353   :  { %4076 = vrcp.f32 %v1625_v48  ;;  %v4075_v37 = vpop.eup %4074  ;;  %v1638_v2 = vadd.f32 1.0, %v4073_v31 }
 0x354   :  { %4078 = vrcp.f32 %v1631_v22 }
 0x355   :  { %4080 = vrcp.f32 %v1638_v2  ;;  %v5793_v2 = vld [vmem:[%s7178_s4] ss:$16 sps:$4 sm:$0xff]  }
 0x35d   :  { %v4077_v63 = vpop.eup %4076 }
 0x35e   :  { %v4079_v0 = vpop.eup %4078  ;;  %v1642_v36 = vmul.f32 %v4077_v63, %v4075_v37 }
 0x35f   :  { %v1641_v4 = vmul.f32 %v4079_v0, %v5421_v30  ;;  %v1680_v5 = vpop.f32.mrb[40].mxu0  ;;  %v1721_v7 = vpop.f32.mrb[40].mxu1 }
 0x360   :  { %v1728_v3 = vadd.f32 %v1680_v5, %v7641_v8  ;;  %v1730_v10 = vadd.f32 %v1721_v7, %v7642_v9  ;;  %v1682_v50 = vpop.f32.mrb[41].mxu0  ;;  %v1723_v51 = vpop.f32.mrb[41].mxu1 }
 0x361   :  { %v5785_v59 = vadd.f32 %v1642_v36, %v1641_v4  ;;  %v1729_v46 = vadd.f32 %v1682_v50, %v7643_v45  ;;  %v1731_v47 = vadd.f32 %v1723_v51, %v7644_v60  ;;  %v1684_v48 = vpop.f32.mrb[42].mxu0  ;;  %v1725_v22 = vpop.f32.mrb[42].mxu1  ;;  %v5811_v45 = vld [vmem:[%s7178_s4 + $0x2c] ss:$16 sps:$4 sm:$0xff]   ;;  %v5825_v60 = vld [vmem:[%s7178_s4 + $0x28] ss:$16 sps:$4 sm:$0xff]  }
 0x362   :  { %v3738_v31 = vmul.f32 -1.442695, %v1728_v3  ;;  %v1685_v37 = vpop.f32.mrb[43].mxu0  ;;  %v1726_v30 = vpop.f32.mrb[43].mxu1  ;;  %v5799_v3 = vld [vmem:[%s7178_s4 + $0x8] ss:$16 sps:$4 sm:$0xff]  }
 0x363   :  { %v3739_v63 = vmul.f32 -1.442695, %v1729_v46  ;;  %4082 = vtanh.f32 %v5785_v59  ;;  %v3740_v0 = vmul.f32 -1.442695, %v1731_v47  ;;  %v4081_v5 = vpop.eup %4080  ;;  %v5819_v46 = vld [vmem:[%s7178_s4 + $0x20] ss:$16 sps:$4 sm:$0xff]  }
 0x364   :  { %4084 = vpow2.f32 %v3738_v31  ;;  %v5831_v47 = vld [vmem:[%s7178_s4 + $0x44] ss:$16 sps:$4 sm:$0xff]   ;;  %v5837_v48 = vld [vmem:[%s7178_s4 + $0x4c] ss:$16 sps:$4 sm:$0xff]   ;;  %v5843_v30 = vld [vmem:[%s7178_s4 + $0x40] ss:$16 sps:$4 sm:$0xff]  }
 0x365   :  { %4086 = vpow2.f32 %v3739_v63  ;;  %v5849_v63 = vld [vmem:[%s7178_s4 + $0x48] ss:$16 sps:$4 sm:$0xff]  }
 0x366   :  { %4088 = vpow2.f32 %v3740_v0 }
 0x367   :  { %4090 = vtanh.f32 %v1730_v10  ;;  %v5805_v10 = vld [vmem:[%s7178_s4 + $0x24] ss:$16 sps:$4 sm:$0xff]  }
 0x36d   :  { %v4083_v7 = vpop.eup %4082 }
 0x36e   :  { %v4085_v36 = vpop.eup %4084  ;;  %v1645_v4 = vmul.f32 %v4083_v7, %v4081_v5 }
 0x36f   :  { %v4087_v8 = vpop.eup %4086  ;;  %v1735_v9 = vadd.f32 1.0, %v4085_v36  ;;  %v5855_v36 = vld [vmem:[%s7178_s4 + $0x64] ss:$16 sps:$4 sm:$0xff]  }
 0x370   :  { %v1741_v50 = vadd.f32 1.0, %v4087_v8  ;;  %v1757_v51 = vpack.c.bf16 %v1645_v4, %v1645_v4  ;;  %v4089_v22 = vpop.eup %4088  ;;  %v5861_v4 = vld [vmem:[%s7178_s4 + $0x6c] ss:$16 sps:$4 sm:$0xff]  }
 0x371   :  { %4092 = vrcp.f32 %v1735_v9  ;;  %v4091_v31 = vpop.eup %4090  ;;  %v1748_v7 = vadd.f32 1.0, %v4089_v22  ;;  %v5888_v22 = vld [vmem:[%s7178_s4 + $0x8c] ss:$16 sps:$4 sm:$0xff]  }
 0x372   :  { %4094 = vrcp.f32 %v1741_v50  ;;  %1791 = vmatmul.mubr.bf16.vlgmr.msra.gmra.mrb[44].mxu0 %v1757_v51  ;;  %1832 = vmatmul.mubr.bf16.vlgmr.msra.gmra.mrb[44].mxu1 %v1757_v51  ;;  %v5870_v50 = vld [vmem:[%s7178_s4 + $0x60] ss:$16 sps:$4 sm:$0xff]   ;;  %v5876_v51 = vld [vmem:[%s7178_s4 + $0x68] ss:$16 sps:$4 sm:$0xff]   ;;  %7645 = vst [vmem:[#allocation30_spill] sm:$0xff] %v5888_v22 }
 0x373   :  { %1841 = vmatpush1.bf16.msra.mxu0 %v5793_v2  ;;  %1882 = vmatpush1.bf16.msra.mxu1 %v5799_v3  ;;  %4096 = vrcp.f32 %v1748_v7  ;;  %v5919_v7 = vld [vmem:[%s7178_s4 + $0xa0] ss:$16 sps:$4 sm:$0xff]  }
 0x374   :  { %1842 = vmatprep.subr.bf16.mxu0 %v5805_v10  ;;  %1883 = vmatprep.subr.bf16.mxu1 %v5811_v45  ;;  %7650 = vst [vmem:[#allocation35_spill] sm:$0xff] %v5919_v7 }
 0x375   :  { %1872 = vmatprep.mubr.bf16.mxu0 %v7487_v62  ;;  %1913 = vmatprep.mubr.bf16.mxu1 %v7487_v62 }
 0x377   :  { %1843 = vmatpush1.bf16.msra.mxu0 %v5819_v46  ;;  %1884 = vmatpush1.bf16.msra.mxu1 %v5825_v60 }
 0x378   :  { %1844 = vmatprep.subr.bf16.mxu0 %v5831_v47  ;;  %1885 = vmatprep.subr.bf16.mxu1 %v5837_v48 }
 0x37b   :  { %v4093_v37 = vpop.eup %4092  ;;  %1845 = vmatpush1.bf16.msra.mxu0 %v5843_v30  ;;  %1886 = vmatpush1.bf16.msra.mxu1 %v5849_v63 }
 0x37c   :  { %v4095_v0 = vpop.eup %4094  ;;  %v1752_v5 = vmul.f32 %v4093_v37, %v4091_v31  ;;  %1846 = vmatprep.subr.bf16.mxu0 %v5855_v36  ;;  %1887 = vmatprep.subr.bf16.mxu1 %v5861_v4  ;;  %v5895_v31 = vld [vmem:[%s7178_s4 + $0x80] ss:$16 sps:$4 sm:$0xff]   ;;  %v5901_v37 = vld [vmem:[%s7178_s4 + $0x88] ss:$16 sps:$4 sm:$0xff]  }
 0x37d   :  { %v1751_v8 = vmul.f32 %v4095_v0, %v5441_v19  ;;  %v5882_v19 = vld [vmem:[%s7178_s4 + $0x84] ss:$16 sps:$4 sm:$0xff]   ;;  %7646 = vst [vmem:[#allocation31_spill] sm:$0xff] %v5895_v31  ;;  %7647 = vst [vmem:[#allocation32_spill] sm:$0xff] %v5901_v37 }
 0x37e   :  { %v5907_v0 = vld [vmem:[%s7178_s4 + $0xa4] ss:$16 sps:$4 sm:$0xff]  }
 0x37f   :  { %v5865_v9 = vadd.f32 %v1752_v5, %v1751_v8  ;;  %1847 = vmatpush1.bf16.msra.mxu0 %v5870_v50  ;;  %1888 = vmatpush1.bf16.msra.mxu1 %v5876_v51  ;;  %7648 = vst [vmem:[#allocation33_spill] sm:$0xff] %v5907_v0  ;;  %v5913_v5 = vld [vmem:[%s7178_s4 + $0xac] ss:$16 sps:$4 sm:$0xff]   ;;  %v5925_v8 = vld [vmem:[%s7178_s4 + $0xa8] ss:$16 sps:$4 sm:$0xff]  }
 0x380   :  { %1848 = vmatprep.subr.bf16.mxu0 %v5882_v19  ;;  %1889 = vmatprep.subr.bf16.mxu1 %v5888_v22  ;;  %7649 = vst [vmem:[#allocation34_spill] sm:$0xff] %v5913_v5  ;;  %7651 = vst [vmem:[#allocation36_spill] sm:$0xff] %v5925_v8 }
 0x381   :  { %4098 = vtanh.f32 %v5865_v9 }
 0x383   :  { %1849 = vmatpush1.bf16.msra.mxu0 %v5895_v31  ;;  %1890 = vmatpush1.bf16.msra.mxu1 %v5901_v37  ;;  %v5961_v31 = vld [vmem:[%s7178_s4 + $0xec] ss:$16 sps:$4 sm:$0xff]  }
 0x384   :  { %1850 = vmatprep.subr.bf16.mxu0 %v5907_v0  ;;  %1891 = vmatprep.subr.bf16.mxu1 %v5913_v5  ;;  %v5931_v0 = vld [vmem:[%s7178_s4 + $0xc4] ss:$16 sps:$4 sm:$0xff]   ;;  %v5937_v5 = vld [vmem:[%s7178_s4 + $0xcc] ss:$16 sps:$4 sm:$0xff]  }
 0x385   :  { %7652 = vst [vmem:[#allocation37_spill] sm:$0xff] %v5931_v0  ;;  %7653 = vst [vmem:[#allocation38_spill] sm:$0xff] %v5937_v5 }
 0x387   :  { %1851 = vmatpush1.bf16.msra.mxu0 %v5919_v7  ;;  %1892 = vmatpush1.bf16.msra.mxu1 %v5925_v8  ;;  %v4097_v7 = vpop.eup %4096  ;;  %v5943_v8 = vld [vmem:[%s7178_s4 + $0xc0] ss:$16 sps:$4 sm:$0xff]  }
 0x388   :  { %1852 = vmatprep.subr.bf16.mxu0 %v5931_v0  ;;  %1893 = vmatprep.subr.bf16.mxu1 %v5937_v5  ;;  %7654 = vst [vmem:[#allocation39_spill] sm:$0xff] %v5943_v8  ;;  %v5949_v0 = vld [vmem:[%s7178_s4 + $0xc8] ss:$16 sps:$4 sm:$0xff]   ;;  %v5955_v5 = vld [vmem:[%s7178_s4 + $0xe4] ss:$16 sps:$4 sm:$0xff]  }
 0x389   :  { %7655 = vst [vmem:[#allocation40_spill] sm:$0xff] %v5949_v0  ;;  %7656 = vst [vmem:[#allocation41_spill] sm:$0xff] %v5955_v5 }
 0x38b   :  { %v4099_v37 = vpop.eup %4098  ;;  %1853 = vmatpush1.bf16.msra.mxu0 %v5943_v8  ;;  %1894 = vmatpush1.bf16.msra.mxu1 %v5949_v0  ;;  %v5967_v0 = vld [vmem:[%s7178_s4 + $0xe0] ss:$16 sps:$4 sm:$0xff]  }
 0x38c   :  { %1854 = vmatprep.subr.bf16.mxu0 %v5955_v5  ;;  %1895 = vmatprep.subr.bf16.mxu1 %v5961_v31  ;;  %v1755_v8 = vmul.f32 %v4099_v37, %v4097_v7  ;;  %v5973_v5 = vld [vmem:[%s7178_s4 + $0xe8] ss:$16 sps:$4 sm:$0xff]   ;;  %v7657_v37 = vld [vmem:[#allocation22_spill] sm:$0xff] }
 0x38d   :  { %v7658_v7 = vld [vmem:[#allocation23_spill] sm:$0xff] }
 0x38e   :  { %v1756_v22 = vpack.c.bf16 %v1755_v8, %v1755_v8  ;;  %v7659_v8 = vld [vmem:[#allocation24_spill] sm:$0xff] }
 0x38f   :  { %1855 = vmatpush1.bf16.msra.mxu0 %v5967_v0  ;;  %1896 = vmatpush1.bf16.msra.mxu1 %v5973_v5 }
 0x390   :  { %1950 = vmatprep.subr.bf16.mxu0 %v5467_v38  ;;  %1991 = vmatprep.subr.bf16.mxu1 %v5473_v39 }
 0x392   :  { %1873 = vmatmul.mubr.bf16.vlgmr.msra.gmra.mrb[48].mxu0 %v1756_v22  ;;  %1914 = vmatmul.mubr.bf16.vlgmr.msra.gmra.mrb[48].mxu1 %v1756_v22 }
 0x393   :  { %1951 = vmatpush1.bf16.msra.mxu0 %v5481_v40  ;;  %1992 = vmatpush1.bf16.msra.mxu1 %v5487_v41 }
 0x394   :  { %1952 = vmatprep.subr.bf16.mxu0 %v5493_v42  ;;  %1993 = vmatprep.subr.bf16.mxu1 %v5499_v43 }
 0x395   :  { %1982 = vmatprep.mubr.bf16.mxu0 %v7487_v62  ;;  %2023 = vmatprep.mubr.bf16.mxu1 %v7487_v62 }
 0x397   :  { %1953 = vmatpush1.bf16.msra.mxu0 %v5507_v49  ;;  %1994 = vmatpush1.bf16.msra.mxu1 %v5513_v52 }
 0x398   :  { %1954 = vmatprep.subr.bf16.mxu0 %v5519_v54  ;;  %1995 = vmatprep.subr.bf16.mxu1 %v5525_v55 }
 0x39b   :  { %1955 = vmatpush1.bf16.msra.mxu0 %v5531_v56  ;;  %1996 = vmatpush1.bf16.msra.mxu1 %v5537_v57 }
 0x39c   :  { %1956 = vmatprep.subr.bf16.mxu0 %v5543_v58  ;;  %1997 = vmatprep.subr.bf16.mxu1 %v5549_v61 }
 0x39f   :  { %1957 = vmatpush1.bf16.msra.mxu0 %v5555_v11  ;;  %1998 = vmatpush1.bf16.msra.mxu1 %v5561_v12 }
 0x3a0   :  { %1958 = vmatprep.subr.bf16.mxu0 %v5567_v13  ;;  %1999 = vmatprep.subr.bf16.mxu1 %v5573_v24 }
 0x3a3   :  { %1959 = vmatpush1.bf16.msra.mxu0 %v5579_v29  ;;  %2000 = vmatpush1.bf16.msra.mxu1 %v5585_v32 }
 0x3a4   :  { %1960 = vmatprep.subr.bf16.mxu0 %v5591_v25  ;;  %2001 = vmatprep.subr.bf16.mxu1 %v5597_v53 }
 0x3a7   :  { %1961 = vmatpush1.bf16.msra.mxu0 %v5603_v33  ;;  %2002 = vmatpush1.bf16.msra.mxu1 %v5609_v26 }
 0x3a8   :  { %1962 = vmatprep.subr.bf16.mxu0 %v5615_v15  ;;  %2003 = vmatprep.subr.bf16.mxu1 %v5621_v28 }
 0x3ab   :  { %1963 = vmatpush1.bf16.msra.mxu0 %v5627_v1  ;;  %2004 = vmatpush1.bf16.msra.mxu1 %v5633_v27 }
 0x3ac   :  { %1964 = vmatprep.subr.bf16.mxu0 %v5639_v6  ;;  %2005 = vmatprep.subr.bf16.mxu1 %v5645_v18  ;;  %v7669_v18 = vld [vmem:[#allocation64_spill] sm:$0xff] }
 0x3af   :  { %1965 = vmatpush1.bf16.msra.mxu0 %v5651_v34  ;;  %2006 = vmatpush1.bf16.msra.mxu1 %v5657_v20  ;;  %v7660_v34 = vld [vmem:[#allocation25_spill] sm:$0xff]  ;;  %v7661_v20 = vld [vmem:[#allocation26_spill] sm:$0xff] }
 0x3b0   :  { %2062 = vmatprep.subr.bf16.mxu0 %v5663_v16  ;;  %2103 = vmatprep.subr.bf16.mxu1 %v5669_v44  ;;  %v7662_v16 = vld [vmem:[#allocation27_spill] sm:$0xff]  ;;  %v7663_v44 = vld [vmem:[#allocation28_spill] sm:$0xff] }
 0x3b2   :  { %1983 = vmatmul.mubr.bf16.vlgmr.msra.gmra.mrb[52].mxu0 %v1756_v22  ;;  %2024 = vmatmul.mubr.bf16.vlgmr.msra.gmra.mrb[52].mxu1 %v1756_v22  ;;  %v7664_v22 = vld [vmem:[#allocation29_spill] sm:$0xff] }
 0x3b3   :  { %2063 = vmatpush1.bf16.msra.mxu0 %v5677_v17  ;;  %2104 = vmatpush1.bf16.msra.mxu1 %v7657_v37  ;;  %v7665_v17 = vld [vmem:[#allocation60_spill] sm:$0xff]  ;;  %v7666_v37 = vld [vmem:[#allocation61_spill] sm:$0xff] }
 0x3b4   :  { %2064 = vmatprep.subr.bf16.mxu0 %v7658_v7  ;;  %2105 = vmatprep.subr.bf16.mxu1 %v7659_v8  ;;  %v7667_v7 = vld [vmem:[#allocation62_spill] sm:$0xff]  ;;  %v7668_v8 = vld [vmem:[#allocation63_spill] sm:$0xff] }
 0x3b5   :  { %2094 = vmatprep.mubr.bf16.mxu0 %v7487_v62  ;;  %2135 = vmatprep.mubr.bf16.mxu1 %v7487_v62 }
 0x3b7   :  { %2065 = vmatpush1.bf16.msra.mxu0 %v7660_v34  ;;  %2106 = vmatpush1.bf16.msra.mxu1 %v7661_v20  ;;  %v6031_v20 = vld [vmem:[%s7177_s5 + $0x84] ss:$16 sps:$4 sm:$0xff]  }
 0x3b8   :  { %2066 = vmatprep.subr.bf16.mxu0 %v7662_v16  ;;  %2107 = vmatprep.subr.bf16.mxu1 %v7663_v44  ;;  %7670 = vst [vmem:[#allocation42_spill] sm:$0xff] %v6031_v20 }
 0x3bb   :  { %2067 = vmatpush1.bf16.msra.mxu0 %v7664_v22  ;;  %2108 = vmatpush1.bf16.msra.mxu1 %v7665_v17  ;;  %v6037_v22 = vld [vmem:[%s7177_s5 + $0x8c] ss:$16 sps:$4 sm:$0xff]  }
 0x3bc   :  { %2068 = vmatprep.subr.bf16.mxu0 %v7666_v37  ;;  %2109 = vmatprep.subr.bf16.mxu1 %v7667_v7  ;;  %7671 = vst [vmem:[#allocation43_spill] sm:$0xff] %v6037_v22 }
 0x3bf   :  { %2069 = vmatpush1.bf16.msra.mxu0 %v7668_v8  ;;  %2110 = vmatpush1.bf16.msra.mxu1 %v7669_v18  ;;  %v6043_v8 = vld [vmem:[%s7177_s5 + $0x80] ss:$16 sps:$4 sm:$0xff]   ;;  %v6049_v18 = vld [vmem:[%s7177_s5 + $0x88] ss:$16 sps:$4 sm:$0xff]  }
 0x3c0   :  { %2070 = vmatprep.subr.bf16.mxu0 %v6031_v20  ;;  %2111 = vmatprep.subr.bf16.mxu1 %v6037_v22  ;;  %7672 = vst [vmem:[#allocation44_spill] sm:$0xff] %v6043_v8  ;;  %7673 = vst [vmem:[#allocation45_spill] sm:$0xff] %v6049_v18  ;;  %v6055_v20 = vld [vmem:[%s7177_s5 + $0xa4] ss:$16 sps:$4 sm:$0xff]   ;;  %v6061_v22 = vld [vmem:[%s7177_s5 + $0xac] ss:$16 sps:$4 sm:$0xff]  }
 0x3c1   :  { %7674 = vst [vmem:[#allocation46_spill] sm:$0xff] %v6055_v20  ;;  %7675 = vst [vmem:[#allocation47_spill] sm:$0xff] %v6061_v22 }
 0x3c3   :  { %2071 = vmatpush1.bf16.msra.mxu0 %v6043_v8  ;;  %2112 = vmatpush1.bf16.msra.mxu1 %v6049_v18  ;;  %v6067_v8 = vld [vmem:[%s7177_s5 + $0xa0] ss:$16 sps:$4 sm:$0xff]   ;;  %v6073_v18 = vld [vmem:[%s7177_s5 + $0xa8] ss:$16 sps:$4 sm:$0xff]  }
 0x3c4   :  { %2072 = vmatprep.subr.bf16.mxu0 %v6055_v20  ;;  %2113 = vmatprep.subr.bf16.mxu1 %v6061_v22  ;;  %7676 = vst [vmem:[#allocation48_spill] sm:$0xff] %v6067_v8  ;;  %7677 = vst [vmem:[#allocation49_spill] sm:$0xff] %v6073_v18  ;;  %v6079_v20 = vld [vmem:[%s7177_s5 + $0xc4] ss:$16 sps:$4 sm:$0xff]   ;;  %v6085_v22 = vld [vmem:[%s7177_s5 + $0xcc] ss:$16 sps:$4 sm:$0xff]  }
 0x3c5   :  { %7678 = vst [vmem:[#allocation50_spill] sm:$0xff] %v6079_v20  ;;  %7679 = vst [vmem:[#allocation51_spill] sm:$0xff] %v6085_v22 }
 0x3c7   :  { %2073 = vmatpush1.bf16.msra.mxu0 %v6067_v8  ;;  %2114 = vmatpush1.bf16.msra.mxu1 %v6073_v18  ;;  %v6091_v8 = vld [vmem:[%s7177_s5 + $0xc0] ss:$16 sps:$4 sm:$0xff]   ;;  %v6097_v18 = vld [vmem:[%s7177_s5 + $0xc8] ss:$16 sps:$4 sm:$0xff]  }
 0x3c8   :  { %2074 = vmatprep.subr.bf16.mxu0 %v6079_v20  ;;  %2115 = vmatprep.subr.bf16.mxu1 %v6085_v22  ;;  %7680 = vst [vmem:[#allocation52_spill] sm:$0xff] %v6091_v8  ;;  %7681 = vst [vmem:[#allocation53_spill] sm:$0xff] %v6097_v18  ;;  %v6103_v20 = vld [vmem:[%s7177_s5 + $0xe4] ss:$16 sps:$4 sm:$0xff]   ;;  %v6109_v22 = vld [vmem:[%s7177_s5 + $0xec] ss:$16 sps:$4 sm:$0xff]  }
 0x3c9   :  { %7682 = vst [vmem:[#allocation54_spill] sm:$0xff] %v6103_v20  ;;  %7683 = vst [vmem:[#allocation55_spill] sm:$0xff] %v6109_v22 }
 0x3cb   :  { %2075 = vmatpush1.bf16.msra.mxu0 %v6091_v8  ;;  %2116 = vmatpush1.bf16.msra.mxu1 %v6097_v18  ;;  %v6115_v8 = vld [vmem:[%s7177_s5 + $0xe0] ss:$16 sps:$4 sm:$0xff]   ;;  %v6121_v18 = vld [vmem:[%s7177_s5 + $0xe8] ss:$16 sps:$4 sm:$0xff]  }
 0x3cc   :  { %2076 = vmatprep.subr.bf16.mxu0 %v6103_v20  ;;  %2117 = vmatprep.subr.bf16.mxu1 %v6109_v22  ;;  %7684 = vst [vmem:[#allocation56_spill] sm:$0xff] %v6115_v8  ;;  %7685 = vst [vmem:[#allocation57_spill] sm:$0xff] %v6121_v18  ;;  %v6127_v20 = vld [vmem:[%s7178_s4 + $0x4] ss:$16 sps:$4 sm:$0xff]   ;;  %v6133_v22 = vld [vmem:[%s7178_s4 + $0xc] ss:$16 sps:$4 sm:$0xff]  }
 0x3cd   :  { %7686 = vst [vmem:[#allocation58_spill] sm:$0xff] %v6127_v20  ;;  %7687 = vst [vmem:[#allocation59_spill] sm:$0xff] %v6133_v22 }
 0x3cf   :  { %2077 = vmatpush1.bf16.msra.mxu0 %v6115_v8  ;;  %2118 = vmatpush1.bf16.msra.mxu1 %v6121_v18 }
 0x3d0   :  { %2144 = vmatprep.subr.bf16.mxu0 %v6127_v20  ;;  %2185 = vmatprep.subr.bf16.mxu1 %v6133_v22 }
 0x445   :  { %v1792_v8 = vpop.f32.mrb[44].mxu0  ;;  %v1833_v7 = vpop.f32.mrb[44].mxu1 }
 0x446   :  { %v1794_v37 = vpop.f32.mrb[45].mxu0  ;;  %v1835_v17 = vpop.f32.mrb[45].mxu1 }
 0x447   :  { %v1796_v44 = vpop.f32.mrb[46].mxu0  ;;  %v1837_v18 = vpop.f32.mrb[46].mxu1 }
 0x448   :  { %v1797_v16 = vpop.f32.mrb[47].mxu0  ;;  %v1838_v34 = vpop.f32.mrb[47].mxu1 }
 0x465   :  { %v1874_v6 = vpop.f32.mrb[48].mxu0  ;;  %v1915_v27 = vpop.f32.mrb[48].mxu1 }
 0x466   :  { %v1875_v1 = vadd.f32 %v1874_v6, %v1792_v8  ;;  %v1916_v28 = vadd.f32 %v1915_v27, %v1833_v7  ;;  %v1876_v20 = vpop.f32.mrb[49].mxu0  ;;  %v1917_v15 = vpop.f32.mrb[49].mxu1  ;;  %v7688_v7 = vld [vmem:[#allocation69_spill] sm:$0xff]  ;;  %v7689_v8 = vld [vmem:[#allocation70_spill] sm:$0xff] }
 0x467   :  { %v1877_v26 = vadd.f32 %v1876_v20, %v1794_v37  ;;  %v1918_v33 = vadd.f32 %v1917_v15, %v1835_v17  ;;  %v1878_v53 = vpop.f32.mrb[50].mxu0  ;;  %v1919_v25 = vpop.f32.mrb[50].mxu1 }
 0x468   :  { %v1922_v22 = vadd.f32 %v1875_v1, %v5401_v14  ;;  %v1879_v32 = vpop.f32.mrb[51].mxu0  ;;  %v1920_v29 = vpop.f32.mrb[51].mxu1  ;;  %v1924_v27 = vadd.f32 %v1916_v28, %v5416_v21 }
 0x469   :  { %v1923_v24 = vadd.f32 %v1877_v26, %v5405_v23  ;;  %v1925_v34 = vadd.f32 %v1918_v33, %v5411_v35 }
 0x46a   :  { %v3741_v44 = vmul.f32 -1.442695, %v1922_v22 }
 0x46b   :  { %v3742_v18 = vmul.f32 -1.442695, %v1923_v24  ;;  %v3743_v6 = vmul.f32 -1.442695, %v1925_v34 }
 0x46c   :  { %4100 = vpow2.f32 %v3741_v44 }
 0x46d   :  { %4102 = vpow2.f32 %v3742_v18 }
 0x46e   :  { %4104 = vpow2.f32 %v3743_v6  ;;  %v7690_v6 = vld [vmem:[#allocation71_spill] sm:$0xff] }
 0x46f   :  { %4106 = vtanh.f32 %v1924_v27 }
 0x476   :  { %v4101_v16 = vpop.eup %4100 }
 0x477   :  { %v4103_v20 = vpop.eup %4102  ;;  %v1929_v15 = vadd.f32 1.0, %v4101_v16  ;;  %v7691_v16 = vld [vmem:[#allocation72_spill] sm:$0xff] }
 0x478   :  { %v1935_v25 = vadd.f32 1.0, %v4103_v20  ;;  %v4105_v29 = vpop.eup %4104 }
 0x479   :  { %4108 = vrcp.f32 %v1929_v15  ;;  %v4107_v32 = vpop.eup %4106  ;;  %v1942_v1 = vadd.f32 1.0, %v4105_v29 }
 0x47a   :  { %4110 = vrcp.f32 %v1935_v25 }
 0x47b   :  { %4112 = vrcp.f32 %v1942_v1 }
 0x483   :  { %v4109_v53 = vpop.eup %4108 }
 0x484   :  { %v4111_v26 = vpop.eup %4110  ;;  %v1946_v24 = vmul.f32 %v4109_v53, %v4107_v32 }
 0x485   :  { %v1945_v17 = vmul.f32 %v4111_v26, %v5785_v59  ;;  %v1984_v33 = vpop.f32.mrb[52].mxu0  ;;  %v2025_v37 = vpop.f32.mrb[52].mxu1 }
 0x486   :  { %v2032_v28 = vadd.f32 %v1984_v33, %v7688_v7  ;;  %v2034_v22 = vadd.f32 %v2025_v37, %v7689_v8  ;;  %v1986_v44 = vpop.f32.mrb[53].mxu0  ;;  %v2027_v18 = vpop.f32.mrb[53].mxu1 }
 0x487   :  { %v6143_v34 = vadd.f32 %v1946_v24, %v1945_v17  ;;  %v2033_v27 = vadd.f32 %v1986_v44, %v7690_v6  ;;  %v2035_v20 = vadd.f32 %v2027_v18, %v7691_v16  ;;  %v1988_v15 = vpop.f32.mrb[54].mxu0  ;;  %v2029_v25 = vpop.f32.mrb[54].mxu1 }
 0x488   :  { %v3744_v29 = vmul.f32 -1.442695, %v2032_v28  ;;  %v1989_v32 = vpop.f32.mrb[55].mxu0  ;;  %v2030_v59 = vpop.f32.mrb[55].mxu1  ;;  %v7692_v25 = vld [vmem:[#allocation30_spill] sm:$0xff] }
 0x489   :  { %v3745_v53 = vmul.f32 -1.442695, %v2033_v27  ;;  %4114 = vtanh.f32 %v6143_v34  ;;  %v3746_v26 = vmul.f32 -1.442695, %v2035_v20  ;;  %v4113_v33 = vpop.eup %4112  ;;  %v7694_v32 = vld [vmem:[#allocation32_spill] sm:$0xff]  ;;  %v7695_v59 = vld [vmem:[#allocation33_spill] sm:$0xff] }
 0x48a   :  { %4116 = vpow2.f32 %v3744_v29  ;;  %v7693_v29 = vld [vmem:[#allocation31_spill] sm:$0xff] }
 0x48b   :  { %4118 = vpow2.f32 %v3745_v53  ;;  %v7697_v53 = vld [vmem:[#allocation35_spill] sm:$0xff] }
 0x48c   :  { %4120 = vpow2.f32 %v3746_v26  ;;  %v7698_v26 = vld [vmem:[#allocation36_spill] sm:$0xff] }
 0x48d   :  { %4122 = vtanh.f32 %v2034_v22 }
 0x493   :  { %v4115_v37 = vpop.eup %4114 }
 0x494   :  { %v4117_v24 = vpop.eup %4116  ;;  %v1949_v17 = vmul.f32 %v4115_v37, %v4113_v33  ;;  %v7699_v33 = vld [vmem:[#allocation37_spill] sm:$0xff]  ;;  %v7700_v37 = vld [vmem:[#allocation38_spill] sm:$0xff] }
 0x495   :  { %v4119_v7 = vpop.eup %4118  ;;  %v2039_v8 = vadd.f32 1.0, %v4117_v24 }
 0x496   :  { %v2045_v44 = vadd.f32 1.0, %v4119_v7  ;;  %v2061_v18 = vpack.c.bf16 %v1949_v17, %v1949_v17  ;;  %v4121_v1 = vpop.eup %4120  ;;  %v7701_v7 = vld [vmem:[#allocation39_spill] sm:$0xff] }
 0x497   :  { %4124 = vrcp.f32 %v2039_v8  ;;  %v4123_v28 = vpop.eup %4122  ;;  %v2052_v16 = vadd.f32 1.0, %v4121_v1  ;;  %v7702_v8 = vld [vmem:[#allocation40_spill] sm:$0xff] }
 0x498   :  { %4126 = vrcp.f32 %v2045_v44  ;;  %2095 = vmatmul.mubr.bf16.vlgmr.msra.gmra.mrb[56].mxu0 %v2061_v18  ;;  %2136 = vmatmul.mubr.bf16.vlgmr.msra.gmra.mrb[56].mxu1 %v2061_v18  ;;  %v7703_v44 = vld [vmem:[#allocation41_spill] sm:$0xff] }
 0x499   :  { %2145 = vmatpush1.bf16.msra.mxu0 %v5793_v2  ;;  %2186 = vmatpush1.bf16.msra.mxu1 %v5799_v3  ;;  %4128 = vrcp.f32 %v2052_v16  ;;  %v7725_v16 = vld [vmem:[#allocation25_spill] sm:$0xff] }
 0x49a   :  { %2146 = vmatprep.subr.bf16.mxu0 %v5805_v10  ;;  %2187 = vmatprep.subr.bf16.mxu1 %v5811_v45 }
 0x49b   :  { %2176 = vmatprep.mubr.bf16.mxu0 %v7487_v62  ;;  %2217 = vmatprep.mubr.bf16.mxu1 %v7487_v62 }
 0x49d   :  { %2147 = vmatpush1.bf16.msra.mxu0 %v5819_v46  ;;  %2188 = vmatpush1.bf16.msra.mxu1 %v5825_v60 }
 0x49e   :  { %2148 = vmatprep.subr.bf16.mxu0 %v5831_v47  ;;  %2189 = vmatprep.subr.bf16.mxu1 %v5837_v48 }
 0x4a1   :  { %v4125_v22 = vpop.eup %4124  ;;  %2149 = vmatpush1.bf16.msra.mxu0 %v5843_v30  ;;  %2190 = vmatpush1.bf16.msra.mxu1 %v5849_v63 }
 0x4a2   :  { %v4127_v6 = vpop.eup %4126  ;;  %v2056_v27 = vmul.f32 %v4125_v22, %v4123_v28  ;;  %2150 = vmatprep.subr.bf16.mxu0 %v5855_v36  ;;  %2191 = vmatprep.subr.bf16.mxu1 %v5861_v4  ;;  %v7721_v28 = vld [vmem:[#allocation21_spill] sm:$0xff]  ;;  %v7722_v22 = vld [vmem:[#allocation22_spill] sm:$0xff] }
 0x4a3   :  { %v2055_v20 = vmul.f32 %v4127_v6, %v5865_v9  ;;  %v7696_v9 = vld [vmem:[#allocation34_spill] sm:$0xff]  ;;  %v4129_v24 = vpop.eup %4128  ;;  %v7723_v6 = vld [vmem:[#allocation23_spill] sm:$0xff] }
 0x4a5   :  { %v6163_v15 = vadd.f32 %v2056_v27, %v2055_v20  ;;  %2151 = vmatpush1.bf16.msra.mxu0 %v5870_v50  ;;  %2192 = vmatpush1.bf16.msra.mxu1 %v5876_v51  ;;  %v7724_v27 = vld [vmem:[#allocation24_spill] sm:$0xff]  ;;  %v7726_v20 = vld [vmem:[#allocation26_spill] sm:$0xff] }
 0x4a6   :  { %2152 = vmatprep.subr.bf16.mxu0 %v5882_v19  ;;  %2193 = vmatprep.subr.bf16.mxu1 %v7692_v25 }
 0x4a7   :  { %4130 = vtanh.f32 %v6163_v15 }
 0x4a9   :  { %2153 = vmatpush1.bf16.msra.mxu0 %v7693_v29  ;;  %2194 = vmatpush1.bf16.msra.mxu1 %v7694_v32 }
 0x4aa   :  { %2154 = vmatprep.subr.bf16.mxu0 %v7695_v59  ;;  %2195 = vmatprep.subr.bf16.mxu1 %v7696_v9 }
 0x4ad   :  { %2155 = vmatpush1.bf16.msra.mxu0 %v7697_v53  ;;  %2196 = vmatpush1.bf16.msra.mxu1 %v7698_v26 }
 0x4ae   :  { %2156 = vmatprep.subr.bf16.mxu0 %v7699_v33  ;;  %2197 = vmatprep.subr.bf16.mxu1 %v7700_v37 }
 0x4b1   :  { %v4131_v17 = vpop.eup %4130  ;;  %2157 = vmatpush1.bf16.msra.mxu0 %v7701_v7  ;;  %2198 = vmatpush1.bf16.msra.mxu1 %v7702_v8 }
 0x4b2   :  { %2158 = vmatprep.subr.bf16.mxu0 %v7703_v44  ;;  %2199 = vmatprep.subr.bf16.mxu1 %v5961_v31  ;;  %v2059_v18 = vmul.f32 %v4131_v17, %v4129_v24  ;;  %v7727_v24 = vld [vmem:[#allocation27_spill] sm:$0xff]  ;;  %v7728_v17 = vld [vmem:[#allocation28_spill] sm:$0xff] }
 0x4b4   :  { %v2060_v1 = vpack.c.bf16 %v2059_v18, %v2059_v18  ;;  %v7729_v18 = vld [vmem:[#allocation29_spill] sm:$0xff] }
 0x4b5   :  { %2159 = vmatpush1.bf16.msra.mxu0 %v5967_v0  ;;  %2200 = vmatpush1.bf16.msra.mxu1 %v5973_v5 }
 0x4b6   :  { %2254 = vmatprep.subr.bf16.mxu0 %v5467_v38  ;;  %2295 = vmatprep.subr.bf16.mxu1 %v5473_v39  ;;  %v7704_v38 = vld [vmem:[#allocation4_spill] sm:$0xff]  ;;  %v7705_v39 = vld [vmem:[#allocation5_spill] sm:$0xff] }
 0x4b8   :  { %2177 = vmatmul.mubr.bf16.vlgmr.msra.gmra.mrb[60].mxu0 %v2060_v1  ;;  %2218 = vmatmul.mubr.bf16.vlgmr.msra.gmra.mrb[60].mxu1 %v2060_v1 }
 0x4b9   :  { %2255 = vmatpush1.bf16.msra.mxu0 %v5481_v40  ;;  %2296 = vmatpush1.bf16.msra.mxu1 %v5487_v41  ;;  %v7706_v40 = vld [vmem:[#allocation6_spill] sm:$0xff]  ;;  %v7707_v41 = vld [vmem:[#allocation7_spill] sm:$0xff] }
 0x4ba   :  { %2256 = vmatprep.subr.bf16.mxu0 %v5493_v42  ;;  %2297 = vmatprep.subr.bf16.mxu1 %v5499_v43  ;;  %v7708_v42 = vld [vmem:[#allocation8_spill] sm:$0xff]  ;;  %v7709_v43 = vld [vmem:[#allocation9_spill] sm:$0xff] }
 0x4bb   :  { %2286 = vmatprep.mubr.bf16.mxu0 %v7487_v62  ;;  %2327 = vmatprep.mubr.bf16.mxu1 %v7487_v62 }
 0x4bd   :  { %2257 = vmatpush1.bf16.msra.mxu0 %v5507_v49  ;;  %2298 = vmatpush1.bf16.msra.mxu1 %v5513_v52  ;;  %v7710_v49 = vld [vmem:[#allocation10_spill] sm:$0xff]  ;;  %v7711_v52 = vld [vmem:[#allocation11_spill] sm:$0xff] }
 0x4be   :  { %2258 = vmatprep.subr.bf16.mxu0 %v5519_v54  ;;  %2299 = vmatprep.subr.bf16.mxu1 %v5525_v55  ;;  %v7712_v54 = vld [vmem:[#allocation12_spill] sm:$0xff]  ;;  %v7713_v55 = vld [vmem:[#allocation13_spill] sm:$0xff] }
 0x4c1   :  { %2259 = vmatpush1.bf16.msra.mxu0 %v5531_v56  ;;  %2300 = vmatpush1.bf16.msra.mxu1 %v5537_v57  ;;  %v7714_v56 = vld [vmem:[#allocation14_spill] sm:$0xff]  ;;  %v7715_v57 = vld [vmem:[#allocation15_spill] sm:$0xff] }
 0x4c2   :  { %2260 = vmatprep.subr.bf16.mxu0 %v5543_v58  ;;  %2301 = vmatprep.subr.bf16.mxu1 %v5549_v61  ;;  %v7716_v58 = vld [vmem:[#allocation16_spill] sm:$0xff]  ;;  %v7717_v61 = vld [vmem:[#allocation17_spill] sm:$0xff] }
 0x4c5   :  { %2261 = vmatpush1.bf16.msra.mxu0 %v5555_v11  ;;  %2302 = vmatpush1.bf16.msra.mxu1 %v5561_v12  ;;  %v7718_v11 = vld [vmem:[#allocation18_spill] sm:$0xff]  ;;  %v7719_v12 = vld [vmem:[#allocation19_spill] sm:$0xff] }
 0x4c6   :  { %2262 = vmatprep.subr.bf16.mxu0 %v5567_v13  ;;  %2303 = vmatprep.subr.bf16.mxu1 %v7704_v38  ;;  %v7720_v13 = vld [vmem:[#allocation20_spill] sm:$0xff]  ;;  %v7731_v38 = vld [vmem:[#allocation61_spill] sm:$0xff] }
 0x4c9   :  { %2263 = vmatpush1.bf16.msra.mxu0 %v7705_v39  ;;  %2304 = vmatpush1.bf16.msra.mxu1 %v7706_v40  ;;  %v7732_v39 = vld [vmem:[#allocation62_spill] sm:$0xff]  ;;  %v7733_v40 = vld [vmem:[#allocation63_spill] sm:$0xff] }
 0x4ca   :  { %2264 = vmatprep.subr.bf16.mxu0 %v7707_v41  ;;  %2305 = vmatprep.subr.bf16.mxu1 %v7708_v42  ;;  %v7734_v41 = vld [vmem:[#allocation64_spill] sm:$0xff]  ;;  %v7735_v42 = vld [vmem:[#allocation42_spill] sm:$0xff] }
 0x4cd   :  { %2265 = vmatpush1.bf16.msra.mxu0 %v7709_v43  ;;  %2306 = vmatpush1.bf16.msra.mxu1 %v7710_v49  ;;  %v7736_v43 = vld [vmem:[#allocation43_spill] sm:$0xff]  ;;  %v7737_v49 = vld [vmem:[#allocation44_spill] sm:$0xff] }
 0x4ce   :  { %2266 = vmatprep.subr.bf16.mxu0 %v7711_v52  ;;  %2307 = vmatprep.subr.bf16.mxu1 %v7712_v54  ;;  %v7738_v52 = vld [vmem:[#allocation45_spill] sm:$0xff]  ;;  %v7739_v54 = vld [vmem:[#allocation46_spill] sm:$0xff] }
 0x4d1   :  { %2267 = vmatpush1.bf16.msra.mxu0 %v7713_v55  ;;  %2308 = vmatpush1.bf16.msra.mxu1 %v7714_v56  ;;  %v7740_v55 = vld [vmem:[#allocation47_spill] sm:$0xff]  ;;  %v7741_v56 = vld [vmem:[#allocation48_spill] sm:$0xff] }
 0x4d2   :  { %2268 = vmatprep.subr.bf16.mxu0 %v7715_v57  ;;  %2309 = vmatprep.subr.bf16.mxu1 %v7716_v58  ;;  %v7742_v57 = vld [vmem:[#allocation49_spill] sm:$0xff]  ;;  %v7743_v58 = vld [vmem:[#allocation50_spill] sm:$0xff] }
 0x4d5   :  { %2269 = vmatpush1.bf16.msra.mxu0 %v7717_v61  ;;  %2310 = vmatpush1.bf16.msra.mxu1 %v7718_v11  ;;  %v7744_v61 = vld [vmem:[#allocation51_spill] sm:$0xff]  ;;  %v7745_v11 = vld [vmem:[#allocation52_spill] sm:$0xff] }
 0x4d6   :  { %2366 = vmatprep.subr.bf16.mxu0 %v7719_v12  ;;  %2407 = vmatprep.subr.bf16.mxu1 %v7720_v13  ;;  %v7746_v12 = vld [vmem:[#allocation53_spill] sm:$0xff]  ;;  %v7747_v13 = vld [vmem:[#allocation54_spill] sm:$0xff] }
 0x4d8   :  { %2287 = vmatmul.mubr.bf16.vlgmr.msra.gmra.mrb[64].mxu0 %v2060_v1  ;;  %2328 = vmatmul.mubr.bf16.vlgmr.msra.gmra.mrb[64].mxu1 %v2060_v1  ;;  %v7730_v1 = vld [vmem:[#allocation60_spill] sm:$0xff] }
 0x4d9   :  { %2367 = vmatpush1.bf16.msra.mxu0 %v7721_v28  ;;  %2408 = vmatpush1.bf16.msra.mxu1 %v7722_v22  ;;  %v7748_v28 = vld [vmem:[#allocation55_spill] sm:$0xff]  ;;  %v7749_v22 = vld [vmem:[#allocation56_spill] sm:$0xff] }
 0x4da   :  { %2368 = vmatprep.subr.bf16.mxu0 %v7723_v6  ;;  %2409 = vmatprep.subr.bf16.mxu1 %v7724_v27  ;;  %v7750_v6 = vld [vmem:[#allocation57_spill] sm:$0xff]  ;;  %v7751_v27 = vld [vmem:[#allocation58_spill] sm:$0xff] }
 0x4db   :  { %2398 = vmatprep.mubr.bf16.mxu0 %v7487_v62  ;;  %2439 = vmatprep.mubr.bf16.mxu1 %v7487_v62 }
 0x4dd   :  { %2369 = vmatpush1.bf16.msra.mxu0 %v7725_v16  ;;  %2410 = vmatpush1.bf16.msra.mxu1 %v7726_v20  ;;  %v7752_v16 = vld [vmem:[#allocation59_spill] sm:$0xff] }
 0x4de   :  { %2370 = vmatprep.subr.bf16.mxu0 %v7727_v24  ;;  %2411 = vmatprep.subr.bf16.mxu1 %v7728_v17 }
 0x4e1   :  { %2371 = vmatpush1.bf16.msra.mxu0 %v7729_v18  ;;  %2412 = vmatpush1.bf16.msra.mxu1 %v7730_v1 }
 0x4e2   :  { %2372 = vmatprep.subr.bf16.mxu0 %v7731_v38  ;;  %2413 = vmatprep.subr.bf16.mxu1 %v7732_v39 }
 0x4e5   :  { %2373 = vmatpush1.bf16.msra.mxu0 %v7733_v40  ;;  %2414 = vmatpush1.bf16.msra.mxu1 %v7734_v41 }
 0x4e6   :  { %2374 = vmatprep.subr.bf16.mxu0 %v7735_v42  ;;  %2415 = vmatprep.subr.bf16.mxu1 %v7736_v43 }
 0x4e9   :  { %2375 = vmatpush1.bf16.msra.mxu0 %v7737_v49  ;;  %2416 = vmatpush1.bf16.msra.mxu1 %v7738_v52 }
 0x4ea   :  { %2376 = vmatprep.subr.bf16.mxu0 %v7739_v54  ;;  %2417 = vmatprep.subr.bf16.mxu1 %v7740_v55 }
 0x4ed   :  { %2377 = vmatpush1.bf16.msra.mxu0 %v7741_v56  ;;  %2418 = vmatpush1.bf16.msra.mxu1 %v7742_v57 }
 0x4ee   :  { %2378 = vmatprep.subr.bf16.mxu0 %v7743_v58  ;;  %2419 = vmatprep.subr.bf16.mxu1 %v7744_v61 }
 0x4f1   :  { %2379 = vmatpush1.bf16.msra.mxu0 %v7745_v11  ;;  %2420 = vmatpush1.bf16.msra.mxu1 %v7746_v12 }
 0x4f2   :  { %2380 = vmatprep.subr.bf16.mxu0 %v7747_v13  ;;  %2421 = vmatprep.subr.bf16.mxu1 %v7748_v28 }
 0x4f5   :  { %2381 = vmatpush1.bf16.msra.mxu0 %v7749_v22  ;;  %2422 = vmatpush1.bf16.msra.mxu1 %v7750_v6 }
 0x4f6   :  { %2448 = vmatprep.subr.bf16.mxu0 %v7751_v27  ;;  %2489 = vmatprep.subr.bf16.mxu1 %v7752_v16 }
 0x56b   :  { %v2096_v20 = vpop.f32.mrb[56].mxu0  ;;  %v2137_v24 = vpop.f32.mrb[56].mxu1 }
 0x56c   :  { %v2098_v17 = vpop.f32.mrb[57].mxu0  ;;  %v2139_v18 = vpop.f32.mrb[57].mxu1 }
 0x56d   :  { %v2100_v1 = vpop.f32.mrb[58].mxu0  ;;  %v2141_v38 = vpop.f32.mrb[58].mxu1 }
 0x56e   :  { %v2101_v39 = vpop.f32.mrb[59].mxu0  ;;  %v2142_v40 = vpop.f32.mrb[59].mxu1 }
 0x56f   :  { %v7754_v40 = vld [vmem:[#allocation74_spill] sm:$0xff] }
 0x58b   :  { %v2178_v41 = vpop.f32.mrb[60].mxu0  ;;  %v2219_v13 = vpop.f32.mrb[60].mxu1 }
 0x58c   :  { %v2179_v12 = vadd.f32 %v2178_v41, %v2096_v20  ;;  %v2220_v28 = vadd.f32 %v2219_v13, %v2137_v24  ;;  %v2180_v11 = vpop.f32.mrb[61].mxu0  ;;  %v2221_v22 = vpop.f32.mrb[61].mxu1 }
 0x58d   :  { %v2181_v61 = vadd.f32 %v2180_v11, %v2098_v17  ;;  %v2222_v6 = vadd.f32 %v2221_v22, %v2139_v18  ;;  %v2182_v58 = vpop.f32.mrb[62].mxu0  ;;  %v2223_v27 = vpop.f32.mrb[62].mxu1  ;;  %v7753_v18 = vld [vmem:[#allocation73_spill] sm:$0xff] }
 0x58e   :  { %v2226_v16 = vadd.f32 %v2179_v12, %v5401_v14  ;;  %v2183_v57 = vpop.f32.mrb[63].mxu0  ;;  %v2224_v56 = vpop.f32.mrb[63].mxu1  ;;  %v2228_v13 = vadd.f32 %v2220_v28, %v5416_v21 }
 0x58f   :  { %v2227_v55 = vadd.f32 %v2181_v61, %v5405_v23  ;;  %v2229_v39 = vadd.f32 %v2222_v6, %v5411_v35 }
 0x590   :  { %v3747_v1 = vmul.f32 -1.442695, %v2226_v16 }
 0x591   :  { %v3748_v38 = vmul.f32 -1.442695, %v2227_v55  ;;  %v3749_v20 = vmul.f32 -1.442695, %v2229_v39 }
 0x592   :  { %4132 = vpow2.f32 %v3747_v1 }
 0x593   :  { %4134 = vpow2.f32 %v3748_v38 }
 0x594   :  { %4136 = vpow2.f32 %v3749_v20  ;;  %v7755_v20 = vld [vmem:[#allocation75_spill] sm:$0xff] }
 0x595   :  { %4138 = vtanh.f32 %v2228_v13 }
 0x59c   :  { %v4133_v24 = vpop.eup %4132 }
 0x59d   :  { %v4135_v11 = vpop.eup %4134  ;;  %v2233_v22 = vadd.f32 1.0, %v4133_v24  ;;  %v7756_v24 = vld [vmem:[#allocation76_spill] sm:$0xff] }
 0x59e   :  { %v2239_v58 = vadd.f32 1.0, %v4135_v11  ;;  %v4137_v56 = vpop.eup %4136 }
 0x59f   :  { %4140 = vrcp.f32 %v2233_v22  ;;  %v4139_v57 = vpop.eup %4138  ;;  %v2246_v27 = vadd.f32 1.0, %v4137_v56 }
 0x5a0   :  { %4142 = vrcp.f32 %v2239_v58 }
 0x5a1   :  { %4144 = vrcp.f32 %v2246_v27 }
 0x5a9   :  { %v4141_v61 = vpop.eup %4140 }
 0x5aa   :  { %v4143_v12 = vpop.eup %4142  ;;  %v2250_v55 = vmul.f32 %v4141_v61, %v4139_v57 }
 0x5ab   :  { %v2249_v16 = vmul.f32 %v4143_v12, %v6143_v34  ;;  %v2288_v6 = vpop.f32.mrb[64].mxu0  ;;  %v2329_v17 = vpop.f32.mrb[64].mxu1 }
 0x5ac   :  { %v2336_v28 = vadd.f32 %v2288_v6, %v7753_v18  ;;  %v2338_v41 = vadd.f32 %v2329_v17, %v7754_v40  ;;  %v2290_v1 = vpop.f32.mrb[65].mxu0  ;;  %v2331_v38 = vpop.f32.mrb[65].mxu1 }
 0x5ad   :  { %v6261_v39 = vadd.f32 %v2250_v55, %v2249_v16  ;;  %v2337_v13 = vadd.f32 %v2290_v1, %v7755_v20  ;;  %v2339_v11 = vadd.f32 %v2331_v38, %v7756_v24  ;;  %v2292_v22 = vpop.f32.mrb[66].mxu0  ;;  %v2333_v58 = vpop.f32.mrb[66].mxu1  ;;  %v6443_v20 = vld [vmem:[%s7176_s2 + $0xa0] ss:$16 sps:$4 sm:$0xff]   ;;  %v6455_v24 = vld [vmem:[%s7176_s2 + $0xc4] ss:$16 sps:$4 sm:$0xff]  }
 0x5ae   :  { %v3750_v56 = vmul.f32 -1.442695, %v2336_v28  ;;  %v2293_v57 = vpop.f32.mrb[67].mxu0  ;;  %v2334_v34 = vpop.f32.mrb[67].mxu1  ;;  %7762 = vst [vmem:[#allocation70_spill] sm:$0xff] %v6443_v20  ;;  %7764 = vst [vmem:[#allocation72_spill] sm:$0xff] %v6455_v24 }
 0x5af   :  { %v3751_v61 = vmul.f32 -1.442695, %v2337_v13  ;;  %4146 = vtanh.f32 %v6261_v39  ;;  %v3752_v12 = vmul.f32 -1.442695, %v2339_v11  ;;  %v4145_v6 = vpop.eup %4144  ;;  %v6449_v13 = vld [vmem:[%s7176_s2 + $0xa8] ss:$16 sps:$4 sm:$0xff]  }
 0x5b0   :  { %4148 = vpow2.f32 %v3750_v56  ;;  %7763 = vst [vmem:[#allocation71_spill] sm:$0xff] %v6449_v13  ;;  %v6461_v11 = vld [vmem:[%s7176_s2 + $0xcc] ss:$16 sps:$4 sm:$0xff]   ;;  %v6467_v22 = vld [vmem:[%s7176_s2 + $0xc0] ss:$16 sps:$4 sm:$0xff]  }
 0x5b1   :  { %4150 = vpow2.f32 %v3751_v61  ;;  %7765 = vst [vmem:[#allocation30_spill] sm:$0xff] %v6461_v11  ;;  %7766 = vst [vmem:[#allocation31_spill] sm:$0xff] %v6467_v22  ;;  %v6473_v58 = vld [vmem:[%s7176_s2 + $0xc8] ss:$16 sps:$4 sm:$0xff]   ;;  %v6479_v56 = vld [vmem:[%s7176_s2 + $0xe4] ss:$16 sps:$4 sm:$0xff]  }
 0x5b2   :  { %4152 = vpow2.f32 %v3752_v12  ;;  %7767 = vst [vmem:[#allocation32_spill] sm:$0xff] %v6473_v58  ;;  %7768 = vst [vmem:[#allocation33_spill] sm:$0xff] %v6479_v56  ;;  %v6485_v57 = vld [vmem:[%s7176_s2 + $0xec] ss:$16 sps:$4 sm:$0xff]   ;;  %v6491_v34 = vld [vmem:[%s7176_s2 + $0xe0] ss:$16 sps:$4 sm:$0xff]  }
 0x5b3   :  { %4154 = vtanh.f32 %v2338_v41  ;;  %v6437_v41 = vld [vmem:[%s7176_s2 + $0xac] ss:$16 sps:$4 sm:$0xff]   ;;  %7769 = vst [vmem:[#allocation34_spill] sm:$0xff] %v6485_v57  ;;  %7770 = vst [vmem:[#allocation35_spill] sm:$0xff] %v6491_v34  ;;  %v6497_v61 = vld [vmem:[%s7176_s2 + $0xe8] ss:$16 sps:$4 sm:$0xff]  }
 0x5b4   :  { %7761 = vst [vmem:[#allocation69_spill] sm:$0xff] %v6437_v41  ;;  %7771 = vst [vmem:[#allocation36_spill] sm:$0xff] %v6497_v61  ;;  %v6503_v12 = vld [vmem:[%s7177_s5 + $0x4] ss:$16 sps:$4 sm:$0xff]  }
 0x5b5   :  { %7772 = vst [vmem:[#allocation37_spill] sm:$0xff] %v6503_v12 }
 0x5b9   :  { %v4147_v17 = vpop.eup %4146 }
 0x5ba   :  { %v4149_v55 = vpop.eup %4148  ;;  %v2253_v16 = vmul.f32 %v4147_v17, %v4145_v6  ;;  %v6509_v6 = vld [vmem:[%s7177_s5 + $0xc] ss:$16 sps:$4 sm:$0xff]   ;;  %v6517_v17 = vld [vmem:[%s7177_s5] ss:$16 sps:$4 sm:$0xff]  }
 0x5bb   :  { %v4151_v18 = vpop.eup %4150  ;;  %v2343_v40 = vadd.f32 1.0, %v4149_v55  ;;  %7773 = vst [vmem:[#allocation38_spill] sm:$0xff] %v6509_v6  ;;  %7774 = vst [vmem:[#allocation39_spill] sm:$0xff] %v6517_v17  ;;  %v6523_v55 = vld [vmem:[%s7177_s5 + $0x8] ss:$16 sps:$4 sm:$0xff]  }
 0x5bc   :  { %v2349_v1 = vadd.f32 1.0, %v4151_v18  ;;  %v2365_v38 = vpack.c.bf16 %v2253_v16, %v2253_v16  ;;  %v4153_v27 = vpop.eup %4152  ;;  %7775 = vst [vmem:[#allocation40_spill] sm:$0xff] %v6523_v55  ;;  %v6529_v16 = vld [vmem:[%s7177_s5 + $0x24] ss:$16 sps:$4 sm:$0xff]   ;;  %v6535_v18 = vld [vmem:[%s7177_s5 + $0x2c] ss:$16 sps:$4 sm:$0xff]  }
 0x5bd   :  { %4156 = vrcp.f32 %v2343_v40  ;;  %7776 = vst [vmem:[#allocation41_spill] sm:$0xff] %v6529_v16  ;;  %7777 = vst [vmem:[#allocation4_spill] sm:$0xff] %v6535_v18  ;;  %v6543_v40 = vld [vmem:[%s7177_s5 + $0x20] ss:$16 sps:$4 sm:$0xff]  }
 0x5be   :  { %4158 = vrcp.f32 %v2349_v1  ;;  %2399 = vmatmul.mubr.bf16.vlgmr.msra.gmra.mrb[68].mxu0 %v2365_v38  ;;  %2440 = vmatmul.mubr.bf16.vlgmr.msra.gmra.mrb[68].mxu1 %v2365_v38  ;;  %7778 = vst [vmem:[#allocation5_spill] sm:$0xff] %v6543_v40  ;;  %v6549_v1 = vld [vmem:[%s7177_s5 + $0x28] ss:$16 sps:$4 sm:$0xff]   ;;  %v6555_v38 = vld [vmem:[%s7177_s5 + $0x44] ss:$16 sps:$4 sm:$0xff]  }
 0x5bf   :  { %2449 = vmatpush1.bf16.msra.mxu0 %v5793_v2  ;;  %2490 = vmatpush1.bf16.msra.mxu1 %v5799_v3  ;;  %v4155_v2 = vpop.eup %4154  ;;  %7779 = vst [vmem:[#allocation6_spill] sm:$0xff] %v6549_v1  ;;  %7780 = vst [vmem:[#allocation7_spill] sm:$0xff] %v6555_v38 }
 0x5c0   :  { %2450 = vmatprep.subr.bf16.mxu0 %v5805_v10  ;;  %2491 = vmatprep.subr.bf16.mxu1 %v5811_v45  ;;  %v2356_v45 = vadd.f32 1.0, %v4153_v27  ;;  %v6561_v27 = vld [vmem:[%s7177_s5 + $0x4c] ss:$16 sps:$4 sm:$0xff]  }
 0x5c1   :  { %2480 = vmatprep.mubr.bf16.mxu0 %v7487_v62  ;;  %2521 = vmatprep.mubr.bf16.mxu1 %v7487_v62  ;;  %7781 = vst [vmem:[#allocation8_spill] sm:$0xff] %v6561_v27 }
 0x5c2   :  { %4160 = vrcp.f32 %v2356_v45  ;;  %v6591_v45 = vld [vmem:[%s7177_s5 + $0x60] ss:$16 sps:$4 sm:$0xff]  }
 0x5c3   :  { %2451 = vmatpush1.bf16.msra.mxu0 %v5819_v46  ;;  %2492 = vmatpush1.bf16.msra.mxu1 %v5825_v60  ;;  %7786 = vst [vmem:[#allocation13_spill] sm:$0xff] %v6591_v45 }
 0x5c4   :  { %2452 = vmatprep.subr.bf16.mxu0 %v5831_v47  ;;  %2493 = vmatprep.subr.bf16.mxu1 %v5837_v48 }
 0x5c7   :  { %v4157_v28 = vpop.eup %4156  ;;  %2453 = vmatpush1.bf16.msra.mxu0 %v5843_v30  ;;  %2494 = vmatpush1.bf16.msra.mxu1 %v5849_v63 }
 0x5c8   :  { %v4159_v3 = vpop.eup %4158  ;;  %v2360_v10 = vmul.f32 %v4157_v28, %v4155_v2  ;;  %2454 = vmatprep.subr.bf16.mxu0 %v5855_v36  ;;  %2495 = vmatprep.subr.bf16.mxu1 %v5861_v4  ;;  %v6307_v36 = vld [vmem:[%s7176_s2 + $0x4] ss:$16 sps:$4 sm:$0xff]   ;;  %v6313_v4 = vld [vmem:[%s7176_s2 + $0xc] ss:$16 sps:$4 sm:$0xff]   ;;  %v6567_v2 = vld [vmem:[%s7177_s5 + $0x40] ss:$16 sps:$4 sm:$0xff]  }
 0x5c9   :  { %v2359_v46 = vmul.f32 %v4159_v3, %v6163_v15  ;;  %v6359_v15 = vld [vmem:[%s7176_s2 + $0x44] ss:$16 sps:$4 sm:$0xff]   ;;  %7782 = vst [vmem:[#allocation9_spill] sm:$0xff] %v6567_v2  ;;  %v6573_v28 = vld [vmem:[%s7177_s5 + $0x48] ss:$16 sps:$4 sm:$0xff]  }
 0x5ca   :  { %7783 = vst [vmem:[#allocation10_spill] sm:$0xff] %v6573_v28  ;;  %v6579_v3 = vld [vmem:[%s7177_s5 + $0x64] ss:$16 sps:$4 sm:$0xff]  }
 0x5cb   :  { %v6281_v60 = vadd.f32 %v2360_v10, %v2359_v46  ;;  %2455 = vmatpush1.bf16.msra.mxu0 %v5870_v50  ;;  %2496 = vmatpush1.bf16.msra.mxu1 %v5876_v51  ;;  %v6321_v50 = vld [vmem:[%s7176_s2] ss:$16 sps:$4 sm:$0xff]   ;;  %v6327_v51 = vld [vmem:[%s7176_s2 + $0x8] ss:$16 sps:$4 sm:$0xff]   ;;  %7784 = vst [vmem:[#allocation11_spill] sm:$0xff] %v6579_v3 }
 0x5cc   :  { %2456 = vmatprep.subr.bf16.mxu0 %v5882_v19  ;;  %2497 = vmatprep.subr.bf16.mxu1 %v7692_v25  ;;  %v4161_v47 = vpop.eup %4160  ;;  %v6333_v19 = vld [vmem:[%s7176_s2 + $0x24] ss:$16 sps:$4 sm:$0xff]   ;;  %v6365_v25 = vld [vmem:[%s7176_s2 + $0x4c] ss:$16 sps:$4 sm:$0xff]   ;;  %v6597_v46 = vld [vmem:[%s7177_s5 + $0x68] ss:$16 sps:$4 sm:$0xff]  }
 0x5cd   :  { %4162 = vtanh.f32 %v6281_v60  ;;  %v6585_v10 = vld [vmem:[%s7177_s5 + $0x6c] ss:$16 sps:$4 sm:$0xff]   ;;  %7787 = vst [vmem:[#allocation14_spill] sm:$0xff] %v6597_v46 }
 0x5ce   :  { %7785 = vst [vmem:[#allocation12_spill] sm:$0xff] %v6585_v10 }
 0x5cf   :  { %2457 = vmatpush1.bf16.msra.mxu0 %v7693_v29  ;;  %2498 = vmatpush1.bf16.msra.mxu1 %v7694_v32  ;;  %v6371_v29 = vld [vmem:[%s7176_s2 + $0x40] ss:$16 sps:$4 sm:$0xff]   ;;  %v6377_v32 = vld [vmem:[%s7176_s2 + $0x48] ss:$16 sps:$4 sm:$0xff]  }
 0x5d0   :  { %2458 = vmatprep.subr.bf16.mxu0 %v7695_v59  ;;  %2499 = vmatprep.subr.bf16.mxu1 %v7696_v9  ;;  %v6383_v59 = vld [vmem:[%s7176_s2 + $0x64] ss:$16 sps:$4 sm:$0xff]   ;;  %v6389_v9 = vld [vmem:[%s7176_s2 + $0x6c] ss:$16 sps:$4 sm:$0xff]  }
 0x5d3   :  { %2459 = vmatpush1.bf16.msra.mxu0 %v7697_v53  ;;  %2500 = vmatpush1.bf16.msra.mxu1 %v7698_v26  ;;  %v6395_v53 = vld [vmem:[%s7176_s2 + $0x60] ss:$16 sps:$4 sm:$0xff]   ;;  %v6401_v26 = vld [vmem:[%s7176_s2 + $0x68] ss:$16 sps:$4 sm:$0xff]  }
 0x5d4   :  { %2460 = vmatprep.subr.bf16.mxu0 %v7699_v33  ;;  %2501 = vmatprep.subr.bf16.mxu1 %v7700_v37  ;;  %v6407_v33 = vld [vmem:[%s7176_s2 + $0x84] ss:$16 sps:$4 sm:$0xff]   ;;  %v6413_v37 = vld [vmem:[%s7176_s2 + $0x8c] ss:$16 sps:$4 sm:$0xff]  }
 0x5d5   :  { %7757 = vst [vmem:[#allocation65_spill] sm:$0xff] %v6413_v37 }
 0x5d7   :  { %v4163_v48 = vpop.eup %4162  ;;  %2461 = vmatpush1.bf16.msra.mxu0 %v7701_v7  ;;  %2502 = vmatpush1.bf16.msra.mxu1 %v7702_v8  ;;  %v6419_v7 = vld [vmem:[%s7176_s2 + $0x80] ss:$16 sps:$4 sm:$0xff]   ;;  %v6425_v8 = vld [vmem:[%s7176_s2 + $0x88] ss:$16 sps:$4 sm:$0xff]  }
 0x5d8   :  { %2462 = vmatprep.subr.bf16.mxu0 %v7703_v44  ;;  %2503 = vmatprep.subr.bf16.mxu1 %v5961_v31  ;;  %v2363_v30 = vmul.f32 %v4163_v48, %v4161_v47  ;;  %v6339_v31 = vld [vmem:[%s7176_s2 + $0x2c] ss:$16 sps:$4 sm:$0xff]   ;;  %7758 = vst [vmem:[#allocation66_spill] sm:$0xff] %v6419_v7  ;;  %7759 = vst [vmem:[#allocation67_spill] sm:$0xff] %v6425_v8  ;;  %v6431_v44 = vld [vmem:[%s7176_s2 + $0xa4] ss:$16 sps:$4 sm:$0xff]  }
 0x5d9   :  { %7760 = vst [vmem:[#allocation68_spill] sm:$0xff] %v6431_v44  ;;  %v7788_v47 = vld [vmem:[#allocation47_spill] sm:$0xff]  ;;  %v7789_v48 = vld [vmem:[#allocation48_spill] sm:$0xff] }
 0x5da   :  { %v6300_v63 = vpack.c.bf16 %v2363_v30, %v2363_v30  ;;  %v7790_v30 = vld [vmem:[#allocation49_spill] sm:$0xff] }
 0x5db   :  { %2463 = vmatpush1.bf16.msra.mxu0 %v5967_v0  ;;  %2504 = vmatpush1.bf16.msra.mxu1 %v5973_v5  ;;  %v6347_v0 = vld [vmem:[%s7176_s2 + $0x20] ss:$16 sps:$4 sm:$0xff]   ;;  %v6353_v5 = vld [vmem:[%s7176_s2 + $0x28] ss:$16 sps:$4 sm:$0xff]  }
 0x5dc   :  { %2558 = vmatprep.subr.bf16.mxu0 %v6307_v36  ;;  %2599 = vmatprep.subr.bf16.mxu1 %v6313_v4 }
 0x5de   :  { %2481 = vmatmul.mubr.bf16.vlgmr.msra.gmra.mrb[72].mxu0 %v6300_v63  ;;  %2522 = vmatmul.mubr.bf16.vlgmr.msra.gmra.mrb[72].mxu1 %v6300_v63 }
 0x5df   :  { %2559 = vmatpush1.bf16.msra.mxu0 %v6321_v50  ;;  %2600 = vmatpush1.bf16.msra.mxu1 %v6327_v51 }
 0x5e0   :  { %2560 = vmatprep.subr.bf16.mxu0 %v6333_v19  ;;  %2601 = vmatprep.subr.bf16.mxu1 %v6339_v31 }
 0x5e1   :  { %2590 = vmatprep.mubr.bf16.mxu0 %v7487_v62  ;;  %2631 = vmatprep.mubr.bf16.mxu1 %v7487_v62 }
 0x5e3   :  { %2561 = vmatpush1.bf16.msra.mxu0 %v6347_v0  ;;  %2602 = vmatpush1.bf16.msra.mxu1 %v6353_v5 }
 0x5e4   :  { %2562 = vmatprep.subr.bf16.mxu0 %v6359_v15  ;;  %2603 = vmatprep.subr.bf16.mxu1 %v6365_v25 }
 0x5e7   :  { %2563 = vmatpush1.bf16.msra.mxu0 %v6371_v29  ;;  %2604 = vmatpush1.bf16.msra.mxu1 %v6377_v32 }
 0x5e8   :  { %2564 = vmatprep.subr.bf16.mxu0 %v6383_v59  ;;  %2605 = vmatprep.subr.bf16.mxu1 %v6389_v9 }
 0x5eb   :  { %2565 = vmatpush1.bf16.msra.mxu0 %v6395_v53  ;;  %2606 = vmatpush1.bf16.msra.mxu1 %v6401_v26 }
 0x5ec   :  { %2566 = vmatprep.subr.bf16.mxu0 %v6407_v33  ;;  %2607 = vmatprep.subr.bf16.mxu1 %v6413_v37 }
 0x5ef   :  { %2567 = vmatpush1.bf16.msra.mxu0 %v6419_v7  ;;  %2608 = vmatpush1.bf16.msra.mxu1 %v6425_v8 }
 0x5f0   :  { %2568 = vmatprep.subr.bf16.mxu0 %v6431_v44  ;;  %2609 = vmatprep.subr.bf16.mxu1 %v6437_v41 }
 0x5f3   :  { %2569 = vmatpush1.bf16.msra.mxu0 %v6443_v20  ;;  %2610 = vmatpush1.bf16.msra.mxu1 %v6449_v13 }
 0x5f4   :  { %2570 = vmatprep.subr.bf16.mxu0 %v6455_v24  ;;  %2611 = vmatprep.subr.bf16.mxu1 %v6461_v11 }
 0x5f7   :  { %2571 = vmatpush1.bf16.msra.mxu0 %v6467_v22  ;;  %2612 = vmatpush1.bf16.msra.mxu1 %v6473_v58 }
 0x5f8   :  { %2572 = vmatprep.subr.bf16.mxu0 %v6479_v56  ;;  %2613 = vmatprep.subr.bf16.mxu1 %v6485_v57 }
 0x5fb   :  { %2573 = vmatpush1.bf16.msra.mxu0 %v6491_v34  ;;  %2614 = vmatpush1.bf16.msra.mxu1 %v6497_v61 }
 0x5fc   :  { %2670 = vmatprep.subr.bf16.mxu0 %v6503_v12  ;;  %2711 = vmatprep.subr.bf16.mxu1 %v6509_v6 }
 0x5fe   :  { %2591 = vmatmul.mubr.bf16.vlgmr.msra.gmra.mrb[76].mxu0 %v6300_v63  ;;  %2632 = vmatmul.mubr.bf16.vlgmr.msra.gmra.mrb[76].mxu1 %v6300_v63  ;;  %v7791_v63 = vld [vmem:[#allocation50_spill] sm:$0xff] }
 0x5ff   :  { %2671 = vmatpush1.bf16.msra.mxu0 %v6517_v17  ;;  %2712 = vmatpush1.bf16.msra.mxu1 %v6523_v55 }
 0x600   :  { %2672 = vmatprep.subr.bf16.mxu0 %v6529_v16  ;;  %2713 = vmatprep.subr.bf16.mxu1 %v6535_v18 }
 0x601   :  { %2702 = vmatprep.mubr.bf16.mxu0 %v7487_v62  ;;  %2743 = vmatprep.mubr.bf16.mxu1 %v7487_v62 }
 0x603   :  { %2673 = vmatpush1.bf16.msra.mxu0 %v6543_v40  ;;  %2714 = vmatpush1.bf16.msra.mxu1 %v6549_v1 }
 0x604   :  { %2674 = vmatprep.subr.bf16.mxu0 %v6555_v38  ;;  %2715 = vmatprep.subr.bf16.mxu1 %v6561_v27 }
 0x607   :  { %2675 = vmatpush1.bf16.msra.mxu0 %v6567_v2  ;;  %2716 = vmatpush1.bf16.msra.mxu1 %v6573_v28 }
 0x608   :  { %2676 = vmatprep.subr.bf16.mxu0 %v6579_v3  ;;  %2717 = vmatprep.subr.bf16.mxu1 %v6585_v10 }
 0x60b   :  { %2677 = vmatpush1.bf16.msra.mxu0 %v6591_v45  ;;  %2718 = vmatpush1.bf16.msra.mxu1 %v6597_v46  ;;  %v7792_v45 = vld [vmem:[#allocation51_spill] sm:$0xff]  ;;  %v7793_v46 = vld [vmem:[#allocation52_spill] sm:$0xff] }
 0x60c   :  { %2678 = vmatprep.subr.bf16.mxu0 %v7735_v42  ;;  %2719 = vmatprep.subr.bf16.mxu1 %v7736_v43  ;;  %v7794_v42 = vld [vmem:[#allocation53_spill] sm:$0xff]  ;;  %v7795_v43 = vld [vmem:[#allocation54_spill] sm:$0xff] }
 0x60f   :  { %2679 = vmatpush1.bf16.msra.mxu0 %v7737_v49  ;;  %2720 = vmatpush1.bf16.msra.mxu1 %v7738_v52  ;;  %v7796_v49 = vld [vmem:[#allocation55_spill] sm:$0xff]  ;;  %v7797_v52 = vld [vmem:[#allocation56_spill] sm:$0xff] }
 0x610   :  { %2680 = vmatprep.subr.bf16.mxu0 %v7739_v54  ;;  %2721 = vmatprep.subr.bf16.mxu1 %v7788_v47  ;;  %v7798_v54 = vld [vmem:[#allocation57_spill] sm:$0xff]  ;;  %v7799_v47 = vld [vmem:[#allocation58_spill] sm:$0xff] }
 0x613   :  { %2681 = vmatpush1.bf16.msra.mxu0 %v7789_v48  ;;  %2722 = vmatpush1.bf16.msra.mxu1 %v7790_v30  ;;  %v7800_v48 = vld [vmem:[#allocation59_spill] sm:$0xff] }
 0x614   :  { %2682 = vmatprep.subr.bf16.mxu0 %v7791_v63  ;;  %2723 = vmatprep.subr.bf16.mxu1 %v7792_v45 }
 0x617   :  { %2683 = vmatpush1.bf16.msra.mxu0 %v7793_v46  ;;  %2724 = vmatpush1.bf16.msra.mxu1 %v7794_v42 }
 0x618   :  { %2684 = vmatprep.subr.bf16.mxu0 %v7795_v43  ;;  %2725 = vmatprep.subr.bf16.mxu1 %v7796_v49 }
 0x61b   :  { %2685 = vmatpush1.bf16.msra.mxu0 %v7797_v52  ;;  %2726 = vmatpush1.bf16.msra.mxu1 %v7798_v54 }
 0x61c   :  { %2752 = vmatprep.subr.bf16.mxu0 %v7799_v47  ;;  %2793 = vmatprep.subr.bf16.mxu1 %v7800_v48 }
 0x691   :  { %v2400_v30 = vpop.f32.mrb[68].mxu0  ;;  %v2441_v63 = vpop.f32.mrb[68].mxu1 }
 0x692   :  { %v2402_v10 = vpop.f32.mrb[69].mxu0  ;;  %v2443_v45 = vpop.f32.mrb[69].mxu1 }
 0x693   :  { %v2404_v3 = vpop.f32.mrb[70].mxu0  ;;  %v2445_v46 = vpop.f32.mrb[70].mxu1 }
 0x694   :  { %v2405_v28 = vpop.f32.mrb[71].mxu0  ;;  %v2446_v42 = vpop.f32.mrb[71].mxu1 }
 0x6b1   :  { %v2482_v2 = vpop.f32.mrb[72].mxu0  ;;  %v2523_v43 = vpop.f32.mrb[72].mxu1 }
 0x6b2   :  { %v2483_v27 = vadd.f32 %v2482_v2, %v2400_v30  ;;  %v2524_v49 = vadd.f32 %v2523_v43, %v2441_v63  ;;  %v2484_v38 = vpop.f32.mrb[73].mxu0  ;;  %v2525_v52 = vpop.f32.mrb[73].mxu1 }
 0x6b3   :  { %v2485_v1 = vadd.f32 %v2484_v38, %v2402_v10  ;;  %v2526_v54 = vadd.f32 %v2525_v52, %v2443_v45  ;;  %v2486_v40 = vpop.f32.mrb[74].mxu0  ;;  %v2527_v47 = vpop.f32.mrb[74].mxu1 }
 0x6b4   :  { %v2530_v48 = vadd.f32 %v2483_v27, %v5401_v14  ;;  %v2487_v18 = vpop.f32.mrb[75].mxu0  ;;  %v2528_v16 = vpop.f32.mrb[75].mxu1  ;;  %v2532_v30 = vadd.f32 %v2524_v49, %v5416_v21  ;;  %v7802_v47 = vld [vmem:[#allocation78_spill] sm:$0xff] }
 0x6b5   :  { %v2531_v55 = vadd.f32 %v2485_v1, %v5405_v23  ;;  %v2533_v28 = vadd.f32 %v2526_v54, %v5411_v35  ;;  %v7801_v54 = vld [vmem:[#allocation77_spill] sm:$0xff] }
 0x6b6   :  { %v3753_v3 = vmul.f32 -1.442695, %v2530_v48 }
 0x6b7   :  { %v3754_v46 = vmul.f32 -1.442695, %v2531_v55  ;;  %v3755_v2 = vmul.f32 -1.442695, %v2533_v28 }
 0x6b8   :  { %4164 = vpow2.f32 %v3753_v3 }
 0x6b9   :  { %4166 = vpow2.f32 %v3754_v46 }
 0x6ba   :  { %4168 = vpow2.f32 %v3755_v2  ;;  %v7803_v2 = vld [vmem:[#allocation79_spill] sm:$0xff] }
 0x6bb   :  { %4170 = vtanh.f32 %v2532_v30 }
 0x6c2   :  { %v4165_v63 = vpop.eup %4164 }
 0x6c3   :  { %v4167_v38 = vpop.eup %4166  ;;  %v2537_v10 = vadd.f32 1.0, %v4165_v63  ;;  %v7804_v63 = vld [vmem:[#allocation80_spill] sm:$0xff] }
 0x6c4   :  { %v2543_v40 = vadd.f32 1.0, %v4167_v38  ;;  %v4169_v16 = vpop.eup %4168 }
 0x6c5   :  { %4172 = vrcp.f32 %v2537_v10  ;;  %v4171_v18 = vpop.eup %4170  ;;  %v2550_v45 = vadd.f32 1.0, %v4169_v16 }
 0x6c6   :  { %4174 = vrcp.f32 %v2543_v40 }
 0x6c7   :  { %4176 = vrcp.f32 %v2550_v45  ;;  %v6633_v45 = vld [vmem:[%s7178_s4] ss:$16 sps:$4 sm:$0xff]  }
 0x6cf   :  { %v4173_v1 = vpop.eup %4172 }
 0x6d0   :  { %v4175_v27 = vpop.eup %4174  ;;  %v2554_v55 = vmul.f32 %v4173_v1, %v4171_v18 }
 0x6d1   :  { %v2553_v42 = vmul.f32 %v4175_v27, %v6261_v39  ;;  %v2592_v43 = vpop.f32.mrb[76].mxu0  ;;  %v2633_v52 = vpop.f32.mrb[76].mxu1 }
 0x6d2   :  { %v2640_v49 = vadd.f32 %v2592_v43, %v7801_v54  ;;  %v2642_v48 = vadd.f32 %v2633_v52, %v7802_v47  ;;  %v2594_v3 = vpop.f32.mrb[77].mxu0  ;;  %v2635_v46 = vpop.f32.mrb[77].mxu1 }
 0x6d3   :  { %v6625_v28 = vadd.f32 %v2554_v55, %v2553_v42  ;;  %v2641_v30 = vadd.f32 %v2594_v3, %v7803_v2  ;;  %v2643_v38 = vadd.f32 %v2635_v46, %v7804_v63  ;;  %v2596_v10 = vpop.f32.mrb[78].mxu0  ;;  %v2637_v40 = vpop.f32.mrb[78].mxu1  ;;  %v6651_v2 = vld [vmem:[%s7178_s4 + $0x2c] ss:$16 sps:$4 sm:$0xff]   ;;  %v6665_v63 = vld [vmem:[%s7178_s4 + $0x28] ss:$16 sps:$4 sm:$0xff]  }
 0x6d4   :  { %v3756_v16 = vmul.f32 -1.442695, %v2640_v49  ;;  %v2597_v18 = vpop.f32.mrb[79].mxu0  ;;  %v2638_v39 = vpop.f32.mrb[79].mxu1  ;;  %v6639_v49 = vld [vmem:[%s7178_s4 + $0x8] ss:$16 sps:$4 sm:$0xff]  }
 0x6d5   :  { %v3757_v1 = vmul.f32 -1.442695, %v2641_v30  ;;  %4178 = vtanh.f32 %v6625_v28  ;;  %v3758_v27 = vmul.f32 -1.442695, %v2643_v38  ;;  %v4177_v43 = vpop.eup %4176  ;;  %v6659_v30 = vld [vmem:[%s7178_s4 + $0x20] ss:$16 sps:$4 sm:$0xff]  }
 0x6d6   :  { %4180 = vpow2.f32 %v3756_v16  ;;  %v6671_v38 = vld [vmem:[%s7178_s4 + $0x44] ss:$16 sps:$4 sm:$0xff]   ;;  %v6677_v10 = vld [vmem:[%s7178_s4 + $0x4c] ss:$16 sps:$4 sm:$0xff]   ;;  %v6683_v39 = vld [vmem:[%s7178_s4 + $0x40] ss:$16 sps:$4 sm:$0xff]  }
 0x6d7   :  { %4182 = vpow2.f32 %v3757_v1  ;;  %v6689_v1 = vld [vmem:[%s7178_s4 + $0x48] ss:$16 sps:$4 sm:$0xff]  }
 0x6d8   :  { %4184 = vpow2.f32 %v3758_v27 }
 0x6d9   :  { %4186 = vtanh.f32 %v2642_v48  ;;  %v6645_v48 = vld [vmem:[%s7178_s4 + $0x24] ss:$16 sps:$4 sm:$0xff]  }
 0x6df   :  { %v4179_v52 = vpop.eup %4178 }
 0x6e0   :  { %v4181_v55 = vpop.eup %4180  ;;  %v2557_v42 = vmul.f32 %v4179_v52, %v4177_v43 }
 0x6e1   :  { %v4183_v54 = vpop.eup %4182  ;;  %v2647_v47 = vadd.f32 1.0, %v4181_v55  ;;  %v6695_v55 = vld [vmem:[%s7178_s4 + $0x64] ss:$16 sps:$4 sm:$0xff]  }
 0x6e2   :  { %v2653_v3 = vadd.f32 1.0, %v4183_v54  ;;  %v2669_v46 = vpack.c.bf16 %v2557_v42, %v2557_v42  ;;  %v4185_v40 = vpop.eup %4184  ;;  %v6701_v42 = vld [vmem:[%s7178_s4 + $0x6c] ss:$16 sps:$4 sm:$0xff]  }
 0x6e3   :  { %4188 = vrcp.f32 %v2647_v47  ;;  %v4187_v16 = vpop.eup %4186  ;;  %v2660_v52 = vadd.f32 1.0, %v4185_v40  ;;  %v6728_v40 = vld [vmem:[%s7178_s4 + $0x8c] ss:$16 sps:$4 sm:$0xff]  }
 0x6e4   :  { %4190 = vrcp.f32 %v2653_v3  ;;  %2703 = vmatmul.mubr.bf16.vlgmr.msra.gmra.mrb[80].mxu0 %v2669_v46  ;;  %2744 = vmatmul.mubr.bf16.vlgmr.msra.gmra.mrb[80].mxu1 %v2669_v46  ;;  %v6710_v3 = vld [vmem:[%s7178_s4 + $0x60] ss:$16 sps:$4 sm:$0xff]   ;;  %v6716_v46 = vld [vmem:[%s7178_s4 + $0x68] ss:$16 sps:$4 sm:$0xff]   ;;  %7805 = vst [vmem:[#allocation15_spill] sm:$0xff] %v6728_v40 }
 0x6e5   :  { %2753 = vmatpush1.bf16.msra.mxu0 %v6633_v45  ;;  %2794 = vmatpush1.bf16.msra.mxu1 %v6639_v49  ;;  %4192 = vrcp.f32 %v2660_v52  ;;  %v6759_v52 = vld [vmem:[%s7178_s4 + $0xa0] ss:$16 sps:$4 sm:$0xff]  }
 0x6e6   :  { %2754 = vmatprep.subr.bf16.mxu0 %v6645_v48  ;;  %2795 = vmatprep.subr.bf16.mxu1 %v6651_v2  ;;  %7810 = vst [vmem:[#allocation20_spill] sm:$0xff] %v6759_v52 }
 0x6e7   :  { %2784 = vmatprep.mubr.bf16.mxu0 %v7487_v62  ;;  %2825 = vmatprep.mubr.bf16.mxu1 %v7487_v62 }
 0x6e9   :  { %2755 = vmatpush1.bf16.msra.mxu0 %v6659_v30  ;;  %2796 = vmatpush1.bf16.msra.mxu1 %v6665_v63 }
 0x6ea   :  { %2756 = vmatprep.subr.bf16.mxu0 %v6671_v38  ;;  %2797 = vmatprep.subr.bf16.mxu1 %v6677_v10 }
 0x6ed   :  { %v4189_v18 = vpop.eup %4188  ;;  %2757 = vmatpush1.bf16.msra.mxu0 %v6683_v39  ;;  %2798 = vmatpush1.bf16.msra.mxu1 %v6689_v1 }
 0x6ee   :  { %v4191_v27 = vpop.eup %4190  ;;  %v2664_v43 = vmul.f32 %v4189_v18, %v4187_v16  ;;  %2758 = vmatprep.subr.bf16.mxu0 %v6695_v55  ;;  %2799 = vmatprep.subr.bf16.mxu1 %v6701_v42  ;;  %v6735_v16 = vld [vmem:[%s7178_s4 + $0x80] ss:$16 sps:$4 sm:$0xff]   ;;  %v6741_v18 = vld [vmem:[%s7178_s4 + $0x88] ss:$16 sps:$4 sm:$0xff]  }
 0x6ef   :  { %v2663_v54 = vmul.f32 %v4191_v27, %v6281_v60  ;;  %v6722_v60 = vld [vmem:[%s7178_s4 + $0x84] ss:$16 sps:$4 sm:$0xff]   ;;  %7806 = vst [vmem:[#allocation16_spill] sm:$0xff] %v6735_v16  ;;  %7807 = vst [vmem:[#allocation17_spill] sm:$0xff] %v6741_v18 }
 0x6f0   :  { %v6747_v27 = vld [vmem:[%s7178_s4 + $0xa4] ss:$16 sps:$4 sm:$0xff]  }
 0x6f1   :  { %v6705_v47 = vadd.f32 %v2664_v43, %v2663_v54  ;;  %2759 = vmatpush1.bf16.msra.mxu0 %v6710_v3  ;;  %2800 = vmatpush1.bf16.msra.mxu1 %v6716_v46  ;;  %7808 = vst [vmem:[#allocation18_spill] sm:$0xff] %v6747_v27  ;;  %v6753_v43 = vld [vmem:[%s7178_s4 + $0xac] ss:$16 sps:$4 sm:$0xff]   ;;  %v6765_v54 = vld [vmem:[%s7178_s4 + $0xa8] ss:$16 sps:$4 sm:$0xff]  }
 0x6f2   :  { %2760 = vmatprep.subr.bf16.mxu0 %v6722_v60  ;;  %2801 = vmatprep.subr.bf16.mxu1 %v6728_v40  ;;  %7809 = vst [vmem:[#allocation19_spill] sm:$0xff] %v6753_v43  ;;  %7811 = vst [vmem:[#allocation21_spill] sm:$0xff] %v6765_v54 }
 0x6f3   :  { %4194 = vtanh.f32 %v6705_v47 }
 0x6f5   :  { %2761 = vmatpush1.bf16.msra.mxu0 %v6735_v16  ;;  %2802 = vmatpush1.bf16.msra.mxu1 %v6741_v18  ;;  %v6801_v16 = vld [vmem:[%s7178_s4 + $0xec] ss:$16 sps:$4 sm:$0xff]  }
 0x6f6   :  { %2762 = vmatprep.subr.bf16.mxu0 %v6747_v27  ;;  %2803 = vmatprep.subr.bf16.mxu1 %v6753_v43  ;;  %v6771_v27 = vld [vmem:[%s7178_s4 + $0xc4] ss:$16 sps:$4 sm:$0xff]   ;;  %v6777_v43 = vld [vmem:[%s7178_s4 + $0xcc] ss:$16 sps:$4 sm:$0xff]  }
 0x6f7   :  { %7812 = vst [vmem:[#allocation22_spill] sm:$0xff] %v6771_v27  ;;  %7813 = vst [vmem:[#allocation23_spill] sm:$0xff] %v6777_v43 }
 0x6f9   :  { %2763 = vmatpush1.bf16.msra.mxu0 %v6759_v52  ;;  %2804 = vmatpush1.bf16.msra.mxu1 %v6765_v54  ;;  %v4193_v52 = vpop.eup %4192  ;;  %v6783_v54 = vld [vmem:[%s7178_s4 + $0xc0] ss:$16 sps:$4 sm:$0xff]  }
 0x6fa   :  { %2764 = vmatprep.subr.bf16.mxu0 %v6771_v27  ;;  %2805 = vmatprep.subr.bf16.mxu1 %v6777_v43  ;;  %7814 = vst [vmem:[#allocation24_spill] sm:$0xff] %v6783_v54  ;;  %v6789_v27 = vld [vmem:[%s7178_s4 + $0xc8] ss:$16 sps:$4 sm:$0xff]   ;;  %v6795_v43 = vld [vmem:[%s7178_s4 + $0xe4] ss:$16 sps:$4 sm:$0xff]  }
 0x6fb   :  { %7815 = vst [vmem:[#allocation25_spill] sm:$0xff] %v6789_v27  ;;  %7816 = vst [vmem:[#allocation26_spill] sm:$0xff] %v6795_v43 }
 0x6fd   :  { %v4195_v18 = vpop.eup %4194  ;;  %2765 = vmatpush1.bf16.msra.mxu0 %v6783_v54  ;;  %2806 = vmatpush1.bf16.msra.mxu1 %v6789_v27  ;;  %v6807_v27 = vld [vmem:[%s7178_s4 + $0xe0] ss:$16 sps:$4 sm:$0xff]  }
 0x6fe   :  { %2766 = vmatprep.subr.bf16.mxu0 %v6795_v43  ;;  %2807 = vmatprep.subr.bf16.mxu1 %v6801_v16  ;;  %v2667_v54 = vmul.f32 %v4195_v18, %v4193_v52  ;;  %v6813_v43 = vld [vmem:[%s7178_s4 + $0xe8] ss:$16 sps:$4 sm:$0xff]   ;;  %v7817_v18 = vld [vmem:[#allocation40_spill] sm:$0xff] }
 0x6ff   :  { %v7818_v52 = vld [vmem:[#allocation41_spill] sm:$0xff] }
 0x700   :  { %v2668_v40 = vpack.c.bf16 %v2667_v54, %v2667_v54  ;;  %v7819_v54 = vld [vmem:[#allocation4_spill] sm:$0xff] }
 0x701   :  { %2767 = vmatpush1.bf16.msra.mxu0 %v6807_v27  ;;  %2808 = vmatpush1.bf16.msra.mxu1 %v6813_v43 }
 0x702   :  { %2862 = vmatprep.subr.bf16.mxu0 %v6307_v36  ;;  %2903 = vmatprep.subr.bf16.mxu1 %v6313_v4 }
 0x704   :  { %2785 = vmatmul.mubr.bf16.vlgmr.msra.gmra.mrb[84].mxu0 %v2668_v40  ;;  %2826 = vmatmul.mubr.bf16.vlgmr.msra.gmra.mrb[84].mxu1 %v2668_v40 }
 0x705   :  { %2863 = vmatpush1.bf16.msra.mxu0 %v6321_v50  ;;  %2904 = vmatpush1.bf16.msra.mxu1 %v6327_v51 }
 0x706   :  { %2864 = vmatprep.subr.bf16.mxu0 %v6333_v19  ;;  %2905 = vmatprep.subr.bf16.mxu1 %v6339_v31 }
 0x707   :  { %2894 = vmatprep.mubr.bf16.mxu0 %v7487_v62  ;;  %2935 = vmatprep.mubr.bf16.mxu1 %v7487_v62 }
 0x709   :  { %2865 = vmatpush1.bf16.msra.mxu0 %v6347_v0  ;;  %2906 = vmatpush1.bf16.msra.mxu1 %v6353_v5 }
 0x70a   :  { %2866 = vmatprep.subr.bf16.mxu0 %v6359_v15  ;;  %2907 = vmatprep.subr.bf16.mxu1 %v6365_v25 }
 0x70d   :  { %2867 = vmatpush1.bf16.msra.mxu0 %v6371_v29  ;;  %2908 = vmatpush1.bf16.msra.mxu1 %v6377_v32 }
 0x70e   :  { %2868 = vmatprep.subr.bf16.mxu0 %v6383_v59  ;;  %2909 = vmatprep.subr.bf16.mxu1 %v6389_v9 }
 0x711   :  { %2869 = vmatpush1.bf16.msra.mxu0 %v6395_v53  ;;  %2910 = vmatpush1.bf16.msra.mxu1 %v6401_v26 }
 0x712   :  { %2870 = vmatprep.subr.bf16.mxu0 %v6407_v33  ;;  %2911 = vmatprep.subr.bf16.mxu1 %v6413_v37 }
 0x715   :  { %2871 = vmatpush1.bf16.msra.mxu0 %v6419_v7  ;;  %2912 = vmatpush1.bf16.msra.mxu1 %v6425_v8 }
 0x716   :  { %2872 = vmatprep.subr.bf16.mxu0 %v6431_v44  ;;  %2913 = vmatprep.subr.bf16.mxu1 %v6437_v41 }
 0x719   :  { %2873 = vmatpush1.bf16.msra.mxu0 %v6443_v20  ;;  %2914 = vmatpush1.bf16.msra.mxu1 %v6449_v13 }
 0x71a   :  { %2874 = vmatprep.subr.bf16.mxu0 %v6455_v24  ;;  %2915 = vmatprep.subr.bf16.mxu1 %v6461_v11 }
 0x71d   :  { %2875 = vmatpush1.bf16.msra.mxu0 %v6467_v22  ;;  %2916 = vmatpush1.bf16.msra.mxu1 %v6473_v58 }
 0x71e   :  { %2876 = vmatprep.subr.bf16.mxu0 %v6479_v56  ;;  %2917 = vmatprep.subr.bf16.mxu1 %v6485_v57  ;;  %v7829_v57 = vld [vmem:[#allocation14_spill] sm:$0xff] }
 0x721   :  { %2877 = vmatpush1.bf16.msra.mxu0 %v6491_v34  ;;  %2918 = vmatpush1.bf16.msra.mxu1 %v6497_v61  ;;  %v7820_v34 = vld [vmem:[#allocation5_spill] sm:$0xff]  ;;  %v7821_v61 = vld [vmem:[#allocation6_spill] sm:$0xff] }
 0x722   :  { %2974 = vmatprep.subr.bf16.mxu0 %v6503_v12  ;;  %3015 = vmatprep.subr.bf16.mxu1 %v6509_v6  ;;  %v7822_v12 = vld [vmem:[#allocation7_spill] sm:$0xff]  ;;  %v7823_v6 = vld [vmem:[#allocation8_spill] sm:$0xff] }
 0x724   :  { %2895 = vmatmul.mubr.bf16.vlgmr.msra.gmra.mrb[88].mxu0 %v2668_v40  ;;  %2936 = vmatmul.mubr.bf16.vlgmr.msra.gmra.mrb[88].mxu1 %v2668_v40  ;;  %v7824_v40 = vld [vmem:[#allocation9_spill] sm:$0xff] }
 0x725   :  { %2975 = vmatpush1.bf16.msra.mxu0 %v6517_v17  ;;  %3016 = vmatpush1.bf16.msra.mxu1 %v7817_v18  ;;  %v7825_v17 = vld [vmem:[#allocation10_spill] sm:$0xff]  ;;  %v7826_v18 = vld [vmem:[#allocation11_spill] sm:$0xff] }
 0x726   :  { %2976 = vmatprep.subr.bf16.mxu0 %v7818_v52  ;;  %3017 = vmatprep.subr.bf16.mxu1 %v7819_v54  ;;  %v7827_v52 = vld [vmem:[#allocation12_spill] sm:$0xff]  ;;  %v7828_v54 = vld [vmem:[#allocation13_spill] sm:$0xff] }
 0x727   :  { %3006 = vmatprep.mubr.bf16.mxu0 %v7487_v62  ;;  %3047 = vmatprep.mubr.bf16.mxu1 %v7487_v62 }
 0x729   :  { %2977 = vmatpush1.bf16.msra.mxu0 %v7820_v34  ;;  %3018 = vmatpush1.bf16.msra.mxu1 %v7821_v61  ;;  %v6871_v61 = vld [vmem:[%s7177_s5 + $0x84] ss:$16 sps:$4 sm:$0xff]  }
 0x72a   :  { %2978 = vmatprep.subr.bf16.mxu0 %v7822_v12  ;;  %3019 = vmatprep.subr.bf16.mxu1 %v7823_v6  ;;  %7830 = vst [vmem:[#allocation27_spill] sm:$0xff] %v6871_v61 }
 0x72d   :  { %2979 = vmatpush1.bf16.msra.mxu0 %v7824_v40  ;;  %3020 = vmatpush1.bf16.msra.mxu1 %v7825_v17  ;;  %v6877_v40 = vld [vmem:[%s7177_s5 + $0x8c] ss:$16 sps:$4 sm:$0xff]  }
 0x72e   :  { %2980 = vmatprep.subr.bf16.mxu0 %v7826_v18  ;;  %3021 = vmatprep.subr.bf16.mxu1 %v7827_v52  ;;  %7831 = vst [vmem:[#allocation28_spill] sm:$0xff] %v6877_v40 }
 0x731   :  { %2981 = vmatpush1.bf16.msra.mxu0 %v7828_v54  ;;  %3022 = vmatpush1.bf16.msra.mxu1 %v7829_v57  ;;  %v6883_v54 = vld [vmem:[%s7177_s5 + $0x80] ss:$16 sps:$4 sm:$0xff]   ;;  %v6889_v57 = vld [vmem:[%s7177_s5 + $0x88] ss:$16 sps:$4 sm:$0xff]  }
 0x732   :  { %2982 = vmatprep.subr.bf16.mxu0 %v6871_v61  ;;  %3023 = vmatprep.subr.bf16.mxu1 %v6877_v40  ;;  %7832 = vst [vmem:[#allocation29_spill] sm:$0xff] %v6883_v54  ;;  %7833 = vst [vmem:[#allocation60_spill] sm:$0xff] %v6889_v57  ;;  %v6895_v61 = vld [vmem:[%s7177_s5 + $0xa4] ss:$16 sps:$4 sm:$0xff]   ;;  %v6901_v40 = vld [vmem:[%s7177_s5 + $0xac] ss:$16 sps:$4 sm:$0xff]  }
 0x733   :  { %7834 = vst [vmem:[#allocation61_spill] sm:$0xff] %v6895_v61  ;;  %7835 = vst [vmem:[#allocation62_spill] sm:$0xff] %v6901_v40 }
 0x735   :  { %2983 = vmatpush1.bf16.msra.mxu0 %v6883_v54  ;;  %3024 = vmatpush1.bf16.msra.mxu1 %v6889_v57  ;;  %v6907_v54 = vld [vmem:[%s7177_s5 + $0xa0] ss:$16 sps:$4 sm:$0xff]   ;;  %v6913_v57 = vld [vmem:[%s7177_s5 + $0xa8] ss:$16 sps:$4 sm:$0xff]  }
 0x736   :  { %2984 = vmatprep.subr.bf16.mxu0 %v6895_v61  ;;  %3025 = vmatprep.subr.bf16.mxu1 %v6901_v40  ;;  %7836 = vst [vmem:[#allocation63_spill] sm:$0xff] %v6907_v54  ;;  %7837 = vst [vmem:[#allocation64_spill] sm:$0xff] %v6913_v57  ;;  %v6919_v61 = vld [vmem:[%s7177_s5 + $0xc4] ss:$16 sps:$4 sm:$0xff]   ;;  %v6925_v40 = vld [vmem:[%s7177_s5 + $0xcc] ss:$16 sps:$4 sm:$0xff]  }
 0x737   :  { %7838 = vst [vmem:[#allocation42_spill] sm:$0xff] %v6919_v61  ;;  %7839 = vst [vmem:[#allocation43_spill] sm:$0xff] %v6925_v40 }
 0x739   :  { %2985 = vmatpush1.bf16.msra.mxu0 %v6907_v54  ;;  %3026 = vmatpush1.bf16.msra.mxu1 %v6913_v57  ;;  %v6931_v54 = vld [vmem:[%s7177_s5 + $0xc0] ss:$16 sps:$4 sm:$0xff]   ;;  %v6937_v57 = vld [vmem:[%s7177_s5 + $0xc8] ss:$16 sps:$4 sm:$0xff]  }
 0x73a   :  { %2986 = vmatprep.subr.bf16.mxu0 %v6919_v61  ;;  %3027 = vmatprep.subr.bf16.mxu1 %v6925_v40  ;;  %7840 = vst [vmem:[#allocation44_spill] sm:$0xff] %v6931_v54  ;;  %7841 = vst [vmem:[#allocation45_spill] sm:$0xff] %v6937_v57  ;;  %v6943_v61 = vld [vmem:[%s7177_s5 + $0xe4] ss:$16 sps:$4 sm:$0xff]   ;;  %v6949_v40 = vld [vmem:[%s7177_s5 + $0xec] ss:$16 sps:$4 sm:$0xff]  }
 0x73b   :  { %7842 = vst [vmem:[#allocation46_spill] sm:$0xff] %v6943_v61  ;;  %7843 = vst [vmem:[#allocation73_spill] sm:$0xff] %v6949_v40 }
 0x73d   :  { %2987 = vmatpush1.bf16.msra.mxu0 %v6931_v54  ;;  %3028 = vmatpush1.bf16.msra.mxu1 %v6937_v57  ;;  %v6955_v54 = vld [vmem:[%s7177_s5 + $0xe0] ss:$16 sps:$4 sm:$0xff]   ;;  %v6961_v57 = vld [vmem:[%s7177_s5 + $0xe8] ss:$16 sps:$4 sm:$0xff]  }
 0x73e   :  { %2988 = vmatprep.subr.bf16.mxu0 %v6943_v61  ;;  %3029 = vmatprep.subr.bf16.mxu1 %v6949_v40  ;;  %7844 = vst [vmem:[#allocation74_spill] sm:$0xff] %v6955_v54  ;;  %7845 = vst [vmem:[#allocation75_spill] sm:$0xff] %v6961_v57  ;;  %v6967_v61 = vld [vmem:[%s7178_s4 + $0x4] ss:$16 sps:$4 sm:$0xff]   ;;  %v6973_v40 = vld [vmem:[%s7178_s4 + $0xc] ss:$16 sps:$4 sm:$0xff]  }
 0x73f   :  { %7846 = vst [vmem:[#allocation76_spill] sm:$0xff] %v6967_v61  ;;  %7847 = vst [vmem:[#allocation47_spill] sm:$0xff] %v6973_v40 }
 0x741   :  { %2989 = vmatpush1.bf16.msra.mxu0 %v6955_v54  ;;  %3030 = vmatpush1.bf16.msra.mxu1 %v6961_v57 }
 0x742   :  { %3056 = vmatprep.subr.bf16.mxu0 %v6967_v61  ;;  %3097 = vmatprep.subr.bf16.mxu1 %v6973_v40 }
 0x7b7   :  { %v2704_v54 = vpop.f32.mrb[80].mxu0  ;;  %v2745_v52 = vpop.f32.mrb[80].mxu1 }
 0x7b8   :  { %v2706_v18 = vpop.f32.mrb[81].mxu0  ;;  %v2747_v17 = vpop.f32.mrb[81].mxu1 }
 0x7b9   :  { %v2708_v6 = vpop.f32.mrb[82].mxu0  ;;  %v2749_v57 = vpop.f32.mrb[82].mxu1 }
 0x7ba   :  { %v2709_v12 = vpop.f32.mrb[83].mxu0  ;;  %v2750_v34 = vpop.f32.mrb[83].mxu1 }
 0x7d7   :  { %v2786_v56 = vpop.f32.mrb[84].mxu0  ;;  %v2827_v58 = vpop.f32.mrb[84].mxu1 }
 0x7d8   :  { %v2787_v22 = vadd.f32 %v2786_v56, %v2704_v54  ;;  %v2828_v11 = vadd.f32 %v2827_v58, %v2745_v52  ;;  %v2788_v61 = vpop.f32.mrb[85].mxu0  ;;  %v2829_v24 = vpop.f32.mrb[85].mxu1  ;;  %v7848_v52 = vld [vmem:[#allocation81_spill] sm:$0xff]  ;;  %v7849_v54 = vld [vmem:[#allocation82_spill] sm:$0xff] }
 0x7d9   :  { %v2789_v13 = vadd.f32 %v2788_v61, %v2706_v18  ;;  %v2830_v20 = vadd.f32 %v2829_v24, %v2747_v17  ;;  %v2790_v41 = vpop.f32.mrb[86].mxu0  ;;  %v2831_v44 = vpop.f32.mrb[86].mxu1 }
 0x7da   :  { %v2834_v40 = vadd.f32 %v2787_v22, %v5401_v14  ;;  %v2791_v8 = vpop.f32.mrb[87].mxu0  ;;  %v2832_v7 = vpop.f32.mrb[87].mxu1  ;;  %v2836_v58 = vadd.f32 %v2828_v11, %v5416_v21 }
 0x7db   :  { %v2835_v37 = vadd.f32 %v2789_v13, %v5405_v23  ;;  %v2837_v34 = vadd.f32 %v2830_v20, %v5411_v35 }
 0x7dc   :  { %v3759_v6 = vmul.f32 -1.442695, %v2834_v40 }
 0x7dd   :  { %v3760_v57 = vmul.f32 -1.442695, %v2835_v37  ;;  %v3761_v56 = vmul.f32 -1.442695, %v2837_v34 }
 0x7de   :  { %4196 = vpow2.f32 %v3759_v6 }
 0x7df   :  { %4198 = vpow2.f32 %v3760_v57 }
 0x7e0   :  { %4200 = vpow2.f32 %v3761_v56  ;;  %v7850_v56 = vld [vmem:[#allocation83_spill] sm:$0xff] }
 0x7e1   :  { %4202 = vtanh.f32 %v2836_v58 }
 0x7e8   :  { %v4197_v12 = vpop.eup %4196 }
 0x7e9   :  { %v4199_v61 = vpop.eup %4198  ;;  %v2841_v24 = vadd.f32 1.0, %v4197_v12  ;;  %v7851_v12 = vld [vmem:[#allocation84_spill] sm:$0xff] }
 0x7ea   :  { %v2847_v44 = vadd.f32 1.0, %v4199_v61  ;;  %v4201_v7 = vpop.eup %4200 }
 0x7eb   :  { %4204 = vrcp.f32 %v2841_v24  ;;  %v4203_v8 = vpop.eup %4202  ;;  %v2854_v22 = vadd.f32 1.0, %v4201_v7 }
 0x7ec   :  { %4206 = vrcp.f32 %v2847_v44 }
 0x7ed   :  { %4208 = vrcp.f32 %v2854_v22 }
 0x7f5   :  { %v4205_v41 = vpop.eup %4204 }
 0x7f6   :  { %v4207_v13 = vpop.eup %4206  ;;  %v2858_v37 = vmul.f32 %v4205_v41, %v4203_v8 }
 0x7f7   :  { %v2857_v17 = vmul.f32 %v4207_v13, %v6625_v28  ;;  %v2896_v20 = vpop.f32.mrb[88].mxu0  ;;  %v2937_v18 = vpop.f32.mrb[88].mxu1 }
 0x7f8   :  { %v2944_v11 = vadd.f32 %v2896_v20, %v7848_v52  ;;  %v2946_v40 = vadd.f32 %v2937_v18, %v7849_v54  ;;  %v2898_v6 = vpop.f32.mrb[89].mxu0  ;;  %v2939_v57 = vpop.f32.mrb[89].mxu1 }
 0x7f9   :  { %v6983_v34 = vadd.f32 %v2858_v37, %v2857_v17  ;;  %v2945_v58 = vadd.f32 %v2898_v6, %v7850_v56  ;;  %v2947_v61 = vadd.f32 %v2939_v57, %v7851_v12  ;;  %v2900_v24 = vpop.f32.mrb[90].mxu0  ;;  %v2941_v44 = vpop.f32.mrb[90].mxu1 }
 0x7fa   :  { %v3762_v7 = vmul.f32 -1.442695, %v2944_v11  ;;  %v2901_v8 = vpop.f32.mrb[91].mxu0  ;;  %v2942_v28 = vpop.f32.mrb[91].mxu1  ;;  %v7852_v44 = vld [vmem:[#allocation15_spill] sm:$0xff] }
 0x7fb   :  { %v3763_v41 = vmul.f32 -1.442695, %v2945_v58  ;;  %4210 = vtanh.f32 %v6983_v34  ;;  %v3764_v13 = vmul.f32 -1.442695, %v2947_v61  ;;  %v4209_v20 = vpop.eup %4208  ;;  %v7854_v8 = vld [vmem:[#allocation17_spill] sm:$0xff]  ;;  %v7855_v28 = vld [vmem:[#allocation18_spill] sm:$0xff] }
 0x7fc   :  { %4212 = vpow2.f32 %v3762_v7  ;;  %v7853_v7 = vld [vmem:[#allocation16_spill] sm:$0xff] }
 0x7fd   :  { %4214 = vpow2.f32 %v3763_v41  ;;  %v7857_v41 = vld [vmem:[#allocation20_spill] sm:$0xff] }
 0x7fe   :  { %4216 = vpow2.f32 %v3764_v13  ;;  %v7858_v13 = vld [vmem:[#allocation21_spill] sm:$0xff] }
 0x7ff   :  { %4218 = vtanh.f32 %v2946_v40 }
 0x805   :  { %v4211_v18 = vpop.eup %4210 }
 0x806   :  { %v4213_v37 = vpop.eup %4212  ;;  %v2861_v17 = vmul.f32 %v4211_v18, %v4209_v20  ;;  %v7859_v20 = vld [vmem:[#allocation22_spill] sm:$0xff]  ;;  %v7860_v18 = vld [vmem:[#allocation23_spill] sm:$0xff] }
 0x807   :  { %v4215_v52 = vpop.eup %4214  ;;  %v2951_v54 = vadd.f32 1.0, %v4213_v37 }
 0x808   :  { %v2957_v6 = vadd.f32 1.0, %v4215_v52  ;;  %v2973_v57 = vpack.c.bf16 %v2861_v17, %v2861_v17  ;;  %v4217_v22 = vpop.eup %4216  ;;  %v7861_v52 = vld [vmem:[#allocation24_spill] sm:$0xff] }
 0x809   :  { %4220 = vrcp.f32 %v2951_v54  ;;  %v4219_v11 = vpop.eup %4218  ;;  %v2964_v12 = vadd.f32 1.0, %v4217_v22  ;;  %v7862_v54 = vld [vmem:[#allocation25_spill] sm:$0xff] }
 0x80a   :  { %4222 = vrcp.f32 %v2957_v6  ;;  %3007 = vmatmul.mubr.bf16.vlgmr.msra.gmra.mrb[92].mxu0 %v2973_v57  ;;  %3048 = vmatmul.mubr.bf16.vlgmr.msra.gmra.mrb[92].mxu1 %v2973_v57  ;;  %v7863_v6 = vld [vmem:[#allocation26_spill] sm:$0xff] }
 0x80b   :  { %3057 = vmatpush1.bf16.msra.mxu0 %v6633_v45  ;;  %3098 = vmatpush1.bf16.msra.mxu1 %v6639_v49  ;;  %4224 = vrcp.f32 %v2964_v12  ;;  %v7885_v12 = vld [vmem:[#allocation5_spill] sm:$0xff] }
 0x80c   :  { %3058 = vmatprep.subr.bf16.mxu0 %v6645_v48  ;;  %3099 = vmatprep.subr.bf16.mxu1 %v6651_v2 }
 0x80d   :  { %3088 = vmatprep.mubr.bf16.mxu0 %v7487_v62  ;;  %3129 = vmatprep.mubr.bf16.mxu1 %v7487_v62 }
 0x80f   :  { %3059 = vmatpush1.bf16.msra.mxu0 %v6659_v30  ;;  %3100 = vmatpush1.bf16.msra.mxu1 %v6665_v63 }
 0x810   :  { %3060 = vmatprep.subr.bf16.mxu0 %v6671_v38  ;;  %3101 = vmatprep.subr.bf16.mxu1 %v6677_v10 }
 0x813   :  { %v4221_v40 = vpop.eup %4220  ;;  %3061 = vmatpush1.bf16.msra.mxu0 %v6683_v39  ;;  %3102 = vmatpush1.bf16.msra.mxu1 %v6689_v1 }
 0x814   :  { %v4223_v56 = vpop.eup %4222  ;;  %v2968_v58 = vmul.f32 %v4221_v40, %v4219_v11  ;;  %3062 = vmatprep.subr.bf16.mxu0 %v6695_v55  ;;  %3103 = vmatprep.subr.bf16.mxu1 %v6701_v42  ;;  %v7881_v11 = vld [vmem:[#allocation39_spill] sm:$0xff]  ;;  %v7882_v40 = vld [vmem:[#allocation40_spill] sm:$0xff] }
 0x815   :  { %v2967_v61 = vmul.f32 %v4223_v56, %v6705_v47  ;;  %v7856_v47 = vld [vmem:[#allocation19_spill] sm:$0xff]  ;;  %v4225_v37 = vpop.eup %4224  ;;  %v7883_v56 = vld [vmem:[#allocation41_spill] sm:$0xff] }
 0x817   :  { %v7003_v24 = vadd.f32 %v2968_v58, %v2967_v61  ;;  %3063 = vmatpush1.bf16.msra.mxu0 %v6710_v3  ;;  %3104 = vmatpush1.bf16.msra.mxu1 %v6716_v46  ;;  %v7884_v58 = vld [vmem:[#allocation4_spill] sm:$0xff]  ;;  %v7886_v61 = vld [vmem:[#allocation6_spill] sm:$0xff] }
 0x818   :  { %3064 = vmatprep.subr.bf16.mxu0 %v6722_v60  ;;  %3105 = vmatprep.subr.bf16.mxu1 %v7852_v44 }
 0x819   :  { %4226 = vtanh.f32 %v7003_v24 }
 0x81b   :  { %3065 = vmatpush1.bf16.msra.mxu0 %v7853_v7  ;;  %3106 = vmatpush1.bf16.msra.mxu1 %v7854_v8 }
 0x81c   :  { %3066 = vmatprep.subr.bf16.mxu0 %v7855_v28  ;;  %3107 = vmatprep.subr.bf16.mxu1 %v7856_v47 }
 0x81f   :  { %3067 = vmatpush1.bf16.msra.mxu0 %v7857_v41  ;;  %3108 = vmatpush1.bf16.msra.mxu1 %v7858_v13 }
 0x820   :  { %3068 = vmatprep.subr.bf16.mxu0 %v7859_v20  ;;  %3109 = vmatprep.subr.bf16.mxu1 %v7860_v18 }
 0x823   :  { %v4227_v17 = vpop.eup %4226  ;;  %3069 = vmatpush1.bf16.msra.mxu0 %v7861_v52  ;;  %3110 = vmatpush1.bf16.msra.mxu1 %v7862_v54 }
 0x824   :  { %3070 = vmatprep.subr.bf16.mxu0 %v7863_v6  ;;  %3111 = vmatprep.subr.bf16.mxu1 %v6801_v16  ;;  %v2971_v57 = vmul.f32 %v4227_v17, %v4225_v37  ;;  %v7887_v37 = vld [vmem:[#allocation7_spill] sm:$0xff]  ;;  %v7888_v17 = vld [vmem:[#allocation8_spill] sm:$0xff] }
 0x826   :  { %v2972_v22 = vpack.c.bf16 %v2971_v57, %v2971_v57  ;;  %v7889_v57 = vld [vmem:[#allocation9_spill] sm:$0xff] }
 0x827   :  { %3071 = vmatpush1.bf16.msra.mxu0 %v6807_v27  ;;  %3112 = vmatpush1.bf16.msra.mxu1 %v6813_v43 }
 0x828   :  { %3166 = vmatprep.subr.bf16.mxu0 %v6307_v36  ;;  %3207 = vmatprep.subr.bf16.mxu1 %v6313_v4  ;;  %v7864_v36 = vld [vmem:[#allocation65_spill] sm:$0xff]  ;;  %v7865_v4 = vld [vmem:[#allocation66_spill] sm:$0xff] }
 0x82a   :  { %3089 = vmatmul.mubr.bf16.vlgmr.msra.gmra.mrb[96].mxu0 %v2972_v22  ;;  %3130 = vmatmul.mubr.bf16.vlgmr.msra.gmra.mrb[96].mxu1 %v2972_v22 }
 0x82b   :  { %3167 = vmatpush1.bf16.msra.mxu0 %v6321_v50  ;;  %3208 = vmatpush1.bf16.msra.mxu1 %v6327_v51  ;;  %v7866_v50 = vld [vmem:[#allocation67_spill] sm:$0xff]  ;;  %v7867_v51 = vld [vmem:[#allocation68_spill] sm:$0xff] }
 0x82c   :  { %3168 = vmatprep.subr.bf16.mxu0 %v6333_v19  ;;  %3209 = vmatprep.subr.bf16.mxu1 %v6339_v31  ;;  %v7868_v19 = vld [vmem:[#allocation69_spill] sm:$0xff]  ;;  %v7869_v31 = vld [vmem:[#allocation70_spill] sm:$0xff] }
 0x82d   :  { %3198 = vmatprep.mubr.bf16.mxu0 %v7487_v62  ;;  %3239 = vmatprep.mubr.bf16.mxu1 %v7487_v62 }
 0x82f   :  { %3169 = vmatpush1.bf16.msra.mxu0 %v6347_v0  ;;  %3210 = vmatpush1.bf16.msra.mxu1 %v6353_v5  ;;  %v7870_v0 = vld [vmem:[#allocation71_spill] sm:$0xff]  ;;  %v7871_v5 = vld [vmem:[#allocation72_spill] sm:$0xff] }
 0x830   :  { %3170 = vmatprep.subr.bf16.mxu0 %v6359_v15  ;;  %3211 = vmatprep.subr.bf16.mxu1 %v6365_v25  ;;  %v7872_v15 = vld [vmem:[#allocation30_spill] sm:$0xff]  ;;  %v7873_v25 = vld [vmem:[#allocation31_spill] sm:$0xff] }
 0x833   :  { %3171 = vmatpush1.bf16.msra.mxu0 %v6371_v29  ;;  %3212 = vmatpush1.bf16.msra.mxu1 %v6377_v32  ;;  %v7874_v29 = vld [vmem:[#allocation32_spill] sm:$0xff]  ;;  %v7875_v32 = vld [vmem:[#allocation33_spill] sm:$0xff] }
 0x834   :  { %3172 = vmatprep.subr.bf16.mxu0 %v6383_v59  ;;  %3213 = vmatprep.subr.bf16.mxu1 %v6389_v9  ;;  %v7876_v59 = vld [vmem:[#allocation34_spill] sm:$0xff]  ;;  %v7877_v9 = vld [vmem:[#allocation35_spill] sm:$0xff] }
 0x837   :  { %3173 = vmatpush1.bf16.msra.mxu0 %v6395_v53  ;;  %3214 = vmatpush1.bf16.msra.mxu1 %v6401_v26  ;;  %v7878_v53 = vld [vmem:[#allocation36_spill] sm:$0xff]  ;;  %v7879_v26 = vld [vmem:[#allocation37_spill] sm:$0xff] }
 0x838   :  { %3174 = vmatprep.subr.bf16.mxu0 %v6407_v33  ;;  %3215 = vmatprep.subr.bf16.mxu1 %v7864_v36  ;;  %v7880_v33 = vld [vmem:[#allocation38_spill] sm:$0xff]  ;;  %v7891_v36 = vld [vmem:[#allocation11_spill] sm:$0xff] }
 0x83b   :  { %3175 = vmatpush1.bf16.msra.mxu0 %v7865_v4  ;;  %3216 = vmatpush1.bf16.msra.mxu1 %v7866_v50  ;;  %v7892_v4 = vld [vmem:[#allocation12_spill] sm:$0xff]  ;;  %v7893_v50 = vld [vmem:[#allocation13_spill] sm:$0xff] }
 0x83c   :  { %3176 = vmatprep.subr.bf16.mxu0 %v7867_v51  ;;  %3217 = vmatprep.subr.bf16.mxu1 %v7868_v19  ;;  %v7894_v51 = vld [vmem:[#allocation14_spill] sm:$0xff]  ;;  %v7895_v19 = vld [vmem:[#allocation27_spill] sm:$0xff] }
 0x83f   :  { %3177 = vmatpush1.bf16.msra.mxu0 %v7869_v31  ;;  %3218 = vmatpush1.bf16.msra.mxu1 %v7870_v0  ;;  %v7896_v31 = vld [vmem:[#allocation28_spill] sm:$0xff]  ;;  %v7897_v0 = vld [vmem:[#allocation29_spill] sm:$0xff] }
 0x840   :  { %3178 = vmatprep.subr.bf16.mxu0 %v7871_v5  ;;  %3219 = vmatprep.subr.bf16.mxu1 %v7872_v15  ;;  %v7898_v5 = vld [vmem:[#allocation60_spill] sm:$0xff]  ;;  %v7899_v15 = vld [vmem:[#allocation61_spill] sm:$0xff] }
 0x843   :  { %3179 = vmatpush1.bf16.msra.mxu0 %v7873_v25  ;;  %3220 = vmatpush1.bf16.msra.mxu1 %v7874_v29  ;;  %v7900_v25 = vld [vmem:[#allocation62_spill] sm:$0xff]  ;;  %v7901_v29 = vld [vmem:[#allocation63_spill] sm:$0xff] }
 0x844   :  { %3180 = vmatprep.subr.bf16.mxu0 %v7875_v32  ;;  %3221 = vmatprep.subr.bf16.mxu1 %v7876_v59  ;;  %v7902_v32 = vld [vmem:[#allocation64_spill] sm:$0xff]  ;;  %v7903_v59 = vld [vmem:[#allocation42_spill] sm:$0xff] }
 0x847   :  { %3181 = vmatpush1.bf16.msra.mxu0 %v7877_v9  ;;  %3222 = vmatpush1.bf16.msra.mxu1 %v7878_v53  ;;  %v7904_v9 = vld [vmem:[#allocation43_spill] sm:$0xff]  ;;  %v7905_v53 = vld [vmem:[#allocation44_spill] sm:$0xff] }
 0x848   :  { %3278 = vmatprep.subr.bf16.mxu0 %v7879_v26  ;;  %3319 = vmatprep.subr.bf16.mxu1 %v7880_v33  ;;  %v7906_v26 = vld [vmem:[#allocation45_spill] sm:$0xff]  ;;  %v7907_v33 = vld [vmem:[#allocation46_spill] sm:$0xff] }
 0x84a   :  { %3199 = vmatmul.mubr.bf16.vlgmr.msra.gmra.mrb[100].mxu0 %v2972_v22  ;;  %3240 = vmatmul.mubr.bf16.vlgmr.msra.gmra.mrb[100].mxu1 %v2972_v22  ;;  %v7890_v22 = vld [vmem:[#allocation10_spill] sm:$0xff] }
 0x84b   :  { %3279 = vmatpush1.bf16.msra.mxu0 %v7881_v11  ;;  %3320 = vmatpush1.bf16.msra.mxu1 %v7882_v40  ;;  %v7908_v11 = vld [vmem:[#allocation73_spill] sm:$0xff]  ;;  %v7909_v40 = vld [vmem:[#allocation74_spill] sm:$0xff] }
 0x84c   :  { %3280 = vmatprep.subr.bf16.mxu0 %v7883_v56  ;;  %3321 = vmatprep.subr.bf16.mxu1 %v7884_v58  ;;  %v7910_v56 = vld [vmem:[#allocation75_spill] sm:$0xff]  ;;  %v7911_v58 = vld [vmem:[#allocation76_spill] sm:$0xff] }
 0x84d   :  { %3310 = vmatprep.mubr.bf16.mxu0 %v7487_v62  ;;  %3351 = vmatprep.mubr.bf16.mxu1 %v7487_v62 }
 0x84f   :  { %3281 = vmatpush1.bf16.msra.mxu0 %v7885_v12  ;;  %3322 = vmatpush1.bf16.msra.mxu1 %v7886_v61  ;;  %v7912_v12 = vld [vmem:[#allocation47_spill] sm:$0xff] }
 0x850   :  { %3282 = vmatprep.subr.bf16.mxu0 %v7887_v37  ;;  %3323 = vmatprep.subr.bf16.mxu1 %v7888_v17 }
 0x853   :  { %3283 = vmatpush1.bf16.msra.mxu0 %v7889_v57  ;;  %3324 = vmatpush1.bf16.msra.mxu1 %v7890_v22 }
 0x854   :  { %3284 = vmatprep.subr.bf16.mxu0 %v7891_v36  ;;  %3325 = vmatprep.subr.bf16.mxu1 %v7892_v4 }
 0x857   :  { %3285 = vmatpush1.bf16.msra.mxu0 %v7893_v50  ;;  %3326 = vmatpush1.bf16.msra.mxu1 %v7894_v51 }
 0x858   :  { %3286 = vmatprep.subr.bf16.mxu0 %v7895_v19  ;;  %3327 = vmatprep.subr.bf16.mxu1 %v7896_v31 }
 0x85b   :  { %3287 = vmatpush1.bf16.msra.mxu0 %v7897_v0  ;;  %3328 = vmatpush1.bf16.msra.mxu1 %v7898_v5 }
 0x85c   :  { %3288 = vmatprep.subr.bf16.mxu0 %v7899_v15  ;;  %3329 = vmatprep.subr.bf16.mxu1 %v7900_v25 }
 0x85f   :  { %3289 = vmatpush1.bf16.msra.mxu0 %v7901_v29  ;;  %3330 = vmatpush1.bf16.msra.mxu1 %v7902_v32 }
 0x860   :  { %3290 = vmatprep.subr.bf16.mxu0 %v7903_v59  ;;  %3331 = vmatprep.subr.bf16.mxu1 %v7904_v9 }
 0x863   :  { %3291 = vmatpush1.bf16.msra.mxu0 %v7905_v53  ;;  %3332 = vmatpush1.bf16.msra.mxu1 %v7906_v26 }
 0x864   :  { %3292 = vmatprep.subr.bf16.mxu0 %v7907_v33  ;;  %3333 = vmatprep.subr.bf16.mxu1 %v7908_v11 }
 0x867   :  { %3293 = vmatpush1.bf16.msra.mxu0 %v7909_v40  ;;  %3334 = vmatpush1.bf16.msra.mxu1 %v7910_v56 }
 0x868   :  { %3360 = vmatprep.subr.bf16.mxu0 %v7911_v58  ;;  %3401 = vmatprep.subr.bf16.mxu1 %v7912_v12 }
 0x8dd   :  { %v3008_v61 = vpop.f32.mrb[92].mxu0  ;;  %v3049_v37 = vpop.f32.mrb[92].mxu1 }
 0x8de   :  { %v3010_v17 = vpop.f32.mrb[93].mxu0  ;;  %v3051_v57 = vpop.f32.mrb[93].mxu1 }
 0x8df   :  { %v3012_v22 = vpop.f32.mrb[94].mxu0  ;;  %v3053_v36 = vpop.f32.mrb[94].mxu1 }
 0x8e0   :  { %v3013_v4 = vpop.f32.mrb[95].mxu0  ;;  %v3054_v50 = vpop.f32.mrb[95].mxu1 }
 0x8fd   :  { %v3090_v51 = vpop.f32.mrb[96].mxu0  ;;  %v3131_v19 = vpop.f32.mrb[96].mxu1 }
 0x8fe   :  { %v3091_v31 = vadd.f32 %v3090_v51, %v3008_v61  ;;  %v3132_v0 = vadd.f32 %v3131_v19, %v3049_v37  ;;  %v3092_v5 = vpop.f32.mrb[97].mxu0  ;;  %v3133_v15 = vpop.f32.mrb[97].mxu1 }
 0x8ff   :  { %v3093_v25 = vadd.f32 %v3092_v5, %v3010_v17  ;;  %v3134_v29 = vadd.f32 %v3133_v15, %v3051_v57  ;;  %v3094_v32 = vpop.f32.mrb[98].mxu0  ;;  %v3135_v59 = vpop.f32.mrb[98].mxu1 }
 0x900   :  { %v3138_v9 = vadd.f32 %v3091_v31, %v5401_v14  ;;  %v3095_v53 = vpop.f32.mrb[99].mxu0  ;;  %v3136_v26 = vpop.f32.mrb[99].mxu1  ;;  %v3140_v12 = vadd.f32 %v3132_v0, %v5416_v21 }
 0x901   :  { %v3139_v33 = vadd.f32 %v3093_v25, %v5405_v23  ;;  %v3141_v56 = vadd.f32 %v3134_v29, %v5411_v35  ;;  %v7913_v25 = vld [vmem:[#allocation85_spill] sm:$0xff]  ;;  %v7914_v29 = vld [vmem:[#allocation86_spill] sm:$0xff]  ;;  %v7915_v26 = vld [vmem:[#allocation87_spill] sm:$0xff] }
 0x902   :  { %v3765_v11 = vmul.f32 -1.442695, %v3138_v9 }
 0x903   :  { %v3766_v40 = vmul.f32 -1.442695, %v3139_v33  ;;  %v3767_v58 = vmul.f32 -1.442695, %v3141_v56 }
 0x904   :  { %4228 = vpow2.f32 %v3765_v11  ;;  %v7916_v11 = vld [vmem:[#allocation88_spill] sm:$0xff] }
 0x905   :  { %4230 = vpow2.f32 %v3766_v40 }
 0x906   :  { %4232 = vpow2.f32 %v3767_v58 }
 0x907   :  { %4234 = vtanh.f32 %v3140_v12 }
 0x90e   :  { %v4229_v61 = vpop.eup %4228 }
 0x90f   :  { %v4231_v37 = vpop.eup %4230  ;;  %v3145_v17 = vadd.f32 1.0, %v4229_v61 }
 0x910   :  { %v3151_v57 = vadd.f32 1.0, %v4231_v37  ;;  %v4233_v22 = vpop.eup %4232 }
 0x911   :  { %4236 = vrcp.f32 %v3145_v17  ;;  %v4235_v36 = vpop.eup %4234  ;;  %v3158_v19 = vadd.f32 1.0, %v4233_v22 }
 0x912   :  { %4238 = vrcp.f32 %v3151_v57 }
 0x913   :  { %4240 = vrcp.f32 %v3158_v19 }
 0x91b   :  { %v4237_v4 = vpop.eup %4236 }
 0x91c   :  { %v4239_v50 = vpop.eup %4238  ;;  %v3162_v51 = vmul.f32 %v4237_v4, %v4235_v36 }
 0x91d   :  { %v3161_v31 = vmul.f32 %v4239_v50, %v6983_v34  ;;  %v3200_v5 = vpop.f32.mrb[100].mxu0  ;;  %v3241_v15 = vpop.f32.mrb[100].mxu1 }
 0x91e   :  { %v3248_v0 = vadd.f32 %v3200_v5, %v7913_v25  ;;  %v3250_v32 = vadd.f32 %v3241_v15, %v7914_v29  ;;  %v3202_v59 = vpop.f32.mrb[101].mxu0  ;;  %v3243_v9 = vpop.f32.mrb[101].mxu1 }
 0x91f   :  { %v7101_v53 = vadd.f32 %v3162_v51, %v3161_v31  ;;  %v3249_v33 = vadd.f32 %v3202_v59, %v7915_v26  ;;  %v3251_v40 = vadd.f32 %v3243_v9, %v7916_v11  ;;  %v3204_v56 = vpop.f32.mrb[102].mxu0  ;;  %v3245_v58 = vpop.f32.mrb[102].mxu1 }
 0x920   :  { %v3768_v12 = vmul.f32 -1.442695, %v3248_v0  ;;  %v3205_v61 = vpop.f32.mrb[103].mxu0  ;;  %v3246_v34 = vpop.f32.mrb[103].mxu1 }
 0x921   :  { %v3769_v37 = vmul.f32 -1.442695, %v3249_v33  ;;  %4242 = vtanh.f32 %v7101_v53  ;;  %v3770_v17 = vmul.f32 -1.442695, %v3251_v40  ;;  %v4241_v57 = vpop.eup %4240 }
 0x922   :  { %4244 = vpow2.f32 %v3768_v12 }
 0x923   :  { %4246 = vpow2.f32 %v3769_v37 }
 0x924   :  { %4248 = vpow2.f32 %v3770_v17 }
 0x925   :  { %4250 = vtanh.f32 %v3250_v32 }
 0x92b   :  { %v4243_v22 = vpop.eup %4242 }
 0x92c   :  { %v4245_v36 = vpop.eup %4244  ;;  %v3165_v4 = vmul.f32 %v4243_v22, %v4241_v57 }
 0x92d   :  { %v4247_v50 = vpop.eup %4246  ;;  %v3255_v51 = vadd.f32 1.0, %v4245_v36 }
 0x92e   :  { %v3261_v31 = vadd.f32 1.0, %v4247_v50  ;;  %v3277_v5 = vpack.c.bf16 %v3165_v4, %v3165_v4  ;;  %v4249_v19 = vpop.eup %4248 }
 0x92f   :  { %4252 = vrcp.f32 %v3255_v51 }
 0x930   :  { %4254 = vrcp.f32 %v3261_v31  ;;  %3311 = vmatmul.mubr.bf16.vlgmr.msra.gmra.mrb[104].mxu0 %v3277_v5  ;;  %3352 = vmatmul.mubr.bf16.vlgmr.msra.gmra.mrb[104].mxu1 %v3277_v5 }
 0x931   :  { %3361 = vmatpush1.bf16.msra.mxu0 %v6633_v45  ;;  %3402 = vmatpush1.bf16.msra.mxu1 %v6639_v49  ;;  %v4251_v45 = vpop.eup %4250 }
 0x932   :  { %3362 = vmatprep.subr.bf16.mxu0 %v6645_v48  ;;  %3403 = vmatprep.subr.bf16.mxu1 %v6651_v2  ;;  %v3268_v2 = vadd.f32 1.0, %v4249_v19 }
 0x933   :  { %3392 = vmatprep.mubr.bf16.mxu0 %v7487_v62  ;;  %3433 = vmatprep.mubr.bf16.mxu1 %v7487_v62 }
 0x934   :  { %4256 = vrcp.f32 %v3268_v2 }
 0x935   :  { %3363 = vmatpush1.bf16.msra.mxu0 %v6659_v30  ;;  %3404 = vmatpush1.bf16.msra.mxu1 %v6665_v63 }
 0x936   :  { %3364 = vmatprep.subr.bf16.mxu0 %v6671_v38  ;;  %3405 = vmatprep.subr.bf16.mxu1 %v6677_v10 }
 0x939   :  { %v4253_v15 = vpop.eup %4252  ;;  %3365 = vmatpush1.bf16.msra.mxu0 %v6683_v39  ;;  %3406 = vmatpush1.bf16.msra.mxu1 %v6689_v1  ;;  %v4012_v1 = vld [vmem:[%s7181_s7] sm:$0xff]  }
 0x93a   :  { %v4255_v49 = vpop.eup %4254  ;;  %v3272_v48 = vmul.f32 %v4253_v15, %v4251_v45  ;;  %3366 = vmatprep.subr.bf16.mxu0 %v6695_v55  ;;  %3407 = vmatprep.subr.bf16.mxu1 %v6701_v42  ;;  %v4470_v55 = vmov 0.0   ;;  %v4013_v42 = vld [vmem:[%s7181_s7 + $0x8] sm:$0xff]   ;;  %v3774_v45 = vld [vmem:[%s7182_s8] ss:$0 sm:$0xff] }
 0x93b   :  { %v3271_v62 = vmul.f32 %v4255_v49, %v7003_v24 }
 0x93d   :  { %v3273_v30 = vadd.f32 %v3272_v48, %v3271_v62  ;;  %3367 = vmatpush1.bf16.msra.mxu0 %v6710_v3  ;;  %3408 = vmatpush1.bf16.msra.mxu1 %v6716_v46  ;;  %v4014_v3 = vld [vmem:[%s7181_s7 + $0x10] sm:$0xff]   ;;  %v4015_v46 = vld [vmem:[%s7181_s7 + $0x18] sm:$0xff]  }
 0x93e   :  { %3368 = vmatprep.subr.bf16.mxu0 %v6722_v60  ;;  %3409 = vmatprep.subr.bf16.mxu1 %v7852_v44  ;;  %v4257_v63 = vpop.eup %4256  ;;  %v4016_v60 = vld [vmem:[%s7181_s7 + $0x20] sm:$0xff]  }
 0x93f   :  { %4258 = vtanh.f32 %v3273_v30 }
 0x941   :  { %3369 = vmatpush1.bf16.msra.mxu0 %v7853_v7  ;;  %3410 = vmatpush1.bf16.msra.mxu1 %v7854_v8 }
 0x942   :  { %3370 = vmatprep.subr.bf16.mxu0 %v7855_v28  ;;  %3411 = vmatprep.subr.bf16.mxu1 %v7856_v47 }
 0x945   :  { %3371 = vmatpush1.bf16.msra.mxu0 %v7857_v41  ;;  %3412 = vmatpush1.bf16.msra.mxu1 %v7858_v13 }
 0x946   :  { %3372 = vmatprep.subr.bf16.mxu0 %v7859_v20  ;;  %3413 = vmatprep.subr.bf16.mxu1 %v7860_v18 }
 0x949   :  { %v4259_v38 = vpop.eup %4258  ;;  %3373 = vmatpush1.bf16.msra.mxu0 %v7861_v52  ;;  %3414 = vmatpush1.bf16.msra.mxu1 %v7862_v54 }
 0x94a   :  { %3374 = vmatprep.subr.bf16.mxu0 %v7863_v6  ;;  %3415 = vmatprep.subr.bf16.mxu1 %v6801_v16  ;;  %v3275_v10 = vmul.f32 %v4259_v38, %v4257_v63  ;;  %v4017_v16 = vld [vmem:[%s7181_s7 + $0x28] sm:$0xff]  }
 0x94c   :  { %v3276_v39 = vpack.c.bf16 %v3275_v10, %v3275_v10 }
 0x94d   :  { %3375 = vmatpush1.bf16.msra.mxu0 %v6807_v27  ;;  %3416 = vmatpush1.bf16.msra.mxu1 %v6813_v43  ;;  %v4018_v27 = vld [vmem:[%s7181_s7 + $0x30] sm:$0xff]   ;;  %v4019_v43 = vld [vmem:[%s7181_s7 + $0x38] sm:$0xff]  }
 0x94e   :  { %3792 = vmatprep.subr.bf16.mxu0 %v4470_v55 }
 0x950   :  { %3393 = vmatmul.mubr.bf16.vlgmr.msra.gmra.mrb[108].mxu0 %v3276_v39  ;;  %3434 = vmatmul.mubr.bf16.vlgmr.msra.gmra.mrb[108].mxu1 %v3276_v39 }
 0x951   :  { %3793 = vmatpush3.bf16.msra.mxu0 %v4012_v1  ;;  %3808 = vmatprep.mubr.msk.bf16.mxu0 %vm4471_vm0, %v4470_v55 }
 0x952   :  { %3794 = vmatprep.subr.bf16.mxu0 %v4470_v55 }
 0x955   :  { %3795 = vmatpush3.bf16.msra.mxu0 %v4013_v42 }
 0x956   :  { %3796 = vmatprep.subr.bf16.mxu0 %v4470_v55 }
 0x959   :  { %3797 = vmatpush3.bf16.msra.mxu0 %v4014_v3 }
 0x95a   :  { %3798 = vmatprep.subr.bf16.mxu0 %v4470_v55 }
 0x95d   :  { %3799 = vmatpush3.bf16.msra.mxu0 %v4015_v46 }
 0x95e   :  { %3800 = vmatprep.subr.bf16.mxu0 %v4470_v55 }
 0x961   :  { %3801 = vmatpush3.bf16.msra.mxu0 %v4016_v60 }
 0x962   :  { %3802 = vmatprep.subr.bf16.mxu0 %v4470_v55 }
 0x965   :  { %3803 = vmatpush3.bf16.msra.mxu0 %v4017_v16 }
 0x966   :  { %3804 = vmatprep.subr.bf16.mxu0 %v4470_v55 }
 0x969   :  { %3805 = vmatpush3.bf16.msra.mxu0 %v4018_v27 }
 0x96a   :  { %3806 = vmatprep.subr.bf16.mxu0 %v4470_v55 }
 0x96d   :  { %3807 = vmatpush3.bf16.msra.mxu0 %v4019_v43 }
 0xa03   :  { %v3312_v24 = vpop.f32.mrb[104].mxu0  ;;  %v3353_v44 = vpop.f32.mrb[104].mxu1 }
 0xa04   :  { %v3314_v7 = vpop.f32.mrb[105].mxu0  ;;  %v3355_v8 = vpop.f32.mrb[105].mxu1 }
 0xa05   :  { %v3316_v28 = vpop.f32.mrb[106].mxu0  ;;  %v3357_v47 = vpop.f32.mrb[106].mxu1 }
 0xa06   :  { %v3317_v41 = vpop.f32.mrb[107].mxu0  ;;  %v3358_v13 = vpop.f32.mrb[107].mxu1 }
 0xa23   :  { %v3394_v20 = vpop.f32.mrb[108].mxu0  ;;  %v3435_v18 = vpop.f32.mrb[108].mxu1 }
 0xa24   :  { %v3395_v52 = vadd.f32 %v3394_v20, %v3312_v24  ;;  %v3436_v54 = vadd.f32 %v3435_v18, %v3353_v44  ;;  %v3396_v6 = vpop.f32.mrb[109].mxu0  ;;  %v3437_v25 = vpop.f32.mrb[109].mxu1 }
 0xa25   :  { %v3397_v0 = vadd.f32 %v3396_v6, %v3314_v7  ;;  %v3438_v29 = vadd.f32 %v3437_v25, %v3355_v8  ;;  %v3398_v32 = vpop.f32.mrb[110].mxu0  ;;  %v3439_v59 = vpop.f32.mrb[110].mxu1 }
 0xa26   :  { %v3442_v9 = vadd.f32 %v3395_v52, %v5401_v14  ;;  %v3399_v26 = vpop.f32.mrb[111].mxu0  ;;  %v3440_v33 = vpop.f32.mrb[111].mxu1  ;;  %v3444_v61 = vadd.f32 %v3436_v54, %v5416_v21 }
 0xa27   :  { %v3443_v11 = vadd.f32 %v3397_v0, %v5405_v23  ;;  %v3445_v58 = vadd.f32 %v3438_v29, %v5411_v35 }
 0xa28   :  { %v3771_v40 = vmul.f32 -1.442695, %v3442_v9 }
 0xa29   :  { %v3772_v56 = vmul.f32 -1.442695, %v3443_v11  ;;  %v3773_v12 = vmul.f32 -1.442695, %v3445_v58 }
 0xa2a   :  { %4260 = vpow2.f32 %v3771_v40 }
 0xa2b   :  { %4262 = vpow2.f32 %v3772_v56 }
 0xa2c   :  { %4264 = vpow2.f32 %v3773_v12 }
 0xa2d   :  { %4266 = vtanh.f32 %v3444_v61 }
 0xa34   :  { %v4261_v34 = vpop.eup %4260 }
 0xa35   :  { %v4263_v37 = vpop.eup %4262  ;;  %v3449_v17 = vadd.f32 1.0, %v4261_v34 }
 0xa36   :  { %v3455_v57 = vadd.f32 1.0, %v4263_v37  ;;  %v4265_v14 = vpop.eup %4264 }
 0xa37   :  { %4268 = vrcp.f32 %v3449_v17  ;;  %v4267_v22 = vpop.eup %4266  ;;  %v3462_v50 = vadd.f32 1.0, %v4265_v14 }
 0xa38   :  { %4270 = vrcp.f32 %v3455_v57 }
 0xa39   :  { %4272 = vrcp.f32 %v3462_v50 }
 0xa41   :  { %v4269_v23 = vpop.eup %4268 }
 0xa42   :  { %v4271_v36 = vpop.eup %4270  ;;  %v3466_v4 = vmul.f32 %v4269_v23, %v4267_v22 }
 0xa43   :  { %v3465_v51 = vmul.f32 %v4271_v36, %v7101_v53  ;;  %v4273_v21 = vpop.eup %4272 }
 0xa45   :  { %v3467_v35 = vadd.f32 %v3466_v4, %v3465_v51 }
 0xa47   :  { %4274 = vtanh.f32 %v3467_v35 }
 0xa51   :  { %v4275_v31 = vpop.eup %4274 }
 0xa52   :  { %v3469_v5 = vmul.f32 %v4275_v31, %v4273_v21 }
 0xa54   :  { %v3477_v19 = vpack.c.bf16 %v3469_v5, %v3469_v5 }
 0xa56   :  { %3809 = vmatmul.mubr.bf16.vlgmr.msra.gmra.mrb[112].mxu0 %v3477_v19 }
 0xb29   :  { %v3583_v15 = vpop.f32.mrb[112].mxu0 }
 0xb2a   :  { %v3584_v49 = vadd.f32 %v3774_v45, %v3583_v15  ;;  %v3810_v48 = vpop.f32.mrb[113].mxu0 }
 0xb2b   :  { %v3586_v2 = vpop.f32.mrb[114].mxu0 }
 0xb2c   :  { %3589 = vst [vmem:[%s7183_s9] sm:$0xff] %v3584_v49  ;;  %v3811_v53 = vpop.f32.mrb[115].mxu0 }

</bundles_post_ra>
